<compile_context>
chip_gen: v7x
topology: tpu7x:2x2x1
jax: 0.10.0
libtpu: 0.0.40
codegen_flags: <defaults>
</compile_context>

<pallas_src>
import functools

import jax
import jax.numpy as jnp
from jax import lax
from jax.experimental import pallas as pl
from jax.experimental.pallas import tpu as pltpu


# ----------------------------------------------------------------------------
# In-kernel helpers
# ----------------------------------------------------------------------------
def _layernorm(v, w, b, eps):
    # f32 statistics regardless of matmul dtype.
    mu = jnp.mean(v, axis=-1, keepdims=True)
    c = v - mu
    var = jnp.mean(c * c, axis=-1, keepdims=True)
    return c * lax.rsqrt(var + eps) * w + b


def _gelu_exact(x):
    # PyTorch nn.GELU() default (erf-based, exact).
    return 0.5 * x * (1.0 + lax.erf(x * (2.0 ** -0.5)))


def _vit_block(x, ln1w, ln1b, wq, wk, wv, wproj, ln2w, ln2b, wfc1, wfc2,
               *, num_heads, eps):
    """One transformer Block for a block of bB batch elements.

    x: (bB, N, D) f32.  wq/wk/wv/wproj: (D, D) bf16.  wfc1/wfc2 bf16.
    """
    bB, N, D = x.shape
    H = num_heads
    hd = D // H
    scale = hd ** -0.5
    M = bB * N

    # --- attention branch -------------------------------------------------
    h1 = _layernorm(x, ln1w, ln1b, eps)                        # (bB, N, D) f32
    hflat = h1.reshape(M, D).astype(wq.dtype)                  # bf16 operands
    q = jnp.dot(hflat, wq, preferred_element_type=jnp.float32) * scale
    k = jnp.dot(hflat, wk, preferred_element_type=jnp.float32)
    v = jnp.dot(hflat, wv, preferred_element_type=jnp.float32)
    q = q.reshape(bB, N, D).astype(wq.dtype)
    k = k.reshape(bB, N, D).astype(wq.dtype)
    v = v.reshape(bB, N, D).astype(wq.dtype)

    # Heads exist only for the tiny (N, N) score / PV contractions.  The
    # projected q/k/v are sliced along features (head-major layout matches the
    # reference reshape(B, N, H, hd)); head outputs are merged back along the
    # feature axis so the output projection is one full-width (D, D) dot.
    head_outs = []
    for h in range(H):                                          # static loop
        sl = slice(h * hd, (h + 1) * hd)
        qh, kh, vh = q[:, :, sl], k[:, :, sl], v[:, :, sl]
        s = jnp.einsum("bqd,bkd->bqk", qh, kh,
                       preferred_element_type=jnp.float32)      # (bB, N, N) f32
        s = s - jnp.max(s, axis=-1, keepdims=True)
        p = jnp.exp(s)                                          # f32 softmax
        p = p * pl.reciprocal(jnp.sum(p, axis=-1, keepdims=True), approx=True)
        head_outs.append(
            jnp.einsum("bqk,bkd->bqd", p.astype(vh.dtype), vh,
                       preferred_element_type=jnp.float32))     # (bB, N, hd)
    a = jnp.concatenate(head_outs, axis=-1)                     # (bB, N, D) f32
    o = jnp.dot(a.reshape(M, D).astype(wproj.dtype), wproj,
                preferred_element_type=jnp.float32)
    x = x + o.reshape(bB, N, D)

    # --- MLP branch ---------------------------------------------------------
    h2 = _layernorm(x, ln2w, ln2b, eps)
    h2 = jnp.dot(h2.reshape(M, D).astype(wfc1.dtype), wfc1,
                 preferred_element_type=jnp.float32)
    h2 = _gelu_exact(h2)                                        # f32 elementwise
    h2 = jnp.dot(h2.astype(wfc2.dtype), wfc2,
                 preferred_element_type=jnp.float32)
    return x + h2.reshape(bB, N, D)


def fused_block_kernel(
        x_spa_ref, x_spe_ref,
        # spatial block params
        a_ln1w, a_ln1b, a_wq, a_wk, a_wv, a_wproj, a_ln2w, a_ln2b, a_wfc1, a_wfc2,
        # spectral block params
        b_ln1w, b_ln1b, b_wq, b_wk, b_wv, b_wproj, b_ln2w, b_ln2b, b_wfc1, b_wfc2,
        # fusion params (conv weights pre-split along the input-token axis)
        w_ss, w_sp, bias_s, w_ps, w_pp, bias_p,
        o_spa_ref, o_spe_ref,
        *, num_heads, eps):
    """SpatialSpectralBlock forward for a block of bB batch elements."""
    spa = _vit_block(x_spa_ref[...].astype(jnp.float32),
                     a_ln1w[...], a_ln1b[...], a_wq[...], a_wk[...], a_wv[...],
                     a_wproj[...], a_ln2w[...], a_ln2b[...], a_wfc1[...],
                     a_wfc2[...], num_heads=num_heads, eps=eps)
    spe = _vit_block(x_spe_ref[...].astype(jnp.float32),
                     b_ln1w[...], b_ln1b[...], b_wq[...], b_wk[...], b_wv[...],
                     b_wproj[...], b_ln2w[...], b_ln2b[...], b_wfc1[...],
                     b_wfc2[...], num_heads=num_heads, eps=eps)

    # FeatureFusion: 1x1 Conv1d over tokens == token-mixing matmul.  Token
    # concat is folded into the split weights; residuals stay resident in VMEM.
    # Fusion matrices are tiny (tokens x tokens), kept f32 for accuracy.
    wss, wsp = w_ss[...], w_sp[...]
    wps, wpp = w_ps[...], w_pp[...]
    bs, bp = bias_s[...], bias_p[...]
    bB = spa.shape[0]
    for b in range(bB):                                          # static loop
        sb, pb = spa[b], spe[b]
        fspa = (jnp.dot(wss, sb, preferred_element_type=jnp.float32)
                + jnp.dot(wsp, pb, preferred_element_type=jnp.float32) + bs)
        fspe = (jnp.dot(wps, sb, preferred_element_type=jnp.float32)
                + jnp.dot(wpp, pb, preferred_element_type=jnp.float32) + bp)
        o_spa_ref[b] = (fspa + sb).astype(o_spa_ref.dtype)
        o_spe_ref[b] = (fspe + pb).astype(o_spe_ref.dtype)


# ----------------------------------------------------------------------------
# Wrapper
# ----------------------------------------------------------------------------
def _const_spec(shape):
    zeros = (0,) * len(shape)
    return pl.BlockSpec(shape, lambda b, _z=zeros: _z)


def _block_weight_args(blk, wdtype):
    """Host-side weight prep: full-width (D, D) matrices, matmul weights bf16,
    LayerNorm params f32."""
    return (
        blk["ln1_w"].astype(jnp.float32), blk["ln1_b"].astype(jnp.float32),
        blk["wq"].astype(wdtype), blk["wk"].astype(wdtype),
        blk["wv"].astype(wdtype), blk["wproj"].astype(wdtype),
        blk["ln2_w"].astype(jnp.float32), blk["ln2_b"].astype(jnp.float32),
        blk["wfc1"].astype(wdtype), blk["wfc2"].astype(wdtype),
    )


def _block_weight_specs(D, Hmlp):
    return [
        _const_spec((1, D)), _const_spec((1, D)),
        _const_spec((D, D)), _const_spec((D, D)), _const_spec((D, D)),
        _const_spec((D, D)),
        _const_spec((1, D)), _const_spec((1, D)),
        _const_spec((D, Hmlp)), _const_spec((Hmlp, D)),
    ]


def _pick_batch_block(B, max_block=8):
    """Largest divisor of B that is <= max_block and keeps >= 2 grid steps when
    B >= 2, so both v7x TensorCores get work on the 'parallel' batch axis."""
    limit = max(1, min(max_block, B if B < 2 else B // 2))
    for bb in range(limit, 0, -1):
        if B % bb == 0:
            return bb
    return 1


def spatial_spectral_block(x_spatial, x_spectral, params, *, num_heads,
                           eps=1e-6, weight_dtype=jnp.bfloat16,
                           max_batch_block=8):
    B, N_spa, D = x_spatial.shape
    _, N_spe, _ = x_spectral.shape
    Hmlp = params["spatial_block"]["wfc1"].shape[1]
    f = params["fusion"]

    bB = _pick_batch_block(B, max_batch_block)
    grid = (B // bB,)

    spa_args = _block_weight_args(params["spatial_block"], weight_dtype)
    spe_args = _block_weight_args(params["spectral_block"], weight_dtype)
    # Split the global-fusion conv weights along the concatenated-token axis so
    # the kernel consumes [spatial | spectral] without any HBM concat.
    fus_args = (f["w_spa_g"][:, :N_spa], f["w_spa_g"][:, N_spa:], f["b_spa_g"],
                f["w_spe_g"][:, :N_spa], f["w_spe_g"][:, N_spa:], f["b_spe_g"])

    in_specs = (
        [pl.BlockSpec((bB, N_spa, D), lambda b: (b, 0, 0)),
         pl.BlockSpec((bB, N_spe, D), lambda b: (b, 0, 0))]
        + _block_weight_specs(D, Hmlp)
        + _block_weight_specs(D, Hmlp)
        + [_const_spec((N_spa, N_spa)), _const_spec((N_spa, N_spe)),
           _const_spec((N_spa, 1)),
           _const_spec((N_spe, N_spa)), _const_spec((N_spe, N_spe)),
           _const_spec((N_spe, 1))]
    )

    # Advisory cost estimate so XLA schedules around this long fused call.
    def _blk_flops(n):
        return 4 * 2 * n * D * D + 2 * 2 * n * n * D + 2 * 2 * n * D * Hmlp
    n_tot = N_spa + N_spe
    flops = B * (_blk_flops(N_spa) + _blk_flops(N_spe) + 2 * n_tot * n_tot * D)
    transcendentals = B * ((N_spa + N_spe) * Hmlp
                           + num_heads * (N_spa * N_spa + N_spe * N_spe))
    w_bytes = sum(int(a.size) * jnp.dtype(a.dtype).itemsize
                  for a in (*spa_args, *spe_args, *fus_args))
    act_bytes = 2 * (int(x_spatial.size) + int(x_spectral.size)) * \
        jnp.dtype(x_spatial.dtype).itemsize
    cost = pl.CostEstimate(flops=int(flops),
                           transcendentals=int(transcendentals),
                           bytes_accessed=int(w_bytes + act_bytes))

    kern = functools.partial(fused_block_kernel, num_heads=num_heads, eps=eps)
    out_spa, out_spe = pl.pallas_call(
        kern,
        out_shape=(jax.ShapeDtypeStruct((B, N_spa, D), x_spatial.dtype),
                   jax.ShapeDtypeStruct((B, N_spe, D), x_spectral.dtype)),
        grid=grid,
        in_specs=in_specs,
        out_specs=(pl.BlockSpec((bB, N_spa, D), lambda b: (b, 0, 0)),
                   pl.BlockSpec((bB, N_spe, D), lambda b: (b, 0, 0))),
        compiler_params=pltpu.CompilerParams(
            dimension_semantics=("parallel",),
            vmem_limit_bytes=48 * 1024 * 1024),
        cost_estimate=cost,
    )(x_spatial, x_spectral, *spa_args, *spe_args, *fus_args)
    return out_spa, out_spe


# ----------------------------------------------------------------------------
# Plain-JAX reference (same math, f32 weights) for a correctness check
# ----------------------------------------------------------------------------
def ref_vit_block(x, p, *, num_heads, eps=1e-6):
    B, N, D = x.shape
    hd = D // num_heads

    def ln(v, w, b):
        mu = jnp.mean(v, axis=-1, keepdims=True)
        var = jnp.mean((v - mu) ** 2, axis=-1, keepdims=True)
        return (v - mu) * lax.rsqrt(var + eps) * w + b

    h = ln(x, p["ln1_w"], p["ln1_b"])
    q = h @ p["wq"]
    k = h @ p["wk"]
    v = h @ p["wv"]
    q = q.reshape(B, N, num_heads, hd).transpose(0, 2, 1, 3)
    k = k.reshape(B, N, num_heads, hd).transpose(0, 2, 1, 3)
    v = v.reshape(B, N, num_heads, hd).transpose(0, 2, 1, 3)
    s = (q @ k.transpose(0, 1, 3, 2)) * (hd ** -0.5)
    p_attn = jax.nn.softmax(s, axis=-1)
    a = (p_attn @ v).transpose(0, 2, 1, 3).reshape(B, N, D)
    x = x + a @ p["wproj"]
    h2 = ln(x, p["ln2_w"], p["ln2_b"])
    h2 = jax.nn.gelu(h2 @ p["wfc1"], approximate=False) @ p["wfc2"]
    return x + h2


def ref_forward(x_spatial, x_spectral, params, *, num_heads):
    spa = ref_vit_block(x_spatial, params["spatial_block"], num_heads=num_heads)
    spe = ref_vit_block(x_spectral, params["spectral_block"], num_heads=num_heads)
    x = jnp.concatenate([spa, spe], axis=1)
    f = params["fusion"]
    o_spa = jnp.einsum("ij,bjd->bid", f["w_spa_g"], x) + f["b_spa_g"][None] + spa
    o_spe = jnp.einsum("ij,bjd->bid", f["w_spe_g"], x) + f["b_spe_g"][None] + spe
    return o_spa, o_spe


# ----------------------------------------------------------------------------
# Deterministic parameter construction
# ----------------------------------------------------------------------------
def make_block_params(key, dim, hidden):
    ks = jax.random.split(key, 6)
    return {
        "ln1_w": jnp.ones((1, dim), jnp.float32),
        "ln1_b": jnp.zeros((1, dim), jnp.float32),
        "wq": 0.02 * jax.random.normal(ks[0], (dim, dim), jnp.float32),
        "wk": 0.02 * jax.random.normal(ks[1], (dim, dim), jnp.float32),
        "wv": 0.02 * jax.random.normal(ks[2], (dim, dim), jnp.float32),
        "wproj": 0.02 * jax.random.normal(ks[3], (dim, dim), jnp.float32),
        "ln2_w": jnp.ones((1, dim), jnp.float32),
        "ln2_b": jnp.zeros((1, dim), jnp.float32),
        "wfc1": 0.02 * jax.random.normal(ks[4], (dim, hidden), jnp.float32),
        "wfc2": 0.02 * jax.random.normal(ks[5], (hidden, dim), jnp.float32),
    }


if __name__ == "__main__":
    # Small config: dim=32, heads=4, mlp_ratio=4, global_patches=2,
    # spectral_patches=2, register_tokens=1; B=8 so the batch-blocked grid has
    # 2 parallel steps of 4 batch elements each.
    B, D, num_heads = 8, 32, 4
    hidden = int(D * 4.0)
    global_patches, spectral_patches, register_tokens = 2, 2, 1
    spatial_size = global_patches ** 2 + register_tokens + 1        # 6
    spectral_size = spectral_patches + register_tokens + 1          # 4
    n_tot = spatial_size + spectral_size                            # 10

    root = jax.random.PRNGKey(0)
    k_in1, k_in2, k_b1, k_b2, k_f = jax.random.split(root, 5)

    params = {
        "spatial_block": make_block_params(k_b1, D, hidden),
        "spectral_block": make_block_params(k_b2, D, hidden),
        "fusion": {
            "w_spa_g": 0.05 * jax.random.normal(jax.random.fold_in(k_f, 0),
                                                (spatial_size, n_tot), jnp.float32),
            "b_spa_g": 0.01 * jax.random.normal(jax.random.fold_in(k_f, 1),
                                                (spatial_size, 1), jnp.float32),
            "w_spe_g": 0.05 * jax.random.normal(jax.random.fold_in(k_f, 2),
                                                (spectral_size, n_tot), jnp.float32),
            "b_spe_g": 0.01 * jax.random.normal(jax.random.fold_in(k_f, 3),
                                                (spectral_size, 1), jnp.float32),
        },
    }

    x_spatial = jax.random.normal(k_in1, (B, spatial_size, D), jnp.float32)
    x_spectral = jax.random.normal(k_in2, (B, spectral_size, D), jnp.float32)

    fwd = jax.jit(functools.partial(spatial_spectral_block, num_heads=num_heads))
    out_spa, out_spe = fwd(x_spatial, x_spectral, params)
    jax.block_until_ready((out_spa, out_spe))

    ref_spa, ref_spe = ref_forward(x_spatial, x_spectral, params,
                                   num_heads=num_heads)
    assert out_spa.shape == (B, spatial_size, D)
    assert out_spe.shape == (B, spectral_size, D)
    assert jnp.allclose(out_spa, ref_spa, rtol=1e-3, atol=1e-3)
    assert jnp.allclose(out_spe, ref_spe, rtol=1e-3, atol=1e-3)

    print("KERNEL_OK")
</pallas_src>

<mosaic_0001>
module attributes {stable_mosaic.version = 11 : i64} {
  func.func @fused_block_kernel(%arg0: i32, %arg1: memref<4x6x32xf32, #tpu.memory_space<vmem>>, %arg2: memref<4x4x32xf32, #tpu.memory_space<vmem>>, %arg3: memref<1x32xf32, #tpu.memory_space<vmem>>, %arg4: memref<1x32xf32, #tpu.memory_space<vmem>>, %arg5: memref<32x32xbf16, #tpu.memory_space<vmem>>, %arg6: memref<32x32xbf16, #tpu.memory_space<vmem>>, %arg7: memref<32x32xbf16, #tpu.memory_space<vmem>>, %arg8: memref<32x32xbf16, #tpu.memory_space<vmem>>, %arg9: memref<1x32xf32, #tpu.memory_space<vmem>>, %arg10: memref<1x32xf32, #tpu.memory_space<vmem>>, %arg11: memref<32x128xbf16, #tpu.memory_space<vmem>>, %arg12: memref<128x32xbf16, #tpu.memory_space<vmem>>, %arg13: memref<1x32xf32, #tpu.memory_space<vmem>>, %arg14: memref<1x32xf32, #tpu.memory_space<vmem>>, %arg15: memref<32x32xbf16, #tpu.memory_space<vmem>>, %arg16: memref<32x32xbf16, #tpu.memory_space<vmem>>, %arg17: memref<32x32xbf16, #tpu.memory_space<vmem>>, %arg18: memref<32x32xbf16, #tpu.memory_space<vmem>>, %arg19: memref<1x32xf32, #tpu.memory_space<vmem>>, %arg20: memref<1x32xf32, #tpu.memory_space<vmem>>, %arg21: memref<32x128xbf16, #tpu.memory_space<vmem>>, %arg22: memref<128x32xbf16, #tpu.memory_space<vmem>>, %arg23: memref<6x6xf32, #tpu.memory_space<vmem>>, %arg24: memref<6x4xf32, #tpu.memory_space<vmem>>, %arg25: memref<6x1xf32, #tpu.memory_space<vmem>>, %arg26: memref<4x6xf32, #tpu.memory_space<vmem>>, %arg27: memref<4x4xf32, #tpu.memory_space<vmem>>, %arg28: memref<4x1xf32, #tpu.memory_space<vmem>>, %arg29: memref<4x6x32xf32, #tpu.memory_space<vmem>>, %arg30: memref<4x4x32xf32, #tpu.memory_space<vmem>>) attributes {dimension_semantics = [#tpu.dimension_semantics<parallel>], iteration_bounds = array<i64: 2>, scalar_prefetch = 0 : i64, scratch_operands = 0 : i64, tpu.core_type = #tpu.core_type<tc>, window_params = [{transform_indices = @transform_0, window_bounds = array<i64: 4, 6, 32>}, {transform_indices = @transform_1, window_bounds = array<i64: 4, 4, 32>}, {pipeline_mode = #tpu.pipeline_mode<synchronous>, transform_indices = @transform_2, window_bounds = array<i64: 1, 32>}, {pipeline_mode = #tpu.pipeline_mode<synchronous>, transform_indices = @transform_3, window_bounds = array<i64: 1, 32>}, {pipeline_mode = #tpu.pipeline_mode<synchronous>, transform_indices = @transform_4, window_bounds = array<i64: 32, 32>}, {pipeline_mode = #tpu.pipeline_mode<synchronous>, transform_indices = @transform_5, window_bounds = array<i64: 32, 32>}, {pipeline_mode = #tpu.pipeline_mode<synchronous>, transform_indices = @transform_6, window_bounds = array<i64: 32, 32>}, {pipeline_mode = #tpu.pipeline_mode<synchronous>, transform_indices = @transform_7, window_bounds = array<i64: 32, 32>}, {pipeline_mode = #tpu.pipeline_mode<synchronous>, transform_indices = @transform_8, window_bounds = array<i64: 1, 32>}, {pipeline_mode = #tpu.pipeline_mode<synchronous>, transform_indices = @transform_9, window_bounds = array<i64: 1, 32>}, {pipeline_mode = #tpu.pipeline_mode<synchronous>, transform_indices = @transform_10, window_bounds = array<i64: 32, 128>}, {pipeline_mode = #tpu.pipeline_mode<synchronous>, transform_indices = @transform_11, window_bounds = array<i64: 128, 32>}, {pipeline_mode = #tpu.pipeline_mode<synchronous>, transform_indices = @transform_12, window_bounds = array<i64: 1, 32>}, {pipeline_mode = #tpu.pipeline_mode<synchronous>, transform_indices = @transform_13, window_bounds = array<i64: 1, 32>}, {pipeline_mode = #tpu.pipeline_mode<synchronous>, transform_indices = @transform_14, window_bounds = array<i64: 32, 32>}, {pipeline_mode = #tpu.pipeline_mode<synchronous>, transform_indices = @transform_15, window_bounds = array<i64: 32, 32>}, {pipeline_mode = #tpu.pipeline_mode<synchronous>, transform_indices = @transform_16, window_bounds = array<i64: 32, 32>}, {pipeline_mode = #tpu.pipeline_mode<synchronous>, transform_indices = @transform_17, window_bounds = array<i64: 32, 32>}, {pipeline_mode = #tpu.pipeline_mode<synchronous>, transform_indices = @transform_18, window_bounds = array<i64: 1, 32>}, {pipeline_mode = #tpu.pipeline_mode<synchronous>, transform_indices = @transform_19, window_bounds = array<i64: 1, 32>}, {pipeline_mode = #tpu.pipeline_mode<synchronous>, transform_indices = @transform_20, window_bounds = array<i64: 32, 128>}, {pipeline_mode = #tpu.pipeline_mode<synchronous>, transform_indices = @transform_21, window_bounds = array<i64: 128, 32>}, {pipeline_mode = #tpu.pipeline_mode<synchronous>, transform_indices = @transform_22, window_bounds = array<i64: 6, 6>}, {pipeline_mode = #tpu.pipeline_mode<synchronous>, transform_indices = @transform_23, window_bounds = array<i64: 6, 4>}, {pipeline_mode = #tpu.pipeline_mode<synchronous>, transform_indices = @transform_24, window_bounds = array<i64: 6, 1>}, {pipeline_mode = #tpu.pipeline_mode<synchronous>, transform_indices = @transform_25, window_bounds = array<i64: 4, 6>}, {pipeline_mode = #tpu.pipeline_mode<synchronous>, transform_indices = @transform_26, window_bounds = array<i64: 4, 4>}, {pipeline_mode = #tpu.pipeline_mode<synchronous>, transform_indices = @transform_27, window_bounds = array<i64: 4, 1>}, {transform_indices = @transform_28, window_bounds = array<i64: 4, 6, 32>}, {transform_indices = @transform_29, window_bounds = array<i64: 4, 4, 32>}]} {
    %c0 = arith.constant 0 : index
    %c0_0 = arith.constant 0 : index
    %c0_1 = arith.constant 0 : index
    %0 = vector.load %arg1[%c0, %c0_0, %c0_1] : memref<4x6x32xf32, #tpu.memory_space<vmem>>, vector<4x6x32xf32>
    %c0_2 = arith.constant 0 : index
    %c0_3 = arith.constant 0 : index
    %1 = vector.load %arg3[%c0_2, %c0_3] : memref<1x32xf32, #tpu.memory_space<vmem>>, vector<1x32xf32>
    %c0_4 = arith.constant 0 : index
    %c0_5 = arith.constant 0 : index
    %2 = vector.load %arg4[%c0_4, %c0_5] : memref<1x32xf32, #tpu.memory_space<vmem>>, vector<1x32xf32>
    %c0_6 = arith.constant 0 : index
    %c0_7 = arith.constant 0 : index
    %3 = vector.load %arg5[%c0_6, %c0_7] : memref<32x32xbf16, #tpu.memory_space<vmem>>, vector<32x32xbf16>
    %c0_8 = arith.constant 0 : index
    %c0_9 = arith.constant 0 : index
    %4 = vector.load %arg6[%c0_8, %c0_9] : memref<32x32xbf16, #tpu.memory_space<vmem>>, vector<32x32xbf16>
    %c0_10 = arith.constant 0 : index
    %c0_11 = arith.constant 0 : index
    %5 = vector.load %arg7[%c0_10, %c0_11] : memref<32x32xbf16, #tpu.memory_space<vmem>>, vector<32x32xbf16>
    %c0_12 = arith.constant 0 : index
    %c0_13 = arith.constant 0 : index
    %6 = vector.load %arg8[%c0_12, %c0_13] : memref<32x32xbf16, #tpu.memory_space<vmem>>, vector<32x32xbf16>
    %c0_14 = arith.constant 0 : index
    %c0_15 = arith.constant 0 : index
    %7 = vector.load %arg9[%c0_14, %c0_15] : memref<1x32xf32, #tpu.memory_space<vmem>>, vector<1x32xf32>
    %c0_16 = arith.constant 0 : index
    %c0_17 = arith.constant 0 : index
    %8 = vector.load %arg10[%c0_16, %c0_17] : memref<1x32xf32, #tpu.memory_space<vmem>>, vector<1x32xf32>
    %c0_18 = arith.constant 0 : index
    %c0_19 = arith.constant 0 : index
    %9 = vector.load %arg11[%c0_18, %c0_19] : memref<32x128xbf16, #tpu.memory_space<vmem>>, vector<32x128xbf16>
    %c0_20 = arith.constant 0 : index
    %c0_21 = arith.constant 0 : index
    %10 = vector.load %arg12[%c0_20, %c0_21] : memref<128x32xbf16, #tpu.memory_space<vmem>>, vector<128x32xbf16>
    %cst = arith.constant dense<0.000000e+00> : vector<4x6xf32>
    %11 = vector.multi_reduction <add>, %0, %cst [2] : vector<4x6x32xf32> to vector<4x6xf32>
    %12 = vector.shape_cast %11 : vector<4x6xf32> to vector<4x6x1xf32>
    %cst_22 = arith.constant 3.200000e+01 : f32
    %13 = vector.broadcast %cst_22 : f32 to vector<4x6x1xf32>
    %14 = arith.divf %12, %13 : vector<4x6x1xf32>
    %15 = vector.broadcast %14 : vector<4x6x1xf32> to vector<4x6x32xf32>
    %16 = arith.subf %0, %15 : vector<4x6x32xf32>
    %17 = arith.mulf %16, %16 : vector<4x6x32xf32>
    %cst_23 = arith.constant dense<0.000000e+00> : vector<4x6xf32>
    %18 = vector.multi_reduction <add>, %17, %cst_23 [2] : vector<4x6x32xf32> to vector<4x6xf32>
    %19 = vector.shape_cast %18 : vector<4x6xf32> to vector<4x6x1xf32>
    %cst_24 = arith.constant 3.200000e+01 : f32
    %20 = vector.broadcast %cst_24 : f32 to vector<4x6x1xf32>
    %21 = arith.divf %19, %20 : vector<4x6x1xf32>
    %cst_25 = arith.constant 9.99999997E-7 : f32
    %22 = vector.broadcast %cst_25 : f32 to vector<4x6x1xf32>
    %23 = arith.addf %21, %22 : vector<4x6x1xf32>
    %24 = math.rsqrt %23 : vector<4x6x1xf32>
    %25 = vector.broadcast %24 : vector<4x6x1xf32> to vector<4x6x32xf32>
    %26 = arith.mulf %16, %25 : vector<4x6x32xf32>
    %27 = vector.shape_cast %1 : vector<1x32xf32> to vector<1x1x32xf32>
    %28 = vector.broadcast %27 : vector<1x1x32xf32> to vector<4x6x32xf32>
    %29 = arith.mulf %26, %28 : vector<4x6x32xf32>
    %30 = vector.shape_cast %2 : vector<1x32xf32> to vector<1x1x32xf32>
    %31 = vector.broadcast %30 : vector<1x1x32xf32> to vector<4x6x32xf32>
    %32 = arith.addf %29, %31 : vector<4x6x32xf32>
    %33 = vector.shape_cast %32 : vector<4x6x32xf32> to vector<24x32xf32>
    %34 = arith.truncf %33 : vector<24x32xf32> to vector<24x32xbf16>
    %cst_26 = arith.constant dense<0.000000e+00> : vector<24x32xf32>
    %35 = tpu.matmul %34, %3, %cst_26 {dimension_numbers = #tpu.dot_dimension_numbers<[1], [0], [0], [1], [0, 0, 1, 1], [], []>} : vector<24x32xbf16>, vector<32x32xbf16>, vector<24x32xf32> -> vector<24x32xf32>
    %cst_27 = arith.constant 0.353553385 : f32
    %36 = vector.broadcast %cst_27 : f32 to vector<24x32xf32>
    %37 = arith.mulf %35, %36 : vector<24x32xf32>
    %cst_28 = arith.constant dense<0.000000e+00> : vector<24x32xf32>
    %38 = tpu.matmul %34, %4, %cst_28 {dimension_numbers = #tpu.dot_dimension_numbers<[1], [0], [0], [1], [0, 0, 1, 1], [], []>} : vector<24x32xbf16>, vector<32x32xbf16>, vector<24x32xf32> -> vector<24x32xf32>
    %cst_29 = arith.constant dense<0.000000e+00> : vector<24x32xf32>
    %39 = tpu.matmul %34, %5, %cst_29 {dimension_numbers = #tpu.dot_dimension_numbers<[1], [0], [0], [1], [0, 0, 1, 1], [], []>} : vector<24x32xbf16>, vector<32x32xbf16>, vector<24x32xf32> -> vector<24x32xf32>
    %40 = vector.shape_cast %37 : vector<24x32xf32> to vector<4x6x32xf32>
    %41 = arith.truncf %40 : vector<4x6x32xf32> to vector<4x6x32xbf16>
    %42 = vector.shape_cast %38 : vector<24x32xf32> to vector<4x6x32xf32>
    %43 = arith.truncf %42 : vector<4x6x32xf32> to vector<4x6x32xbf16>
    %44 = vector.shape_cast %39 : vector<24x32xf32> to vector<4x6x32xf32>
    %45 = arith.truncf %44 : vector<4x6x32xf32> to vector<4x6x32xbf16>
    %46 = vector.extract_strided_slice %41 {offsets = [0, 0, 0], sizes = [4, 6, 8], strides = [1, 1, 1]} : vector<4x6x32xbf16> to vector<4x6x8xbf16>
    %47 = vector.extract_strided_slice %43 {offsets = [0, 0, 0], sizes = [4, 6, 8], strides = [1, 1, 1]} : vector<4x6x32xbf16> to vector<4x6x8xbf16>
    %48 = vector.extract_strided_slice %45 {offsets = [0, 0, 0], sizes = [4, 6, 8], strides = [1, 1, 1]} : vector<4x6x32xbf16> to vector<4x6x8xbf16>
    "tpu.trace_start"() <{level = 10 : i32, message = "bqd,bkd->bqk"}> : () -> ()
    %cst_30 = arith.constant dense<0.000000e+00> : vector<4x6x6xf32>
    %49 = tpu.matmul %46, %47, %cst_30 {dimension_numbers = #tpu.dot_dimension_numbers<[2], [2], [1], [1], [0, 0, 0, 1, 1, 1], [0], [0]>} : vector<4x6x8xbf16>, vector<4x6x8xbf16>, vector<4x6x6xf32> -> vector<4x6x6xf32>
    "tpu.trace_stop"() : () -> ()
    %cst_31 = arith.constant dense<0xFF800000> : vector<4x6xf32>
    %50 = vector.multi_reduction <maximumf>, %49, %cst_31 [2] : vector<4x6x6xf32> to vector<4x6xf32>
    %51 = vector.shape_cast %50 : vector<4x6xf32> to vector<4x6x1xf32>
    %52 = vector.broadcast %51 : vector<4x6x1xf32> to vector<4x6x6xf32>
    %53 = arith.subf %49, %52 : vector<4x6x6xf32>
    %54 = math.exp %53 : vector<4x6x6xf32>
    %cst_32 = arith.constant dense<0.000000e+00> : vector<4x6xf32>
    %55 = vector.multi_reduction <add>, %54, %cst_32 [2] : vector<4x6x6xf32> to vector<4x6xf32>
    %56 = vector.shape_cast %55 : vector<4x6xf32> to vector<4x6x1xf32>
    %57 = tpu.reciprocal %56 {approx = true} : vector<4x6x1xf32> -> vector<4x6x1xf32>
    %58 = vector.broadcast %57 : vector<4x6x1xf32> to vector<4x6x6xf32>
    %59 = arith.mulf %54, %58 : vector<4x6x6xf32>
    %60 = arith.truncf %59 : vector<4x6x6xf32> to vector<4x6x6xbf16>
    "tpu.trace_start"() <{level = 10 : i32, message = "bqk,bkd->bqd"}> : () -> ()
    %cst_33 = arith.constant dense<0.000000e+00> : vector<4x6x8xf32>
    %61 = tpu.matmul %60, %48, %cst_33 {dimension_numbers = #tpu.dot_dimension_numbers<[2], [1], [1], [2], [0, 0, 0, 1, 1, 2], [0], [0]>} : vector<4x6x6xbf16>, vector<4x6x8xbf16>, vector<4x6x8xf32> -> vector<4x6x8xf32>
    "tpu.trace_stop"() : () -> ()
    %62 = vector.extract_strided_slice %41 {offsets = [0, 0, 8], sizes = [4, 6, 8], strides = [1, 1, 1]} : vector<4x6x32xbf16> to vector<4x6x8xbf16>
    %63 = vector.extract_strided_slice %43 {offsets = [0, 0, 8], sizes = [4, 6, 8], strides = [1, 1, 1]} : vector<4x6x32xbf16> to vector<4x6x8xbf16>
    %64 = vector.extract_strided_slice %45 {offsets = [0, 0, 8], sizes = [4, 6, 8], strides = [1, 1, 1]} : vector<4x6x32xbf16> to vector<4x6x8xbf16>
    "tpu.trace_start"() <{level = 10 : i32, message = "bqd,bkd->bqk"}> : () -> ()
    %cst_34 = arith.constant dense<0.000000e+00> : vector<4x6x6xf32>
    %65 = tpu.matmul %62, %63, %cst_34 {dimension_numbers = #tpu.dot_dimension_numbers<[2], [2], [1], [1], [0, 0, 0, 1, 1, 1], [0], [0]>} : vector<4x6x8xbf16>, vector<4x6x8xbf16>, vector<4x6x6xf32> -> vector<4x6x6xf32>
    "tpu.trace_stop"() : () -> ()
    %cst_35 = arith.constant dense<0xFF800000> : vector<4x6xf32>
    %66 = vector.multi_reduction <maximumf>, %65, %cst_35 [2] : vector<4x6x6xf32> to vector<4x6xf32>
    %67 = vector.shape_cast %66 : vector<4x6xf32> to vector<4x6x1xf32>
    %68 = vector.broadcast %67 : vector<4x6x1xf32> to vector<4x6x6xf32>
    %69 = arith.subf %65, %68 : vector<4x6x6xf32>
    %70 = math.exp %69 : vector<4x6x6xf32>
    %cst_36 = arith.constant dense<0.000000e+00> : vector<4x6xf32>
    %71 = vector.multi_reduction <add>, %70, %cst_36 [2] : vector<4x6x6xf32> to vector<4x6xf32>
    %72 = vector.shape_cast %71 : vector<4x6xf32> to vector<4x6x1xf32>
    %73 = tpu.reciprocal %72 {approx = true} : vector<4x6x1xf32> -> vector<4x6x1xf32>
    %74 = vector.broadcast %73 : vector<4x6x1xf32> to vector<4x6x6xf32>
    %75 = arith.mulf %70, %74 : vector<4x6x6xf32>
    %76 = arith.truncf %75 : vector<4x6x6xf32> to vector<4x6x6xbf16>
    "tpu.trace_start"() <{level = 10 : i32, message = "bqk,bkd->bqd"}> : () -> ()
    %cst_37 = arith.constant dense<0.000000e+00> : vector<4x6x8xf32>
    %77 = tpu.matmul %76, %64, %cst_37 {dimension_numbers = #tpu.dot_dimension_numbers<[2], [1], [1], [2], [0, 0, 0, 1, 1, 2], [0], [0]>} : vector<4x6x6xbf16>, vector<4x6x8xbf16>, vector<4x6x8xf32> -> vector<4x6x8xf32>
    "tpu.trace_stop"() : () -> ()
    %78 = vector.extract_strided_slice %41 {offsets = [0, 0, 16], sizes = [4, 6, 8], strides = [1, 1, 1]} : vector<4x6x32xbf16> to vector<4x6x8xbf16>
    %79 = vector.extract_strided_slice %43 {offsets = [0, 0, 16], sizes = [4, 6, 8], strides = [1, 1, 1]} : vector<4x6x32xbf16> to vector<4x6x8xbf16>
    %80 = vector.extract_strided_slice %45 {offsets = [0, 0, 16], sizes = [4, 6, 8], strides = [1, 1, 1]} : vector<4x6x32xbf16> to vector<4x6x8xbf16>
    "tpu.trace_start"() <{level = 10 : i32, message = "bqd,bkd->bqk"}> : () -> ()
    %cst_38 = arith.constant dense<0.000000e+00> : vector<4x6x6xf32>
    %81 = tpu.matmul %78, %79, %cst_38 {dimension_numbers = #tpu.dot_dimension_numbers<[2], [2], [1], [1], [0, 0, 0, 1, 1, 1], [0], [0]>} : vector<4x6x8xbf16>, vector<4x6x8xbf16>, vector<4x6x6xf32> -> vector<4x6x6xf32>
    "tpu.trace_stop"() : () -> ()
    %cst_39 = arith.constant dense<0xFF800000> : vector<4x6xf32>
    %82 = vector.multi_reduction <maximumf>, %81, %cst_39 [2] : vector<4x6x6xf32> to vector<4x6xf32>
    %83 = vector.shape_cast %82 : vector<4x6xf32> to vector<4x6x1xf32>
    %84 = vector.broadcast %83 : vector<4x6x1xf32> to vector<4x6x6xf32>
    %85 = arith.subf %81, %84 : vector<4x6x6xf32>
    %86 = math.exp %85 : vector<4x6x6xf32>
    %cst_40 = arith.constant dense<0.000000e+00> : vector<4x6xf32>
    %87 = vector.multi_reduction <add>, %86, %cst_40 [2] : vector<4x6x6xf32> to vector<4x6xf32>
    %88 = vector.shape_cast %87 : vector<4x6xf32> to vector<4x6x1xf32>
    %89 = tpu.reciprocal %88 {approx = true} : vector<4x6x1xf32> -> vector<4x6x1xf32>
    %90 = vector.broadcast %89 : vector<4x6x1xf32> to vector<4x6x6xf32>
    %91 = arith.mulf %86, %90 : vector<4x6x6xf32>
    %92 = arith.truncf %91 : vector<4x6x6xf32> to vector<4x6x6xbf16>
    "tpu.trace_start"() <{level = 10 : i32, message = "bqk,bkd->bqd"}> : () -> ()
    %cst_41 = arith.constant dense<0.000000e+00> : vector<4x6x8xf32>
    %93 = tpu.matmul %92, %80, %cst_41 {dimension_numbers = #tpu.dot_dimension_numbers<[2], [1], [1], [2], [0, 0, 0, 1, 1, 2], [0], [0]>} : vector<4x6x6xbf16>, vector<4x6x8xbf16>, vector<4x6x8xf32> -> vector<4x6x8xf32>
    "tpu.trace_stop"() : () -> ()
    %94 = vector.extract_strided_slice %41 {offsets = [0, 0, 24], sizes = [4, 6, 8], strides = [1, 1, 1]} : vector<4x6x32xbf16> to vector<4x6x8xbf16>
    %95 = vector.extract_strided_slice %43 {offsets = [0, 0, 24], sizes = [4, 6, 8], strides = [1, 1, 1]} : vector<4x6x32xbf16> to vector<4x6x8xbf16>
    %96 = vector.extract_strided_slice %45 {offsets = [0, 0, 24], sizes = [4, 6, 8], strides = [1, 1, 1]} : vector<4x6x32xbf16> to vector<4x6x8xbf16>
    "tpu.trace_start"() <{level = 10 : i32, message = "bqd,bkd->bqk"}> : () -> ()
    %cst_42 = arith.constant dense<0.000000e+00> : vector<4x6x6xf32>
    %97 = tpu.matmul %94, %95, %cst_42 {dimension_numbers = #tpu.dot_dimension_numbers<[2], [2], [1], [1], [0, 0, 0, 1, 1, 1], [0], [0]>} : vector<4x6x8xbf16>, vector<4x6x8xbf16>, vector<4x6x6xf32> -> vector<4x6x6xf32>
    "tpu.trace_stop"() : () -> ()
    %cst_43 = arith.constant dense<0xFF800000> : vector<4x6xf32>
    %98 = vector.multi_reduction <maximumf>, %97, %cst_43 [2] : vector<4x6x6xf32> to vector<4x6xf32>
    %99 = vector.shape_cast %98 : vector<4x6xf32> to vector<4x6x1xf32>
    %100 = vector.broadcast %99 : vector<4x6x1xf32> to vector<4x6x6xf32>
    %101 = arith.subf %97, %100 : vector<4x6x6xf32>
    %102 = math.exp %101 : vector<4x6x6xf32>
    %cst_44 = arith.constant dense<0.000000e+00> : vector<4x6xf32>
    %103 = vector.multi_reduction <add>, %102, %cst_44 [2] : vector<4x6x6xf32> to vector<4x6xf32>
    %104 = vector.shape_cast %103 : vector<4x6xf32> to vector<4x6x1xf32>
    %105 = tpu.reciprocal %104 {approx = true} : vector<4x6x1xf32> -> vector<4x6x1xf32>
    %106 = vector.broadcast %105 : vector<4x6x1xf32> to vector<4x6x6xf32>
    %107 = arith.mulf %102, %106 : vector<4x6x6xf32>
    %108 = arith.truncf %107 : vector<4x6x6xf32> to vector<4x6x6xbf16>
    "tpu.trace_start"() <{level = 10 : i32, message = "bqk,bkd->bqd"}> : () -> ()
    %cst_45 = arith.constant dense<0.000000e+00> : vector<4x6x8xf32>
    %109 = tpu.matmul %108, %96, %cst_45 {dimension_numbers = #tpu.dot_dimension_numbers<[2], [1], [1], [2], [0, 0, 0, 1, 1, 2], [0], [0]>} : vector<4x6x6xbf16>, vector<4x6x8xbf16>, vector<4x6x8xf32> -> vector<4x6x8xf32>
    "tpu.trace_stop"() : () -> ()
    %110 = tpu.concatenate %61, %77, %93, %109 in 2 : vector<4x6x8xf32>, vector<4x6x8xf32>, vector<4x6x8xf32>, vector<4x6x8xf32> -> vector<4x6x32xf32>
    %111 = vector.shape_cast %110 : vector<4x6x32xf32> to vector<24x32xf32>
    %112 = arith.truncf %111 : vector<24x32xf32> to vector<24x32xbf16>
    %cst_46 = arith.constant dense<0.000000e+00> : vector<24x32xf32>
    %113 = tpu.matmul %112, %6, %cst_46 {dimension_numbers = #tpu.dot_dimension_numbers<[1], [0], [0], [1], [0, 0, 1, 1], [], []>} : vector<24x32xbf16>, vector<32x32xbf16>, vector<24x32xf32> -> vector<24x32xf32>
    %114 = vector.shape_cast %113 : vector<24x32xf32> to vector<4x6x32xf32>
    %115 = arith.addf %0, %114 : vector<4x6x32xf32>
    %cst_47 = arith.constant dense<0.000000e+00> : vector<4x6xf32>
    %116 = vector.multi_reduction <add>, %115, %cst_47 [2] : vector<4x6x32xf32> to vector<4x6xf32>
    %117 = vector.shape_cast %116 : vector<4x6xf32> to vector<4x6x1xf32>
    %cst_48 = arith.constant 3.200000e+01 : f32
    %118 = vector.broadcast %cst_48 : f32 to vector<4x6x1xf32>
    %119 = arith.divf %117, %118 : vector<4x6x1xf32>
    %120 = vector.broadcast %119 : vector<4x6x1xf32> to vector<4x6x32xf32>
    %121 = arith.subf %115, %120 : vector<4x6x32xf32>
    %122 = arith.mulf %121, %121 : vector<4x6x32xf32>
    %cst_49 = arith.constant dense<0.000000e+00> : vector<4x6xf32>
    %123 = vector.multi_reduction <add>, %122, %cst_49 [2] : vector<4x6x32xf32> to vector<4x6xf32>
    %124 = vector.shape_cast %123 : vector<4x6xf32> to vector<4x6x1xf32>
    %cst_50 = arith.constant 3.200000e+01 : f32
    %125 = vector.broadcast %cst_50 : f32 to vector<4x6x1xf32>
    %126 = arith.divf %124, %125 : vector<4x6x1xf32>
    %cst_51 = arith.constant 9.99999997E-7 : f32
    %127 = vector.broadcast %cst_51 : f32 to vector<4x6x1xf32>
    %128 = arith.addf %126, %127 : vector<4x6x1xf32>
    %129 = math.rsqrt %128 : vector<4x6x1xf32>
    %130 = vector.broadcast %129 : vector<4x6x1xf32> to vector<4x6x32xf32>
    %131 = arith.mulf %121, %130 : vector<4x6x32xf32>
    %132 = vector.shape_cast %7 : vector<1x32xf32> to vector<1x1x32xf32>
    %133 = vector.broadcast %132 : vector<1x1x32xf32> to vector<4x6x32xf32>
    %134 = arith.mulf %131, %133 : vector<4x6x32xf32>
    %135 = vector.shape_cast %8 : vector<1x32xf32> to vector<1x1x32xf32>
    %136 = vector.broadcast %135 : vector<1x1x32xf32> to vector<4x6x32xf32>
    %137 = arith.addf %134, %136 : vector<4x6x32xf32>
    %138 = vector.shape_cast %137 : vector<4x6x32xf32> to vector<24x32xf32>
    %139 = arith.truncf %138 : vector<24x32xf32> to vector<24x32xbf16>
    %cst_52 = arith.constant dense<0.000000e+00> : vector<24x128xf32>
    %140 = tpu.matmul %139, %9, %cst_52 {dimension_numbers = #tpu.dot_dimension_numbers<[1], [0], [0], [1], [0, 0, 1, 1], [], []>} : vector<24x32xbf16>, vector<32x128xbf16>, vector<24x128xf32> -> vector<24x128xf32>
    %cst_53 = arith.constant 5.000000e-01 : f32
    %141 = vector.broadcast %cst_53 : f32 to vector<24x128xf32>
    %142 = arith.mulf %141, %140 : vector<24x128xf32>
    %cst_54 = arith.constant 0.707106769 : f32
    %143 = vector.broadcast %cst_54 : f32 to vector<24x128xf32>
    %144 = arith.mulf %140, %143 : vector<24x128xf32>
    %145 = math.erf %144 : vector<24x128xf32>
    %cst_55 = arith.constant 1.000000e+00 : f32
    %146 = vector.broadcast %cst_55 : f32 to vector<24x128xf32>
    %147 = arith.addf %146, %145 : vector<24x128xf32>
    %148 = arith.mulf %142, %147 : vector<24x128xf32>
    %149 = arith.truncf %148 : vector<24x128xf32> to vector<24x128xbf16>
    %cst_56 = arith.constant dense<0.000000e+00> : vector<24x32xf32>
    %150 = tpu.matmul %149, %10, %cst_56 {dimension_numbers = #tpu.dot_dimension_numbers<[1], [0], [0], [1], [0, 0, 1, 1], [], []>} : vector<24x128xbf16>, vector<128x32xbf16>, vector<24x32xf32> -> vector<24x32xf32>
    %151 = vector.shape_cast %150 : vector<24x32xf32> to vector<4x6x32xf32>
    %152 = arith.addf %115, %151 : vector<4x6x32xf32>
    %c0_57 = arith.constant 0 : index
    %c0_58 = arith.constant 0 : index
    %c0_59 = arith.constant 0 : index
    %153 = vector.load %arg2[%c0_57, %c0_58, %c0_59] : memref<4x4x32xf32, #tpu.memory_space<vmem>>, vector<4x4x32xf32>
    %c0_60 = arith.constant 0 : index
    %c0_61 = arith.constant 0 : index
    %154 = vector.load %arg13[%c0_60, %c0_61] : memref<1x32xf32, #tpu.memory_space<vmem>>, vector<1x32xf32>
    %c0_62 = arith.constant 0 : index
    %c0_63 = arith.constant 0 : index
    %155 = vector.load %arg14[%c0_62, %c0_63] : memref<1x32xf32, #tpu.memory_space<vmem>>, vector<1x32xf32>
    %c0_64 = arith.constant 0 : index
    %c0_65 = arith.constant 0 : index
    %156 = vector.load %arg15[%c0_64, %c0_65] : memref<32x32xbf16, #tpu.memory_space<vmem>>, vector<32x32xbf16>
    %c0_66 = arith.constant 0 : index
    %c0_67 = arith.constant 0 : index
    %157 = vector.load %arg16[%c0_66, %c0_67] : memref<32x32xbf16, #tpu.memory_space<vmem>>, vector<32x32xbf16>
    %c0_68 = arith.constant 0 : index
    %c0_69 = arith.constant 0 : index
    %158 = vector.load %arg17[%c0_68, %c0_69] : memref<32x32xbf16, #tpu.memory_space<vmem>>, vector<32x32xbf16>
    %c0_70 = arith.constant 0 : index
    %c0_71 = arith.constant 0 : index
    %159 = vector.load %arg18[%c0_70, %c0_71] : memref<32x32xbf16, #tpu.memory_space<vmem>>, vector<32x32xbf16>
    %c0_72 = arith.constant 0 : index
    %c0_73 = arith.constant 0 : index
    %160 = vector.load %arg19[%c0_72, %c0_73] : memref<1x32xf32, #tpu.memory_space<vmem>>, vector<1x32xf32>
    %c0_74 = arith.constant 0 : index
    %c0_75 = arith.constant 0 : index
    %161 = vector.load %arg20[%c0_74, %c0_75] : memref<1x32xf32, #tpu.memory_space<vmem>>, vector<1x32xf32>
    %c0_76 = arith.constant 0 : index
    %c0_77 = arith.constant 0 : index
    %162 = vector.load %arg21[%c0_76, %c0_77] : memref<32x128xbf16, #tpu.memory_space<vmem>>, vector<32x128xbf16>
    %c0_78 = arith.constant 0 : index
    %c0_79 = arith.constant 0 : index
    %163 = vector.load %arg22[%c0_78, %c0_79] : memref<128x32xbf16, #tpu.memory_space<vmem>>, vector<128x32xbf16>
    %cst_80 = arith.constant dense<0.000000e+00> : vector<4x4xf32>
    %164 = vector.multi_reduction <add>, %153, %cst_80 [2] : vector<4x4x32xf32> to vector<4x4xf32>
    %165 = vector.shape_cast %164 : vector<4x4xf32> to vector<4x4x1xf32>
    %cst_81 = arith.constant 3.200000e+01 : f32
    %166 = vector.broadcast %cst_81 : f32 to vector<4x4x1xf32>
    %167 = arith.divf %165, %166 : vector<4x4x1xf32>
    %168 = vector.broadcast %167 : vector<4x4x1xf32> to vector<4x4x32xf32>
    %169 = arith.subf %153, %168 : vector<4x4x32xf32>
    %170 = arith.mulf %169, %169 : vector<4x4x32xf32>
    %cst_82 = arith.constant dense<0.000000e+00> : vector<4x4xf32>
    %171 = vector.multi_reduction <add>, %170, %cst_82 [2] : vector<4x4x32xf32> to vector<4x4xf32>
    %172 = vector.shape_cast %171 : vector<4x4xf32> to vector<4x4x1xf32>
    %cst_83 = arith.constant 3.200000e+01 : f32
    %173 = vector.broadcast %cst_83 : f32 to vector<4x4x1xf32>
    %174 = arith.divf %172, %173 : vector<4x4x1xf32>
    %cst_84 = arith.constant 9.99999997E-7 : f32
    %175 = vector.broadcast %cst_84 : f32 to vector<4x4x1xf32>
    %176 = arith.addf %174, %175 : vector<4x4x1xf32>
    %177 = math.rsqrt %176 : vector<4x4x1xf32>
    %178 = vector.broadcast %177 : vector<4x4x1xf32> to vector<4x4x32xf32>
    %179 = arith.mulf %169, %178 : vector<4x4x32xf32>
    %180 = vector.shape_cast %154 : vector<1x32xf32> to vector<1x1x32xf32>
    %181 = vector.broadcast %180 : vector<1x1x32xf32> to vector<4x4x32xf32>
    %182 = arith.mulf %179, %181 : vector<4x4x32xf32>
    %183 = vector.shape_cast %155 : vector<1x32xf32> to vector<1x1x32xf32>
    %184 = vector.broadcast %183 : vector<1x1x32xf32> to vector<4x4x32xf32>
    %185 = arith.addf %182, %184 : vector<4x4x32xf32>
    %186 = vector.shape_cast %185 : vector<4x4x32xf32> to vector<16x32xf32>
    %187 = arith.truncf %186 : vector<16x32xf32> to vector<16x32xbf16>
    %cst_85 = arith.constant dense<0.000000e+00> : vector<16x32xf32>
    %188 = tpu.matmul %187, %156, %cst_85 {dimension_numbers = #tpu.dot_dimension_numbers<[1], [0], [0], [1], [0, 0, 1, 1], [], []>} : vector<16x32xbf16>, vector<32x32xbf16>, vector<16x32xf32> -> vector<16x32xf32>
    %cst_86 = arith.constant 0.353553385 : f32
    %189 = vector.broadcast %cst_86 : f32 to vector<16x32xf32>
    %190 = arith.mulf %188, %189 : vector<16x32xf32>
    %cst_87 = arith.constant dense<0.000000e+00> : vector<16x32xf32>
    %191 = tpu.matmul %187, %157, %cst_87 {dimension_numbers = #tpu.dot_dimension_numbers<[1], [0], [0], [1], [0, 0, 1, 1], [], []>} : vector<16x32xbf16>, vector<32x32xbf16>, vector<16x32xf32> -> vector<16x32xf32>
    %cst_88 = arith.constant dense<0.000000e+00> : vector<16x32xf32>
    %192 = tpu.matmul %187, %158, %cst_88 {dimension_numbers = #tpu.dot_dimension_numbers<[1], [0], [0], [1], [0, 0, 1, 1], [], []>} : vector<16x32xbf16>, vector<32x32xbf16>, vector<16x32xf32> -> vector<16x32xf32>
    %193 = vector.shape_cast %190 : vector<16x32xf32> to vector<4x4x32xf32>
    %194 = arith.truncf %193 : vector<4x4x32xf32> to vector<4x4x32xbf16>
    %195 = vector.shape_cast %191 : vector<16x32xf32> to vector<4x4x32xf32>
    %196 = arith.truncf %195 : vector<4x4x32xf32> to vector<4x4x32xbf16>
    %197 = vector.shape_cast %192 : vector<16x32xf32> to vector<4x4x32xf32>
    %198 = arith.truncf %197 : vector<4x4x32xf32> to vector<4x4x32xbf16>
    %199 = vector.extract_strided_slice %194 {offsets = [0, 0, 0], sizes = [4, 4, 8], strides = [1, 1, 1]} : vector<4x4x32xbf16> to vector<4x4x8xbf16>
    %200 = vector.extract_strided_slice %196 {offsets = [0, 0, 0], sizes = [4, 4, 8], strides = [1, 1, 1]} : vector<4x4x32xbf16> to vector<4x4x8xbf16>
    %201 = vector.extract_strided_slice %198 {offsets = [0, 0, 0], sizes = [4, 4, 8], strides = [1, 1, 1]} : vector<4x4x32xbf16> to vector<4x4x8xbf16>
    "tpu.trace_start"() <{level = 10 : i32, message = "bqd,bkd->bqk"}> : () -> ()
    %cst_89 = arith.constant dense<0.000000e+00> : vector<4x4x4xf32>
    %202 = tpu.matmul %199, %200, %cst_89 {dimension_numbers = #tpu.dot_dimension_numbers<[2], [2], [1], [1], [0, 0, 0, 1, 1, 1], [0], [0]>} : vector<4x4x8xbf16>, vector<4x4x8xbf16>, vector<4x4x4xf32> -> vector<4x4x4xf32>
    "tpu.trace_stop"() : () -> ()
    %cst_90 = arith.constant dense<0xFF800000> : vector<4x4xf32>
    %203 = vector.multi_reduction <maximumf>, %202, %cst_90 [2] : vector<4x4x4xf32> to vector<4x4xf32>
    %204 = vector.shape_cast %203 : vector<4x4xf32> to vector<4x4x1xf32>
    %205 = vector.broadcast %204 : vector<4x4x1xf32> to vector<4x4x4xf32>
    %206 = arith.subf %202, %205 : vector<4x4x4xf32>
    %207 = math.exp %206 : vector<4x4x4xf32>
    %cst_91 = arith.constant dense<0.000000e+00> : vector<4x4xf32>
    %208 = vector.multi_reduction <add>, %207, %cst_91 [2] : vector<4x4x4xf32> to vector<4x4xf32>
    %209 = vector.shape_cast %208 : vector<4x4xf32> to vector<4x4x1xf32>
    %210 = tpu.reciprocal %209 {approx = true} : vector<4x4x1xf32> -> vector<4x4x1xf32>
    %211 = vector.broadcast %210 : vector<4x4x1xf32> to vector<4x4x4xf32>
    %212 = arith.mulf %207, %211 : vector<4x4x4xf32>
    %213 = arith.truncf %212 : vector<4x4x4xf32> to vector<4x4x4xbf16>
    "tpu.trace_start"() <{level = 10 : i32, message = "bqk,bkd->bqd"}> : () -> ()
    %cst_92 = arith.constant dense<0.000000e+00> : vector<4x4x8xf32>
    %214 = tpu.matmul %213, %201, %cst_92 {dimension_numbers = #tpu.dot_dimension_numbers<[2], [1], [1], [2], [0, 0, 0, 1, 1, 2], [0], [0]>} : vector<4x4x4xbf16>, vector<4x4x8xbf16>, vector<4x4x8xf32> -> vector<4x4x8xf32>
    "tpu.trace_stop"() : () -> ()
    %215 = vector.extract_strided_slice %194 {offsets = [0, 0, 8], sizes = [4, 4, 8], strides = [1, 1, 1]} : vector<4x4x32xbf16> to vector<4x4x8xbf16>
    %216 = vector.extract_strided_slice %196 {offsets = [0, 0, 8], sizes = [4, 4, 8], strides = [1, 1, 1]} : vector<4x4x32xbf16> to vector<4x4x8xbf16>
    %217 = vector.extract_strided_slice %198 {offsets = [0, 0, 8], sizes = [4, 4, 8], strides = [1, 1, 1]} : vector<4x4x32xbf16> to vector<4x4x8xbf16>
    "tpu.trace_start"() <{level = 10 : i32, message = "bqd,bkd->bqk"}> : () -> ()
    %cst_93 = arith.constant dense<0.000000e+00> : vector<4x4x4xf32>
    %218 = tpu.matmul %215, %216, %cst_93 {dimension_numbers = #tpu.dot_dimension_numbers<[2], [2], [1], [1], [0, 0, 0, 1, 1, 1], [0], [0]>} : vector<4x4x8xbf16>, vector<4x4x8xbf16>, vector<4x4x4xf32> -> vector<4x4x4xf32>
    "tpu.trace_stop"() : () -> ()
    %cst_94 = arith.constant dense<0xFF800000> : vector<4x4xf32>
    %219 = vector.multi_reduction <maximumf>, %218, %cst_94 [2] : vector<4x4x4xf32> to vector<4x4xf32>
    %220 = vector.shape_cast %219 : vector<4x4xf32> to vector<4x4x1xf32>
    %221 = vector.broadcast %220 : vector<4x4x1xf32> to vector<4x4x4xf32>
    %222 = arith.subf %218, %221 : vector<4x4x4xf32>
    %223 = math.exp %222 : vector<4x4x4xf32>
    %cst_95 = arith.constant dense<0.000000e+00> : vector<4x4xf32>
    %224 = vector.multi_reduction <add>, %223, %cst_95 [2] : vector<4x4x4xf32> to vector<4x4xf32>
    %225 = vector.shape_cast %224 : vector<4x4xf32> to vector<4x4x1xf32>
    %226 = tpu.reciprocal %225 {approx = true} : vector<4x4x1xf32> -> vector<4x4x1xf32>
    %227 = vector.broadcast %226 : vector<4x4x1xf32> to vector<4x4x4xf32>
    %228 = arith.mulf %223, %227 : vector<4x4x4xf32>
    %229 = arith.truncf %228 : vector<4x4x4xf32> to vector<4x4x4xbf16>
    "tpu.trace_start"() <{level = 10 : i32, message = "bqk,bkd->bqd"}> : () -> ()
    %cst_96 = arith.constant dense<0.000000e+00> : vector<4x4x8xf32>
    %230 = tpu.matmul %229, %217, %cst_96 {dimension_numbers = #tpu.dot_dimension_numbers<[2], [1], [1], [2], [0, 0, 0, 1, 1, 2], [0], [0]>} : vector<4x4x4xbf16>, vector<4x4x8xbf16>, vector<4x4x8xf32> -> vector<4x4x8xf32>
    "tpu.trace_stop"() : () -> ()
    %231 = vector.extract_strided_slice %194 {offsets = [0, 0, 16], sizes = [4, 4, 8], strides = [1, 1, 1]} : vector<4x4x32xbf16> to vector<4x4x8xbf16>
    %232 = vector.extract_strided_slice %196 {offsets = [0, 0, 16], sizes = [4, 4, 8], strides = [1, 1, 1]} : vector<4x4x32xbf16> to vector<4x4x8xbf16>
    %233 = vector.extract_strided_slice %198 {offsets = [0, 0, 16], sizes = [4, 4, 8], strides = [1, 1, 1]} : vector<4x4x32xbf16> to vector<4x4x8xbf16>
    "tpu.trace_start"() <{level = 10 : i32, message = "bqd,bkd->bqk"}> : () -> ()
    %cst_97 = arith.constant dense<0.000000e+00> : vector<4x4x4xf32>
    %234 = tpu.matmul %231, %232, %cst_97 {dimension_numbers = #tpu.dot_dimension_numbers<[2], [2], [1], [1], [0, 0, 0, 1, 1, 1], [0], [0]>} : vector<4x4x8xbf16>, vector<4x4x8xbf16>, vector<4x4x4xf32> -> vector<4x4x4xf32>
    "tpu.trace_stop"() : () -> ()
    %cst_98 = arith.constant dense<0xFF800000> : vector<4x4xf32>
    %235 = vector.multi_reduction <maximumf>, %234, %cst_98 [2] : vector<4x4x4xf32> to vector<4x4xf32>
    %236 = vector.shape_cast %235 : vector<4x4xf32> to vector<4x4x1xf32>
    %237 = vector.broadcast %236 : vector<4x4x1xf32> to vector<4x4x4xf32>
    %238 = arith.subf %234, %237 : vector<4x4x4xf32>
    %239 = math.exp %238 : vector<4x4x4xf32>
    %cst_99 = arith.constant dense<0.000000e+00> : vector<4x4xf32>
    %240 = vector.multi_reduction <add>, %239, %cst_99 [2] : vector<4x4x4xf32> to vector<4x4xf32>
    %241 = vector.shape_cast %240 : vector<4x4xf32> to vector<4x4x1xf32>
    %242 = tpu.reciprocal %241 {approx = true} : vector<4x4x1xf32> -> vector<4x4x1xf32>
    %243 = vector.broadcast %242 : vector<4x4x1xf32> to vector<4x4x4xf32>
    %244 = arith.mulf %239, %243 : vector<4x4x4xf32>
    %245 = arith.truncf %244 : vector<4x4x4xf32> to vector<4x4x4xbf16>
    "tpu.trace_start"() <{level = 10 : i32, message = "bqk,bkd->bqd"}> : () -> ()
    %cst_100 = arith.constant dense<0.000000e+00> : vector<4x4x8xf32>
    %246 = tpu.matmul %245, %233, %cst_100 {dimension_numbers = #tpu.dot_dimension_numbers<[2], [1], [1], [2], [0, 0, 0, 1, 1, 2], [0], [0]>} : vector<4x4x4xbf16>, vector<4x4x8xbf16>, vector<4x4x8xf32> -> vector<4x4x8xf32>
    "tpu.trace_stop"() : () -> ()
    %247 = vector.extract_strided_slice %194 {offsets = [0, 0, 24], sizes = [4, 4, 8], strides = [1, 1, 1]} : vector<4x4x32xbf16> to vector<4x4x8xbf16>
    %248 = vector.extract_strided_slice %196 {offsets = [0, 0, 24], sizes = [4, 4, 8], strides = [1, 1, 1]} : vector<4x4x32xbf16> to vector<4x4x8xbf16>
    %249 = vector.extract_strided_slice %198 {offsets = [0, 0, 24], sizes = [4, 4, 8], strides = [1, 1, 1]} : vector<4x4x32xbf16> to vector<4x4x8xbf16>
    "tpu.trace_start"() <{level = 10 : i32, message = "bqd,bkd->bqk"}> : () -> ()
    %cst_101 = arith.constant dense<0.000000e+00> : vector<4x4x4xf32>
    %250 = tpu.matmul %247, %248, %cst_101 {dimension_numbers = #tpu.dot_dimension_numbers<[2], [2], [1], [1], [0, 0, 0, 1, 1, 1], [0], [0]>} : vector<4x4x8xbf16>, vector<4x4x8xbf16>, vector<4x4x4xf32> -> vector<4x4x4xf32>
    "tpu.trace_stop"() : () -> ()
    %cst_102 = arith.constant dense<0xFF800000> : vector<4x4xf32>
    %251 = vector.multi_reduction <maximumf>, %250, %cst_102 [2] : vector<4x4x4xf32> to vector<4x4xf32>
    %252 = vector.shape_cast %251 : vector<4x4xf32> to vector<4x4x1xf32>
    %253 = vector.broadcast %252 : vector<4x4x1xf32> to vector<4x4x4xf32>
    %254 = arith.subf %250, %253 : vector<4x4x4xf32>
    %255 = math.exp %254 : vector<4x4x4xf32>
    %cst_103 = arith.constant dense<0.000000e+00> : vector<4x4xf32>
    %256 = vector.multi_reduction <add>, %255, %cst_103 [2] : vector<4x4x4xf32> to vector<4x4xf32>
    %257 = vector.shape_cast %256 : vector<4x4xf32> to vector<4x4x1xf32>
    %258 = tpu.reciprocal %257 {approx = true} : vector<4x4x1xf32> -> vector<4x4x1xf32>
    %259 = vector.broadcast %258 : vector<4x4x1xf32> to vector<4x4x4xf32>
    %260 = arith.mulf %255, %259 : vector<4x4x4xf32>
    %261 = arith.truncf %260 : vector<4x4x4xf32> to vector<4x4x4xbf16>
    "tpu.trace_start"() <{level = 10 : i32, message = "bqk,bkd->bqd"}> : () -> ()
    %cst_104 = arith.constant dense<0.000000e+00> : vector<4x4x8xf32>
    %262 = tpu.matmul %261, %249, %cst_104 {dimension_numbers = #tpu.dot_dimension_numbers<[2], [1], [1], [2], [0, 0, 0, 1, 1, 2], [0], [0]>} : vector<4x4x4xbf16>, vector<4x4x8xbf16>, vector<4x4x8xf32> -> vector<4x4x8xf32>
    "tpu.trace_stop"() : () -> ()
    %263 = tpu.concatenate %214, %230, %246, %262 in 2 : vector<4x4x8xf32>, vector<4x4x8xf32>, vector<4x4x8xf32>, vector<4x4x8xf32> -> vector<4x4x32xf32>
    %264 = vector.shape_cast %263 : vector<4x4x32xf32> to vector<16x32xf32>
    %265 = arith.truncf %264 : vector<16x32xf32> to vector<16x32xbf16>
    %cst_105 = arith.constant dense<0.000000e+00> : vector<16x32xf32>
    %266 = tpu.matmul %265, %159, %cst_105 {dimension_numbers = #tpu.dot_dimension_numbers<[1], [0], [0], [1], [0, 0, 1, 1], [], []>} : vector<16x32xbf16>, vector<32x32xbf16>, vector<16x32xf32> -> vector<16x32xf32>
    %267 = vector.shape_cast %266 : vector<16x32xf32> to vector<4x4x32xf32>
    %268 = arith.addf %153, %267 : vector<4x4x32xf32>
    %cst_106 = arith.constant dense<0.000000e+00> : vector<4x4xf32>
    %269 = vector.multi_reduction <add>, %268, %cst_106 [2] : vector<4x4x32xf32> to vector<4x4xf32>
    %270 = vector.shape_cast %269 : vector<4x4xf32> to vector<4x4x1xf32>
    %cst_107 = arith.constant 3.200000e+01 : f32
    %271 = vector.broadcast %cst_107 : f32 to vector<4x4x1xf32>
    %272 = arith.divf %270, %271 : vector<4x4x1xf32>
    %273 = vector.broadcast %272 : vector<4x4x1xf32> to vector<4x4x32xf32>
    %274 = arith.subf %268, %273 : vector<4x4x32xf32>
    %275 = arith.mulf %274, %274 : vector<4x4x32xf32>
    %cst_108 = arith.constant dense<0.000000e+00> : vector<4x4xf32>
    %276 = vector.multi_reduction <add>, %275, %cst_108 [2] : vector<4x4x32xf32> to vector<4x4xf32>
    %277 = vector.shape_cast %276 : vector<4x4xf32> to vector<4x4x1xf32>
    %cst_109 = arith.constant 3.200000e+01 : f32
    %278 = vector.broadcast %cst_109 : f32 to vector<4x4x1xf32>
    %279 = arith.divf %277, %278 : vector<4x4x1xf32>
    %cst_110 = arith.constant 9.99999997E-7 : f32
    %280 = vector.broadcast %cst_110 : f32 to vector<4x4x1xf32>
    %281 = arith.addf %279, %280 : vector<4x4x1xf32>
    %282 = math.rsqrt %281 : vector<4x4x1xf32>
    %283 = vector.broadcast %282 : vector<4x4x1xf32> to vector<4x4x32xf32>
    %284 = arith.mulf %274, %283 : vector<4x4x32xf32>
    %285 = vector.shape_cast %160 : vector<1x32xf32> to vector<1x1x32xf32>
    %286 = vector.broadcast %285 : vector<1x1x32xf32> to vector<4x4x32xf32>
    %287 = arith.mulf %284, %286 : vector<4x4x32xf32>
    %288 = vector.shape_cast %161 : vector<1x32xf32> to vector<1x1x32xf32>
    %289 = vector.broadcast %288 : vector<1x1x32xf32> to vector<4x4x32xf32>
    %290 = arith.addf %287, %289 : vector<4x4x32xf32>
    %291 = vector.shape_cast %290 : vector<4x4x32xf32> to vector<16x32xf32>
    %292 = arith.truncf %291 : vector<16x32xf32> to vector<16x32xbf16>
    %cst_111 = arith.constant dense<0.000000e+00> : vector<16x128xf32>
    %293 = tpu.matmul %292, %162, %cst_111 {dimension_numbers = #tpu.dot_dimension_numbers<[1], [0], [0], [1], [0, 0, 1, 1], [], []>} : vector<16x32xbf16>, vector<32x128xbf16>, vector<16x128xf32> -> vector<16x128xf32>
    %cst_112 = arith.constant 5.000000e-01 : f32
    %294 = vector.broadcast %cst_112 : f32 to vector<16x128xf32>
    %295 = arith.mulf %294, %293 : vector<16x128xf32>
    %cst_113 = arith.constant 0.707106769 : f32
    %296 = vector.broadcast %cst_113 : f32 to vector<16x128xf32>
    %297 = arith.mulf %293, %296 : vector<16x128xf32>
    %298 = math.erf %297 : vector<16x128xf32>
    %cst_114 = arith.constant 1.000000e+00 : f32
    %299 = vector.broadcast %cst_114 : f32 to vector<16x128xf32>
    %300 = arith.addf %299, %298 : vector<16x128xf32>
    %301 = arith.mulf %295, %300 : vector<16x128xf32>
    %302 = arith.truncf %301 : vector<16x128xf32> to vector<16x128xbf16>
    %cst_115 = arith.constant dense<0.000000e+00> : vector<16x32xf32>
    %303 = tpu.matmul %302, %163, %cst_115 {dimension_numbers = #tpu.dot_dimension_numbers<[1], [0], [0], [1], [0, 0, 1, 1], [], []>} : vector<16x128xbf16>, vector<128x32xbf16>, vector<16x32xf32> -> vector<16x32xf32>
    %304 = vector.shape_cast %303 : vector<16x32xf32> to vector<4x4x32xf32>
    %305 = arith.addf %268, %304 : vector<4x4x32xf32>
    %c0_116 = arith.constant 0 : index
    %c0_117 = arith.constant 0 : index
    %306 = vector.load %arg23[%c0_116, %c0_117] : memref<6x6xf32, #tpu.memory_space<vmem>>, vector<6x6xf32>
    %c0_118 = arith.constant 0 : index
    %c0_119 = arith.constant 0 : index
    %307 = vector.load %arg24[%c0_118, %c0_119] : memref<6x4xf32, #tpu.memory_space<vmem>>, vector<6x4xf32>
    %c0_120 = arith.constant 0 : index
    %c0_121 = arith.constant 0 : index
    %308 = vector.load %arg26[%c0_120, %c0_121] : memref<4x6xf32, #tpu.memory_space<vmem>>, vector<4x6xf32>
    %c0_122 = arith.constant 0 : index
    %c0_123 = arith.constant 0 : index
    %309 = vector.load %arg27[%c0_122, %c0_123] : memref<4x4xf32, #tpu.memory_space<vmem>>, vector<4x4xf32>
    %c0_124 = arith.constant 0 : index
    %c0_125 = arith.constant 0 : index
    %310 = vector.load %arg25[%c0_124, %c0_125] : memref<6x1xf32, #tpu.memory_space<vmem>>, vector<6x1xf32>
    %c0_126 = arith.constant 0 : index
    %c0_127 = arith.constant 0 : index
    %311 = vector.load %arg28[%c0_126, %c0_127] : memref<4x1xf32, #tpu.memory_space<vmem>>, vector<4x1xf32>
    %312 = vector.extract_strided_slice %152 {offsets = [0, 0, 0], sizes = [1, 6, 32], strides = [1, 1, 1]} : vector<4x6x32xf32> to vector<1x6x32xf32>
    %313 = vector.shape_cast %312 : vector<1x6x32xf32> to vector<6x32xf32>
    %314 = vector.extract_strided_slice %305 {offsets = [0, 0, 0], sizes = [1, 4, 32], strides = [1, 1, 1]} : vector<4x4x32xf32> to vector<1x4x32xf32>
    %315 = vector.shape_cast %314 : vector<1x4x32xf32> to vector<4x32xf32>
    %cst_128 = arith.constant dense<0.000000e+00> : vector<6x32xf32>
    %316 = tpu.matmul %306, %313, %cst_128 {dimension_numbers = #tpu.dot_dimension_numbers<[1], [0], [0], [1], [0, 0, 1, 1], [], []>} : vector<6x6xf32>, vector<6x32xf32>, vector<6x32xf32> -> vector<6x32xf32>
    %cst_129 = arith.constant dense<0.000000e+00> : vector<6x32xf32>
    %317 = tpu.matmul %307, %315, %cst_129 {dimension_numbers = #tpu.dot_dimension_numbers<[1], [0], [0], [1], [0, 0, 1, 1], [], []>} : vector<6x4xf32>, vector<4x32xf32>, vector<6x32xf32> -> vector<6x32xf32>
    %318 = arith.addf %316, %317 : vector<6x32xf32>
    %319 = vector.broadcast %310 : vector<6x1xf32> to vector<6x32xf32>
    %320 = arith.addf %318, %319 : vector<6x32xf32>
    %cst_130 = arith.constant dense<0.000000e+00> : vector<4x32xf32>
    %321 = tpu.matmul %308, %313, %cst_130 {dimension_numbers = #tpu.dot_dimension_numbers<[1], [0], [0], [1], [0, 0, 1, 1], [], []>} : vector<4x6xf32>, vector<6x32xf32>, vector<4x32xf32> -> vector<4x32xf32>
    %cst_131 = arith.constant dense<0.000000e+00> : vector<4x32xf32>
    %322 = tpu.matmul %309, %315, %cst_131 {dimension_numbers = #tpu.dot_dimension_numbers<[1], [0], [0], [1], [0, 0, 1, 1], [], []>} : vector<4x4xf32>, vector<4x32xf32>, vector<4x32xf32> -> vector<4x32xf32>
    %323 = arith.addf %321, %322 : vector<4x32xf32>
    %324 = vector.broadcast %311 : vector<4x1xf32> to vector<4x32xf32>
    %325 = arith.addf %323, %324 : vector<4x32xf32>
    %326 = arith.addf %320, %313 : vector<6x32xf32>
    %c0_132 = arith.constant 0 : index
    %c0_133 = arith.constant 0 : index
    %c0_134 = arith.constant 0 : index
    %327 = vector.load %arg29[%c0_132, %c0_133, %c0_134] : memref<4x6x32xf32, #tpu.memory_space<vmem>>, vector<1x6x32xf32>
    %328 = vector.shape_cast %327 : vector<1x6x32xf32> to vector<6x32xf32>
    %329 = vector.shape_cast %326 : vector<6x32xf32> to vector<1x6x32xf32>
    tpu.vector_store %arg29[%c0_132, %c0_133, %c0_134], %329 {strides = array<i32>} : memref<4x6x32xf32, #tpu.memory_space<vmem>>, vector<1x6x32xf32>,
    %330 = arith.addf %325, %315 : vector<4x32xf32>
    %c0_135 = arith.constant 0 : index
    %c0_136 = arith.constant 0 : index
    %c0_137 = arith.constant 0 : index
    %331 = vector.load %arg30[%c0_135, %c0_136, %c0_137] : memref<4x4x32xf32, #tpu.memory_space<vmem>>, vector<1x4x32xf32>
    %332 = vector.shape_cast %331 : vector<1x4x32xf32> to vector<4x32xf32>
    %333 = vector.shape_cast %330 : vector<4x32xf32> to vector<1x4x32xf32>
    tpu.vector_store %arg30[%c0_135, %c0_136, %c0_137], %333 {strides = array<i32>} : memref<4x4x32xf32, #tpu.memory_space<vmem>>, vector<1x4x32xf32>,
    %334 = vector.extract_strided_slice %152 {offsets = [1, 0, 0], sizes = [1, 6, 32], strides = [1, 1, 1]} : vector<4x6x32xf32> to vector<1x6x32xf32>
    %335 = vector.shape_cast %334 : vector<1x6x32xf32> to vector<6x32xf32>
    %336 = vector.extract_strided_slice %305 {offsets = [1, 0, 0], sizes = [1, 4, 32], strides = [1, 1, 1]} : vector<4x4x32xf32> to vector<1x4x32xf32>
    %337 = vector.shape_cast %336 : vector<1x4x32xf32> to vector<4x32xf32>
    %cst_138 = arith.constant dense<0.000000e+00> : vector<6x32xf32>
    %338 = tpu.matmul %306, %335, %cst_138 {dimension_numbers = #tpu.dot_dimension_numbers<[1], [0], [0], [1], [0, 0, 1, 1], [], []>} : vector<6x6xf32>, vector<6x32xf32>, vector<6x32xf32> -> vector<6x32xf32>
    %cst_139 = arith.constant dense<0.000000e+00> : vector<6x32xf32>
    %339 = tpu.matmul %307, %337, %cst_139 {dimension_numbers = #tpu.dot_dimension_numbers<[1], [0], [0], [1], [0, 0, 1, 1], [], []>} : vector<6x4xf32>, vector<4x32xf32>, vector<6x32xf32> -> vector<6x32xf32>
    %340 = arith.addf %338, %339 : vector<6x32xf32>
    %341 = vector.broadcast %310 : vector<6x1xf32> to vector<6x32xf32>
    %342 = arith.addf %340, %341 : vector<6x32xf32>
    %cst_140 = arith.constant dense<0.000000e+00> : vector<4x32xf32>
    %343 = tpu.matmul %308, %335, %cst_140 {dimension_numbers = #tpu.dot_dimension_numbers<[1], [0], [0], [1], [0, 0, 1, 1], [], []>} : vector<4x6xf32>, vector<6x32xf32>, vector<4x32xf32> -> vector<4x32xf32>
    %cst_141 = arith.constant dense<0.000000e+00> : vector<4x32xf32>
    %344 = tpu.matmul %309, %337, %cst_141 {dimension_numbers = #tpu.dot_dimension_numbers<[1], [0], [0], [1], [0, 0, 1, 1], [], []>} : vector<4x4xf32>, vector<4x32xf32>, vector<4x32xf32> -> vector<4x32xf32>
    %345 = arith.addf %343, %344 : vector<4x32xf32>
    %346 = vector.broadcast %311 : vector<4x1xf32> to vector<4x32xf32>
    %347 = arith.addf %345, %346 : vector<4x32xf32>
    %348 = arith.addf %342, %335 : vector<6x32xf32>
    %c1 = arith.constant 1 : index
    %c0_142 = arith.constant 0 : index
    %c0_143 = arith.constant 0 : index
    %349 = vector.load %arg29[%c1, %c0_142, %c0_143] : memref<4x6x32xf32, #tpu.memory_space<vmem>>, vector<1x6x32xf32>
    %350 = vector.shape_cast %349 : vector<1x6x32xf32> to vector<6x32xf32>
    %351 = vector.shape_cast %348 : vector<6x32xf32> to vector<1x6x32xf32>
    tpu.vector_store %arg29[%c1, %c0_142, %c0_143], %351 {strides = array<i32>} : memref<4x6x32xf32, #tpu.memory_space<vmem>>, vector<1x6x32xf32>,
    %352 = arith.addf %347, %337 : vector<4x32xf32>
    %c1_144 = arith.constant 1 : index
    %c0_145 = arith.constant 0 : index
    %c0_146 = arith.constant 0 : index
    %353 = vector.load %arg30[%c1_144, %c0_145, %c0_146] : memref<4x4x32xf32, #tpu.memory_space<vmem>>, vector<1x4x32xf32>
    %354 = vector.shape_cast %353 : vector<1x4x32xf32> to vector<4x32xf32>
    %355 = vector.shape_cast %352 : vector<4x32xf32> to vector<1x4x32xf32>
    tpu.vector_store %arg30[%c1_144, %c0_145, %c0_146], %355 {strides = array<i32>} : memref<4x4x32xf32, #tpu.memory_space<vmem>>, vector<1x4x32xf32>,
    %356 = vector.extract_strided_slice %152 {offsets = [2, 0, 0], sizes = [1, 6, 32], strides = [1, 1, 1]} : vector<4x6x32xf32> to vector<1x6x32xf32>
    %357 = vector.shape_cast %356 : vector<1x6x32xf32> to vector<6x32xf32>
    %358 = vector.extract_strided_slice %305 {offsets = [2, 0, 0], sizes = [1, 4, 32], strides = [1, 1, 1]} : vector<4x4x32xf32> to vector<1x4x32xf32>
    %359 = vector.shape_cast %358 : vector<1x4x32xf32> to vector<4x32xf32>
    %cst_147 = arith.constant dense<0.000000e+00> : vector<6x32xf32>
    %360 = tpu.matmul %306, %357, %cst_147 {dimension_numbers = #tpu.dot_dimension_numbers<[1], [0], [0], [1], [0, 0, 1, 1], [], []>} : vector<6x6xf32>, vector<6x32xf32>, vector<6x32xf32> -> vector<6x32xf32>
    %cst_148 = arith.constant dense<0.000000e+00> : vector<6x32xf32>
    %361 = tpu.matmul %307, %359, %cst_148 {dimension_numbers = #tpu.dot_dimension_numbers<[1], [0], [0], [1], [0, 0, 1, 1], [], []>} : vector<6x4xf32>, vector<4x32xf32>, vector<6x32xf32> -> vector<6x32xf32>
    %362 = arith.addf %360, %361 : vector<6x32xf32>
    %363 = vector.broadcast %310 : vector<6x1xf32> to vector<6x32xf32>
    %364 = arith.addf %362, %363 : vector<6x32xf32>
    %cst_149 = arith.constant dense<0.000000e+00> : vector<4x32xf32>
    %365 = tpu.matmul %308, %357, %cst_149 {dimension_numbers = #tpu.dot_dimension_numbers<[1], [0], [0], [1], [0, 0, 1, 1], [], []>} : vector<4x6xf32>, vector<6x32xf32>, vector<4x32xf32> -> vector<4x32xf32>
    %cst_150 = arith.constant dense<0.000000e+00> : vector<4x32xf32>
    %366 = tpu.matmul %309, %359, %cst_150 {dimension_numbers = #tpu.dot_dimension_numbers<[1], [0], [0], [1], [0, 0, 1, 1], [], []>} : vector<4x4xf32>, vector<4x32xf32>, vector<4x32xf32> -> vector<4x32xf32>
    %367 = arith.addf %365, %366 : vector<4x32xf32>
    %368 = vector.broadcast %311 : vector<4x1xf32> to vector<4x32xf32>
    %369 = arith.addf %367, %368 : vector<4x32xf32>
    %370 = arith.addf %364, %357 : vector<6x32xf32>
    %c2 = arith.constant 2 : index
    %c0_151 = arith.constant 0 : index
    %c0_152 = arith.constant 0 : index
    %371 = vector.load %arg29[%c2, %c0_151, %c0_152] : memref<4x6x32xf32, #tpu.memory_space<vmem>>, vector<1x6x32xf32>
    %372 = vector.shape_cast %371 : vector<1x6x32xf32> to vector<6x32xf32>
    %373 = vector.shape_cast %370 : vector<6x32xf32> to vector<1x6x32xf32>
    tpu.vector_store %arg29[%c2, %c0_151, %c0_152], %373 {strides = array<i32>} : memref<4x6x32xf32, #tpu.memory_space<vmem>>, vector<1x6x32xf32>,
    %374 = arith.addf %369, %359 : vector<4x32xf32>
    %c2_153 = arith.constant 2 : index
    %c0_154 = arith.constant 0 : index
    %c0_155 = arith.constant 0 : index
    %375 = vector.load %arg30[%c2_153, %c0_154, %c0_155] : memref<4x4x32xf32, #tpu.memory_space<vmem>>, vector<1x4x32xf32>
    %376 = vector.shape_cast %375 : vector<1x4x32xf32> to vector<4x32xf32>
    %377 = vector.shape_cast %374 : vector<4x32xf32> to vector<1x4x32xf32>
    tpu.vector_store %arg30[%c2_153, %c0_154, %c0_155], %377 {strides = array<i32>} : memref<4x4x32xf32, #tpu.memory_space<vmem>>, vector<1x4x32xf32>,
    %378 = vector.extract_strided_slice %152 {offsets = [3, 0, 0], sizes = [1, 6, 32], strides = [1, 1, 1]} : vector<4x6x32xf32> to vector<1x6x32xf32>
    %379 = vector.shape_cast %378 : vector<1x6x32xf32> to vector<6x32xf32>
    %380 = vector.extract_strided_slice %305 {offsets = [3, 0, 0], sizes = [1, 4, 32], strides = [1, 1, 1]} : vector<4x4x32xf32> to vector<1x4x32xf32>
    %381 = vector.shape_cast %380 : vector<1x4x32xf32> to vector<4x32xf32>
    %cst_156 = arith.constant dense<0.000000e+00> : vector<6x32xf32>
    %382 = tpu.matmul %306, %379, %cst_156 {dimension_numbers = #tpu.dot_dimension_numbers<[1], [0], [0], [1], [0, 0, 1, 1], [], []>} : vector<6x6xf32>, vector<6x32xf32>, vector<6x32xf32> -> vector<6x32xf32>
    %cst_157 = arith.constant dense<0.000000e+00> : vector<6x32xf32>
    %383 = tpu.matmul %307, %381, %cst_157 {dimension_numbers = #tpu.dot_dimension_numbers<[1], [0], [0], [1], [0, 0, 1, 1], [], []>} : vector<6x4xf32>, vector<4x32xf32>, vector<6x32xf32> -> vector<6x32xf32>
    %384 = arith.addf %382, %383 : vector<6x32xf32>
    %385 = vector.broadcast %310 : vector<6x1xf32> to vector<6x32xf32>
    %386 = arith.addf %384, %385 : vector<6x32xf32>
    %cst_158 = arith.constant dense<0.000000e+00> : vector<4x32xf32>
    %387 = tpu.matmul %308, %379, %cst_158 {dimension_numbers = #tpu.dot_dimension_numbers<[1], [0], [0], [1], [0, 0, 1, 1], [], []>} : vector<4x6xf32>, vector<6x32xf32>, vector<4x32xf32> -> vector<4x32xf32>
    %cst_159 = arith.constant dense<0.000000e+00> : vector<4x32xf32>
    %388 = tpu.matmul %309, %381, %cst_159 {dimension_numbers = #tpu.dot_dimension_numbers<[1], [0], [0], [1], [0, 0, 1, 1], [], []>} : vector<4x4xf32>, vector<4x32xf32>, vector<4x32xf32> -> vector<4x32xf32>
    %389 = arith.addf %387, %388 : vector<4x32xf32>
    %390 = vector.broadcast %311 : vector<4x1xf32> to vector<4x32xf32>
    %391 = arith.addf %389, %390 : vector<4x32xf32>
    %392 = arith.addf %386, %379 : vector<6x32xf32>
    %c3 = arith.constant 3 : index
    %c0_160 = arith.constant 0 : index
    %c0_161 = arith.constant 0 : index
    %393 = vector.load %arg29[%c3, %c0_160, %c0_161] : memref<4x6x32xf32, #tpu.memory_space<vmem>>, vector<1x6x32xf32>
    %394 = vector.shape_cast %393 : vector<1x6x32xf32> to vector<6x32xf32>
    %395 = vector.shape_cast %392 : vector<6x32xf32> to vector<1x6x32xf32>
    tpu.vector_store %arg29[%c3, %c0_160, %c0_161], %395 {strides = array<i32>} : memref<4x6x32xf32, #tpu.memory_space<vmem>>, vector<1x6x32xf32>,
    %396 = arith.addf %391, %381 : vector<4x32xf32>
    %c3_162 = arith.constant 3 : index
    %c0_163 = arith.constant 0 : index
    %c0_164 = arith.constant 0 : index
    %397 = vector.load %arg30[%c3_162, %c0_163, %c0_164] : memref<4x4x32xf32, #tpu.memory_space<vmem>>, vector<1x4x32xf32>
    %398 = vector.shape_cast %397 : vector<1x4x32xf32> to vector<4x32xf32>
    %399 = vector.shape_cast %396 : vector<4x32xf32> to vector<1x4x32xf32>
    tpu.vector_store %arg30[%c3_162, %c0_163, %c0_164], %399 {strides = array<i32>} : memref<4x4x32xf32, #tpu.memory_space<vmem>>, vector<1x4x32xf32>,
    return
  }
  func.func @transform_0(%arg0: i32) -> (i32, i32, i32) {
    %c0_i32 = arith.constant 0 : i32
    %c0_i32_0 = arith.constant 0 : i32
    %c0_i32_1 = arith.constant 0 : i32
    return %arg0, %c0_i32, %c0_i32_0 : i32, i32, i32
  }
  func.func @transform_1(%arg0: i32) -> (i32, i32, i32) {
    %c0_i32 = arith.constant 0 : i32
    %c0_i32_0 = arith.constant 0 : i32
    %c0_i32_1 = arith.constant 0 : i32
    return %arg0, %c0_i32, %c0_i32_0 : i32, i32, i32
  }
  func.func @transform_2(%arg0: i32) -> (i32, i32) {
    %c0_i32 = arith.constant 0 : i32
    %c0_i32_0 = arith.constant 0 : i32
    %c0_i32_1 = arith.constant 0 : i32
    return %c0_i32, %c0_i32_0 : i32, i32
  }
  func.func @transform_3(%arg0: i32) -> (i32, i32) {
    %c0_i32 = arith.constant 0 : i32
    %c0_i32_0 = arith.constant 0 : i32
    %c0_i32_1 = arith.constant 0 : i32
    return %c0_i32, %c0_i32_0 : i32, i32
  }
  func.func @transform_4(%arg0: i32) -> (i32, i32) {
    %c0_i32 = arith.constant 0 : i32
    %c0_i32_0 = arith.constant 0 : i32
    %c0_i32_1 = arith.constant 0 : i32
    return %c0_i32, %c0_i32_0 : i32, i32
  }
  func.func @transform_5(%arg0: i32) -> (i32, i32) {
    %c0_i32 = arith.constant 0 : i32
    %c0_i32_0 = arith.constant 0 : i32
    %c0_i32_1 = arith.constant 0 : i32
    return %c0_i32, %c0_i32_0 : i32, i32
  }
  func.func @transform_6(%arg0: i32) -> (i32, i32) {
    %c0_i32 = arith.constant 0 : i32
    %c0_i32_0 = arith.constant 0 : i32
    %c0_i32_1 = arith.constant 0 : i32
    return %c0_i32, %c0_i32_0 : i32, i32
  }
  func.func @transform_7(%arg0: i32) -> (i32, i32) {
    %c0_i32 = arith.constant 0 : i32
    %c0_i32_0 = arith.constant 0 : i32
    %c0_i32_1 = arith.constant 0 : i32
    return %c0_i32, %c0_i32_0 : i32, i32
  }
  func.func @transform_8(%arg0: i32) -> (i32, i32) {
    %c0_i32 = arith.constant 0 : i32
    %c0_i32_0 = arith.constant 0 : i32
    %c0_i32_1 = arith.constant 0 : i32
    return %c0_i32, %c0_i32_0 : i32, i32
  }
  func.func @transform_9(%arg0: i32) -> (i32, i32) {
    %c0_i32 = arith.constant 0 : i32
    %c0_i32_0 = arith.constant 0 : i32
    %c0_i32_1 = arith.constant 0 : i32
    return %c0_i32, %c0_i32_0 : i32, i32
  }
  func.func @transform_10(%arg0: i32) -> (i32, i32) {
    %c0_i32 = arith.constant 0 : i32
    %c0_i32_0 = arith.constant 0 : i32
    %c0_i32_1 = arith.constant 0 : i32
    return %c0_i32, %c0_i32_0 : i32, i32
  }
  func.func @transform_11(%arg0: i32) -> (i32, i32) {
    %c0_i32 = arith.constant 0 : i32
    %c0_i32_0 = arith.constant 0 : i32
    %c0_i32_1 = arith.constant 0 : i32
    return %c0_i32, %c0_i32_0 : i32, i32
  }
  func.func @transform_12(%arg0: i32) -> (i32, i32) {
    %c0_i32 = arith.constant 0 : i32
    %c0_i32_0 = arith.constant 0 : i32
    %c0_i32_1 = arith.constant 0 : i32
    return %c0_i32, %c0_i32_0 : i32, i32
  }
  func.func @transform_13(%arg0: i32) -> (i32, i32) {
    %c0_i32 = arith.constant 0 : i32
    %c0_i32_0 = arith.constant 0 : i32
    %c0_i32_1 = arith.constant 0 : i32
    return %c0_i32, %c0_i32_0 : i32, i32
  }
  func.func @transform_14(%arg0: i32) -> (i32, i32) {
    %c0_i32 = arith.constant 0 : i32
    %c0_i32_0 = arith.constant 0 : i32
    %c0_i32_1 = arith.constant 0 : i32
    return %c0_i32, %c0_i32_0 : i32, i32
  }
  func.func @transform_15(%arg0: i32) -> (i32, i32) {
    %c0_i32 = arith.constant 0 : i32
    %c0_i32_0 = arith.constant 0 : i32
    %c0_i32_1 = arith.constant 0 : i32
    return %c0_i32, %c0_i32_0 : i32, i32
  }
  func.func @transform_16(%arg0: i32) -> (i32, i32) {
    %c0_i32 = arith.constant 0 : i32
    %c0_i32_0 = arith.constant 0 : i32
    %c0_i32_1 = arith.constant 0 : i32
    return %c0_i32, %c0_i32_0 : i32, i32
  }
  func.func @transform_17(%arg0: i32) -> (i32, i32) {
    %c0_i32 = arith.constant 0 : i32
    %c0_i32_0 = arith.constant 0 : i32
    %c0_i32_1 = arith.constant 0 : i32
    return %c0_i32, %c0_i32_0 : i32, i32
  }
  func.func @transform_18(%arg0: i32) -> (i32, i32) {
    %c0_i32 = arith.constant 0 : i32
    %c0_i32_0 = arith.constant 0 : i32
    %c0_i32_1 = arith.constant 0 : i32
    return %c0_i32, %c0_i32_0 : i32, i32
  }
  func.func @transform_19(%arg0: i32) -> (i32, i32) {
    %c0_i32 = arith.constant 0 : i32
    %c0_i32_0 = arith.constant 0 : i32
    %c0_i32_1 = arith.constant 0 : i32
    return %c0_i32, %c0_i32_0 : i32, i32
  }
  func.func @transform_20(%arg0: i32) -> (i32, i32) {
    %c0_i32 = arith.constant 0 : i32
    %c0_i32_0 = arith.constant 0 : i32
    %c0_i32_1 = arith.constant 0 : i32
    return %c0_i32, %c0_i32_0 : i32, i32
  }
  func.func @transform_21(%arg0: i32) -> (i32, i32) {
    %c0_i32 = arith.constant 0 : i32
    %c0_i32_0 = arith.constant 0 : i32
    %c0_i32_1 = arith.constant 0 : i32
    return %c0_i32, %c0_i32_0 : i32, i32
  }
  func.func @transform_22(%arg0: i32) -> (i32, i32) {
    %c0_i32 = arith.constant 0 : i32
    %c0_i32_0 = arith.constant 0 : i32
    %c0_i32_1 = arith.constant 0 : i32
    return %c0_i32, %c0_i32_0 : i32, i32
  }
  func.func @transform_23(%arg0: i32) -> (i32, i32) {
    %c0_i32 = arith.constant 0 : i32
    %c0_i32_0 = arith.constant 0 : i32
    %c0_i32_1 = arith.constant 0 : i32
    return %c0_i32, %c0_i32_0 : i32, i32
  }
  func.func @transform_24(%arg0: i32) -> (i32, i32) {
    %c0_i32 = arith.constant 0 : i32
    %c0_i32_0 = arith.constant 0 : i32
    %c0_i32_1 = arith.constant 0 : i32
    return %c0_i32, %c0_i32_0 : i32, i32
  }
  func.func @transform_25(%arg0: i32) -> (i32, i32) {
    %c0_i32 = arith.constant 0 : i32
    %c0_i32_0 = arith.constant 0 : i32
    %c0_i32_1 = arith.constant 0 : i32
    return %c0_i32, %c0_i32_0 : i32, i32
  }
  func.func @transform_26(%arg0: i32) -> (i32, i32) {
    %c0_i32 = arith.constant 0 : i32
    %c0_i32_0 = arith.constant 0 : i32
    %c0_i32_1 = arith.constant 0 : i32
    return %c0_i32, %c0_i32_0 : i32, i32
  }
  func.func @transform_27(%arg0: i32) -> (i32, i32) {
    %c0_i32 = arith.constant 0 : i32
    %c0_i32_0 = arith.constant 0 : i32
    %c0_i32_1 = arith.constant 0 : i32
    return %c0_i32, %c0_i32_0 : i32, i32
  }
  func.func @transform_28(%arg0: i32) -> (i32, i32, i32) {
    %c0_i32 = arith.constant 0 : i32
    %c0_i32_0 = arith.constant 0 : i32
    %c0_i32_1 = arith.constant 0 : i32
    return %arg0, %c0_i32, %c0_i32_0 : i32, i32, i32
  }
  func.func @transform_29(%arg0: i32) -> (i32, i32, i32) {
    %c0_i32 = arith.constant 0 : i32
    %c0_i32_0 = arith.constant 0 : i32
    %c0_i32_1 = arith.constant 0 : i32
    return %arg0, %c0_i32, %c0_i32_0 : i32, i32, i32
  }
}

</mosaic_0001>

<bundles_post_ra>
// kernel: spatial_spectral_block.1
= control target key start
LH: loop header
LB: loop body
LE: loop exit
PB: predicated region body
PF: predicated region fallthrough
CT: control target
= control target key end

     0   :  { %s9526_s6 = smov 1   ;;  %s9527_s10 = smov 2   ;;  %s11094_s0 = inlined_call_operand.smem [shape: u32[30], index: -1, kind: input, shape index: {}] }
   0x1   :  { %s9576_s5 = sld [smem:[%s11094_s0]]   ;;  %s9528_s14 = smov 3  }
   0x2   :  { %s9581_s9 = sld [smem:[%s11094_s0 + %s9526_s6]]   ;;  %s9529_s18 = smov 4  }
   0x3   :  { %s9586_s13 = sld [smem:[%s11094_s0 + %s9527_s10]]   ;;  %s9530_s22 = smov 5  }
   0x4   :  { %s9591_s17 = sld [smem:[%s11094_s0 + %s9528_s14]]   ;;  %s9531_s26 = smov 6  }
   0x5   :  { %s9596_s21 = sld [smem:[%s11094_s0 + %s9529_s18]]   ;;  %s9532_s30 = smov 7  }
   0x6   :  { %s9601_s25 = sld [smem:[%s11094_s0 + %s9530_s22]]   ;;  %s9533_s4 = smov 8  }
   0x7   :  { %11118 = sst [smem:[#allocation5_spill]] %s9576_s5  ;;  %s9534_s10 = smov 9  }
   0x8   :  { %11119 = sst [smem:[#allocation6_spill]] %s9581_s9  ;;  %s9535_s15 = smov 10  }
   0x9   :  { %11120 = sst [smem:[#allocation7_spill]] %s9586_s13  ;;  %s9536_s20 = smov 11  }
   0xa   :  { %s9606_s29 = sld [smem:[%s11094_s0 + %s9531_s26]]   ;;  %s9537_s26 = smov 12  }
   0xb   :  { %s9611_s3 = sld [smem:[%s11094_s0 + %s9532_s30]]   ;;  %s9538_s1 = smov 13  }
   0xc   :  { %s9616_s8 = sld [smem:[%s11094_s0 + %s9533_s4]]   ;;  %s9539_s7 = smov 14  }
   0xd   :  { %s9621_s14 = sld [smem:[%s11094_s0 + %s9534_s10]]   ;;  %s9541_s22 = smov 16  }
   0xe   :  { %s9626_s19 = sld [smem:[%s11094_s0 + %s9535_s15]]   ;;  %s9540_s15 = smov 15  }
   0xf   :  { %s9631_s24 = sld [smem:[%s11094_s0 + %s9536_s20]]   ;;  %s9542_s28 = smov 17  }
  0x10   :  { %s9636_s30 = sld [smem:[%s11094_s0 + %s9537_s26]]  }
  0x11   :  { %11121 = sst [smem:[#allocation8_spill]] %s9611_s3 }
  0x12   :  { %11122 = sst [smem:[#allocation9_spill]] %s9616_s8 }
  0x13   :  { %s9641_s6 = sld [smem:[%s11094_s0 + %s9538_s1]]  }
  0x14   :  { %s9646_s12 = sld [smem:[%s11094_s0 + %s9539_s7]]   ;;  %s9543_s7 = smov 18  }
  0x15   :  { %s9651_s20 = sld [smem:[%s11094_s0 + %s9540_s15]]   ;;  %s9544_s15 = smov 19  }
  0x16   :  { %s9656_s27 = sld [smem:[%s11094_s0 + %s9541_s22]]   ;;  %s9545_s22 = smov 20  }
  0x17   :  { %s9661_s4 = sld [smem:[%s11094_s0 + %s9542_s28]]   ;;  %s9546_s28 = smov 21  }
  0x19   :  { %11123 = sst [smem:[#allocation10_spill]] %s9641_s6 }
  0x1a   :  { %11124 = sst [smem:[#allocation11_spill]] %s9646_s12 }
  0x1b   :  { %11125 = sst [smem:[#allocation12_spill]] %s9651_s20 }
  0x1c   :  { %11126 = sst [smem:[#allocation13_spill]] %s9656_s27 }
  0x1d   :  { %11127 = sst [smem:[#allocation14_spill]] %s9661_s4 }
  0x1e   :  { %s9666_s6 = sld [smem:[%s11094_s0 + %s9543_s7]]   ;;  %s9547_s7 = smov 22  }
  0x1f   :  { %s9671_s20 = sld [smem:[%s11094_s0 + %s9544_s15]]   ;;  %s9548_s15 = smov 23  }
  0x20   :  { %s9676_s27 = sld [smem:[%s11094_s0 + %s9545_s22]]   ;;  %s9549_s22 = smov 24  }
  0x21   :  { %s9681_s4 = sld [smem:[%s11094_s0 + %s9546_s28]]   ;;  %s9550_s28 = smov 25  }
  0x24   :  { %11128 = sst [smem:[#allocation15_spill]] %s9666_s6 }
  0x25   :  { %11129 = sst [smem:[#allocation16_spill]] %s9671_s20 }
  0x26   :  { %11130 = sst [smem:[#allocation17_spill]] %s9676_s27 }
  0x27   :  { %11131 = sst [smem:[#allocation18_spill]] %s9681_s4 }
  0x28   :  { %s9686_s6 = sld [smem:[%s11094_s0 + %s9547_s7]]   ;;  %s9551_s7 = smov 26  }
  0x29   :  { %s9691_s20 = sld [smem:[%s11094_s0 + %s9548_s15]]   ;;  %s9552_s15 = smov 27  }
  0x2a   :  { %s9696_s27 = sld [smem:[%s11094_s0 + %s9549_s22]]   ;;  %s9553_s22 = smov 28  }
  0x2b   :  { %s9701_s4 = sld [smem:[%s11094_s0 + %s9550_s28]]   ;;  %s9554_s28 = smov 29  }
  0x2e   :  { %11132 = sst [smem:[#allocation19_spill]] %s9686_s6 }
  0x2f   :  { %11133 = sst [smem:[#allocation20_spill]] %s9691_s20 }
  0x30   :  { %11134 = sst [smem:[#allocation21_spill]] %s9696_s27 }
  0x31   :  { %11135 = sst [smem:[#allocation22_spill]] %s9701_s4 }
  0x32   :  { %s9706_s6 = sld [smem:[%s11094_s0 + %s9551_s7]]  }
  0x33   :  { %s9711_s20 = sld [smem:[%s11094_s0 + %s9552_s15]]  }
  0x34   :  { %s9716_s27 = sld [smem:[%s11094_s0 + %s9553_s22]]  }
  0x35   :  { %s9721_s4 = sld [smem:[%s11094_s0 + %s9554_s28]]  }
  0x38   :  { %11136 = sst [smem:[#allocation23_spill]] %s9706_s6 }
  0x39   :  { %65 = vsyncpa [#allocation3], 0 }
  0x3a   :  { %67 = vsyncpa [#allocation3 + $0x1], 0  ;;  %s9723_s7 = smov 0   ;;  %s9725_s10 = smov 0  }
  0x3b   :  { %s9727_s11 = smov 0   ;;  %s9729_s15 = smov 0  }
  0x3c LB: > { %s11137_s12 = sld [smem:[#allocation11_spill]]  ;;  %s11138_s3 = sld [smem:[#allocation8_spill]]  ;;  %s9516_s10 = sphi %s9725_s10, %s11167_s10   ;;  %s9512_s7 = sphi %s9723_s7, %s11166_s7   ;;  %s9524_s15 = sphi %s9729_s15, %s11169_s15   ;;  %s9520_s11 = sphi %s9727_s11, %s11168_s11  }
  0x3d   : > { %s9744_s0 = sadd.s32 4294967295, %s9524_s15   ;;  %s8190_s16 = sadd.s32 4294967294, %s9524_s15  }
  0x3e   : > { %s9748_s18 = sadd.s32 1, %s9524_s15   ;;  %s704_s22 = sadd.s32 1, %s9520_s11 }
  0x3f   : > { %s701_s23 = ssub.s32 %s9524_s15, %s9748_s18  ;;  %p714_p0 = scmp.ne.s32.totalorder %s9520_s11, %s9516_s10 }
  0x40   : > { %p702_p1 = scmp.eq.s32.totalorder %s701_s23, 0  ;;  %p715_p2 = scmp.eq.s32.totalorder %s9744_s0, 1 }
  0x41   : > { %p720_p3 = scmp.ne.s32.totalorder %s9516_s10, %s9512_s7  ;;  %p721_p4 = scmp.eq.s32.totalorder %s8190_s16, 1 }
  0x42   : > { %s9759_s26 = scalar_select %p702_p1, %s9520_s11, %s704_s22  }
  0x43   : > { %p9761_p5 = por %p715_p2, %p714_p0  ;;  %p9765_p6 = por %p721_p4, %p720_p3 }
  0x44   : > { %p8193_p7 = scmp.ge.s32.totalorder %s9524_s15, 1  ;;  %p835_p8 = scmp.lt.s32.totalorder %s9524_s15, 3 }
  0x46   : > { %p836_p9 = pnand %p8193_p7, %p835_p8 }
  0x47   : > { %s11141_s5 = sld [smem:[#allocation5_spill]] (!%p836_p9)  ;;  %s8195_s2 = sshll.u32 (!%p836_p9), %s9744_s0, 2  ;;  %vm985_vm0 = vcmask (!%p836_p9), 259072   ;;  %v9248_v28 = vld [vmem:[%s9596_s21] sm:$0xff] (!%p836_p9)   ;;  %v9250_v30 = vld [vmem:[%s9596_s21 + $0x8] sm:$0xff] (!%p836_p9)   ;;  %v1067_v46 = vlaneseq (!%p836_p9)  ;;  %vm1195_vm1 = vcmask (!%p836_p9), 261120  }
  0x48   : > { %839 = sbr.rel (%p836_p9) target bundleno = 8106 (0x1faa), region = 132  ;;  %p922_p10 = scmp.lt.s32.totalorder (!%p836_p9), %s8195_s2, 7  ;;  %v9249_v29 = vld [vmem:[%s9601_s25] sm:$0xff] (!%p836_p9)   ;;  %8582 = vmatprep.subr.bf16.mxu0 (!%p836_p9), %v9248_v28  ;;  %v9251_v31 = vld [vmem:[%s9601_s25 + $0x8] sm:$0xff] (!%p836_p9)   ;;  %v9555_v44 = vmov (!%p836_p9), 1983009808  }
  0x49   : > { %8590 = vmatprep.subr.bf16.mxu1 (!%p836_p9), %v9249_v29  ;;  %8583 = vmatpush3.bf16.msra.mxu0 (!%p836_p9), %v9248_v28  ;;  %v9801_v32 = vld [vmem:[%s9606_s29] sm:$0xff] (!%p836_p9)   ;;  %s11142_s13 = sld [smem:[#allocation7_spill]] (!%p836_p9)  ;;  %v1065_v45 = vunpack.c.l.s4 (!%p836_p9), %v9555_v44  ;;  %v1068_v49 = vshrl.u32 (!%p836_p9), %v1067_v46, 7  ;;  %vm9557_vm2 = vmmov (!%p836_p9), 0   ;;  %vm1751_vm3 = vcmask (!%p836_p9), 64512   ;;  %s11103_s23 = smov (!%p836_p9), 120  }
  0x4a   : > { %8591 = vmatpush3.bf16.msra.mxu1 (!%p836_p9), %v9249_v29  ;;  %8584 = vmatprep.subr.bf16.mxu0 (!%p836_p9), %v9250_v30  ;;  %v8202_v53 = vld [vmem:[%s9591_s17] ss:$0 sm:$0xff] (!%p836_p9)  ;;  %vm1989_vm4 = vcmask (!%p836_p9), 1042432   ;;  %vm1936_vm5 = vcmask (!%p836_p9), 46080   ;;  %vm1985_vm6 = vcmask (!%p836_p9), 48128   ;;  %vm3555_vm7 = vcmask (!%p836_p9), 130048  }
  0x4b   : > { %8592 = vmatprep.subr.bf16.mxu1 (!%p836_p9), %v9251_v31  ;;  %v1066_v48 = vunpack.c.0.s8 (!%p836_p9), %v1065_v45  ;;  %vm3560_vm8 = vcmask (!%p836_p9), 195584   ;;  %s11143_s9 = sld [smem:[#allocation6_spill]] (!%p836_p9)  ;;  %vm4426_vm9 = vcmask (!%p836_p9), 257024   ;;  %s11144_s8 = sld [smem:[#allocation9_spill]] (!%p836_p9)  ;;  %vm4939_vm10 = vcmask (!%p836_p9), 1041408  }
  0x4c   : > { %vm4886_vm11 = vcmask (!%p836_p9), 27648   ;;  %vm4935_vm12 = vcmask (!%p836_p9), 31744   ;;  %vm6844_vm13 = vcmask (!%p836_p9), 1043456   ;;  %s11162_s6 = sld [smem:[#allocation23_spill]] (!%p836_p9)  ;;  %vm6921_vm14 = vcmask (!%p836_p9), 1045504  }
  0x4d   : > { %8585 = vmatpush3.bf16.msra.mxu0 (!%p836_p9), %v9250_v30  ;;  %v9806_v55 = vsub.s32 (!%p836_p9), %v1066_v48, %v1068_v49 }
  0x4e   : > { %8593 = vmatpush3.bf16.msra.mxu1 (!%p836_p9), %v9251_v31  ;;  %8598 = vmatprep.subr.bf16.mxu0 (!%p836_p9), %v9801_v32 }
  0x4f   : > { %s11171_s2 = smov (!%p922_p10, %s8195_s2), 7  ;;  %v8201_v51 = vld [vmem:[%s11142_s13] ss:$0 sm:$0xff] }
  0x50   : > { %s11100_s16 = sshll.u32 %s11171_s2, 3 }
  0x51   : > { %s9778_s22 = scalar_lea.vmem %s11141_s5, %s11100_s16  ;;  %s11101_s16 = smov 112  }
  0x52   : > { %v941_v0 = vld [vmem:[%s9778_s22] sm:$0x3f]  ;;  %v943_v1 = vld [vmem:[%s9778_s22 + $0x10] sm:$0x3f]  ;;  %v942_v2 = vld [vmem:[%s9778_s22 + $0x8] sm:$0x3f] }
  0x53   : > { %v986_v3 = vsel %vm985_vm0, %v941_v0, 0.0  ;;  %v992_v4 = vsel %vm985_vm0, %v943_v1, 0.0  ;;  %v944_v5 = vld [vmem:[%s9778_s22 + $0x18] sm:$0x3f]  ;;  %v989_v6 = vsel %vm985_vm0, %v942_v2, 0.0  ;;  %s11105_s5 = smov 16  }
  0x54   : > { %987 = vadd.xlane.f32.xlu0 %v986_v3  ;;  %993 = vadd.xlane.f32.xlu1 %v992_v4  ;;  %v995_v7 = vsel %vm985_vm0, %v944_v5, 0.0 }
  0x58   : > { %990 = vadd.xlane.f32.xlu0 %v989_v6  ;;  %996 = vadd.xlane.f32.xlu1 %v995_v7 }
  0xe1   : > { %v988_v8 = vpop.xlane.xlu0 %987  ;;  %v994_v9 = vpop.xlane.xlu1 %993 }
  0xe2   : > { %v999_v10 = vmul.f32 0.03125, %v988_v8  ;;  %v1001_v11 = vmul.f32 0.03125, %v994_v9 }
  0xe4   : > { %v1003_v12 = vsub.f32 %v941_v0, %v999_v10  ;;  %v9788_v13 = vsub.f32 %v943_v1, %v1001_v11 }
  0xe5   : > { %v991_v14 = vpop.xlane.xlu0 %990  ;;  %v997_v15 = vpop.xlane.xlu1 %996 }
  0xe6   : > { %v1000_v16 = vmul.f32 0.03125, %v991_v14  ;;  %v1002_v17 = vmul.f32 0.03125, %v997_v15  ;;  %v1007_v18 = vmul.f32 %v1003_v12, %v1003_v12  ;;  %v1009_v19 = vmul.f32 %v9788_v13, %v9788_v13 }
  0xe8   : > { %v1004_v20 = vsub.f32 %v942_v2, %v1000_v16  ;;  %v1006_v21 = vsub.f32 %v944_v5, %v1002_v17  ;;  %v1011_v22 = vsel %vm985_vm0, %v1007_v18, 0.0  ;;  %v1017_v23 = vsel %vm985_vm0, %v1009_v19, 0.0 }
  0xe9   : > { %1012 = vadd.xlane.f32.xlu0 %v1011_v22 }
  0xea   : > { %v1008_v24 = vmul.f32 %v1004_v20, %v1004_v20  ;;  %v1010_v25 = vmul.f32 %v1006_v21, %v1006_v21 }
  0xec   : > { %v1014_v26 = vsel %vm985_vm0, %v1008_v24, 0.0  ;;  %v1020_v27 = vsel %vm985_vm0, %v1010_v25, 0.0 }
  0xed   : > { %1018 = vadd.xlane.f32.xlu0 %v1017_v23  ;;  %1015 = vadd.xlane.f32.xlu1 %v1014_v26 }
  0xf1   : > { %1021 = vadd.xlane.f32.xlu1 %v1020_v27 }
 0x176   : > { %v1013_v33 = vpop.xlane.xlu0 %1012 }
 0x177   : > { %v1023_v34 = vmul.f32 0.03125, %v1013_v33 }
 0x179   : > { %v1027_v35 = vadd.f32 1e-06, %v1023_v34 }
 0x17a   : > { %v1016_v36 = vpop.xlane.xlu1 %1015  ;;  %v1019_v37 = vpop.xlane.xlu0 %1018 }
 0x17b   : > { %9284 = vrsqrt.f32 %v1027_v35  ;;  %v1024_v38 = vmul.f32 0.03125, %v1016_v36  ;;  %v1025_v39 = vmul.f32 0.03125, %v1019_v37 }
 0x17d   : > { %v1028_v40 = vadd.f32 1e-06, %v1024_v38  ;;  %v1029_v41 = vadd.f32 1e-06, %v1025_v39  ;;  %v9253_v39 = vld [vmem:[%s9606_s29 + $0x8] sm:$0xff]  }
 0x17e   : > { %v1022_v42 = vpop.xlane.xlu1 %1021 }
 0x17f   : > { %9286 = vrsqrt.f32 %v1028_v40  ;;  %v1026_v43 = vmul.f32 0.03125, %v1022_v42  ;;  %v9556_v40 = vmov 0.0  }
 0x180   : > { %9288 = vrsqrt.f32 %v1029_v41  ;;  %8606 = vmatprep.subr.bf16.mxu1 %v9556_v40 }
 0x181   : > { %v1030_v47 = vadd.f32 1e-06, %v1026_v43 }
 0x183   : > { %9290 = vrsqrt.f32 %v1030_v47 }
 0x185   : > { %v9285_v50 = vpop.eup %9284 }
 0x186   : > { %v1035_v52 = vmul.f32 %v9285_v50, %v1003_v12 }
 0x188   : > { %v1045_v54 = vmul.f32 %v8201_v51, %v1035_v52 }
 0x189   : > { %v9287_v56 = vpop.eup %9286 }
 0x18a   : > { %v9289_v57 = vpop.eup %9288  ;;  %v1036_v58 = vmul.f32 %v9287_v56, %v1004_v20  ;;  %v1055_v59 = vadd.f32 %v8202_v53, %v1045_v54 }
 0x18b   : > { %v1037_v60 = vmul.f32 %v9289_v57, %v9788_v13 }
 0x18c   : > { %v1046_v61 = vmul.f32 %v8201_v51, %v1036_v58  ;;  %v1063_v62 = vcombine.high %v1055_v59, %v1055_v59  ;;  %v1070_v63 = vrot.slane %v1055_v59, %v9806_v55 }
 0x18d   : > { %v9291_v0 = vpop.eup %9290  ;;  %v1047_v1 = vmul.f32 %v8201_v51, %v1037_v60 }
 0x18e   : > { %v1038_v2 = vmul.f32 %v9291_v0, %v1006_v21  ;;  %v1056_v3 = vadd.f32 %v8202_v53, %v1046_v61  ;;  %v1078_v4 = vcombine.high %v1070_v63, %v1070_v63  ;;  %v1077_v7 = vrot.slane %v1063_v62, %v9806_v55 }
 0x18f   : > { %v1057_v5 = vadd.f32 %v8202_v53, %v1047_v1 }
 0x190   : > { %v1048_v6 = vmul.f32 %v8201_v51, %v1038_v2  ;;  %v1079_v8 = vcombine.high %v1056_v3, %v1056_v3  ;;  %v1086_v9 = vrot.slane %v1056_v3, %v9806_v55  ;;  %v1127_v14 = vcombine.low %v1070_v63, %v1078_v4 }
 0x191   : > { %v1102_v10 = vrot.slane %v1057_v5, %v9806_v55  ;;  %v1095_v11 = vcombine.high %v1057_v5, %v1057_v5 }
 0x192   : > { %v1093_v12 = vrot.slane %v1079_v8, %v9806_v55  ;;  %v1094_v13 = vcombine.high %v1086_v9, %v1086_v9  ;;  %v1128_v15 = vcombine.low %v1077_v7, %v1086_v9  ;;  %v1058_v17 = vadd.f32 %v8202_v53, %v1048_v6 }
 0x193   : > { %v1110_v16 = vcombine.high %v1102_v10, %v1102_v10  ;;  %v1109_v19 = vrot.slane %v1095_v11, %v9806_v55  ;;  %v1135_v24 = vrot.slane %v1127_v14, %v9806_v55 }
 0x194   : > { %v1144_v18 = vcombine.low %v1094_v13, %v1093_v12  ;;  %v1142_v20 = vrot.slane %v1128_v15, %v9806_v55  ;;  %v1111_v22 = vcombine.high %v1058_v17, %v1058_v17  ;;  %v1118_v23 = vrot.slane %v1058_v17, %v9806_v55 }
 0x195   : > { %v1145_v21 = vcombine.low %v1102_v10, %v1110_v16 }
 0x196   : > { %v1152_v25 = vrot.slane %v1144_v18, %v9806_v55  ;;  %v1125_v27 = vrot.slane %v1111_v22, %v9806_v55  ;;  %v1126_v28 = vcombine.high %v1118_v23, %v1118_v23  ;;  %v1161_v29 = vcombine.low %v1109_v19, %v1118_v23 }
 0x197   : > { %v1159_v26 = vrot.slane %v1145_v21, %v9806_v55  ;;  %v1143_v30 = vcombine.low %v1135_v24, %v1142_v20 }
 0x198   : > { %v1162_v33 = vcombine.low %v1126_v28, %v1125_v27  ;;  %v1169_v35 = vrot.slane %v1161_v29, %v9806_v55 }
 0x199   : > { %v1160_v31 = vcombine.low %v1152_v25, %v1159_v26 }
 0x19a   : > { %v1176_v36 = vrot.slane %v1162_v33, %v9806_v55 }
 0x19b   : > { %v1181_v34 = vpack.c.bf16 %v1160_v31, %v1143_v30 }
 0x19c   : > { %v1177_v37 = vcombine.low %v1169_v35, %v1176_v36 }
 0x19d   : > { %8586 = vmatprep.mubr.msk.bf16.mxu0 %vm1195_vm1, %v1181_v34  ;;  %8594 = vmatprep.mubr.msk.bf16.mxu1 %vm1195_vm1, %v1181_v34 }
 0x19e   : > { %v1182_v38 = vpack.c.bf16 %v1177_v37, %v1177_v37 }
 0x1a0   : > { %8587 = vmatmul.mubr.msk.bf16.vlgmr.msra.gmra.mrb[0].mxu0 %vm1195_vm1, %v1182_v38  ;;  %8595 = vmatmul.mubr.msk.bf16.vlgmr.msra.gmra.mrb[0].mxu1 %vm1195_vm1, %v1182_v38 }
 0x1a1   : > { %8599 = vmatpush3.bf16.msra.mxu0 %v9801_v32  ;;  %8602 = vmatprep.mubr.msk.bf16.mxu0 %vm1195_vm1, %v1181_v34 }
 0x1a2   : > { %8600 = vmatprep.subr.bf16.mxu0 %v9253_v39  ;;  %8608 = vmatprep.mubr.msk.bf16.mxu1 %vm9557_vm2, %v9556_v40 }
 0x1a5   : > { %8601 = vmatpush3.bf16.msra.mxu0 %v9253_v39 }
 0x1a6   : > { %8612 = vmatprep.subr.bf16.mxu0 %v9556_v40 }
 0x1a8   : > { %8603 = vmatmul.mubr.msk.bf16.vlgmr.msra.gmra.mrb[4].mxu0 %vm1195_vm1, %v1182_v38 }
 0x1a9   : > { %8614 = vmatprep.mubr.msk.bf16.mxu0 %vm9557_vm2, %v9556_v40 }
 0x273   : > { %v8588_v41 = vpop.f32.mrb[0].mxu0  ;;  %v8596_v32 = vpop.f32.mrb[0].mxu1 }
 0x274   : > { %v1236_v42 = vpop.f32.mrb[1].mxu0  ;;  %v1299_v43 = vpop.f32.mrb[1].mxu1  ;;  %v1536_v52 = vcombine.high %v8596_v32, %v8596_v32  ;;  %v9838_v53 = vmul.f32 0.35355338, %v8588_v41  ;;  %v1543_v58 = vrot.slane %v8596_v32, %v9806_v55 }
 0x275   : > { %v1250_v44 = vmul.f32 0.35355338, %v1236_v42  ;;  %v1509_v45 = vrot.slane %v1299_v43, %v9806_v55  ;;  %v8589_v46 = vpop.f32.mrb[2].mxu0  ;;  %v8597_v47 = vpop.f32.mrb[2].mxu1  ;;  %v1502_v48 = vcombine.high %v1299_v43, %v1299_v43 }
 0x276   : > { %v1239_v49 = vpop.f32.mrb[3].mxu0  ;;  %v1302_v50 = vpop.f32.mrb[3].mxu1  ;;  %v1550_v61 = vrot.slane %v1536_v52, %v9806_v55  ;;  %v1410_v1 = vcombine.high %v9838_v53, %v9838_v53  ;;  %v9856_v9 = vrot.slane %v9838_v53, %v9806_v55  ;;  %v1551_v10 = vcombine.high %v1543_v58, %v1543_v58 }
 0x277   : > { %v1376_v51 = vcombine.high %v1250_v44, %v1250_v44  ;;  %v1517_v56 = vcombine.high %v1509_v45, %v1509_v45  ;;  %v1516_v57 = vrot.slane %v1502_v48, %v9806_v55  ;;  %v1251_v62 = vmul.f32 0.35355338, %v1239_v49 }
 0x278   : > { %v1383_v2 = vrot.slane %v1250_v44, %v9806_v55  ;;  %v1519_v7 = vcombine.high %v1302_v50, %v1302_v50  ;;  %v1526_v12 = vrot.slane %v1302_v50, %v9806_v55  ;;  %v1552_v13 = vcombine.high %v1550_v61, %v1550_v61 }
 0x279   : > { %v9841_v54 = vrot.slane %v1376_v51, %v9806_v55  ;;  %v1553_v59 = vcombine.low %v1509_v45, %v1517_v56  ;;  %v1393_v4 = vcombine.high %v1251_v62, %v1251_v62  ;;  %v1400_v5 = vrot.slane %v1251_v62, %v9806_v55 }
 0x27a   : > { %v1518_v6 = vcombine.high %v1516_v57, %v1516_v57  ;;  %v1391_v17 = vcombine.high %v1383_v2, %v1383_v2  ;;  %v1567_v18 = vrot.slane %v1516_v57, %v9806_v55  ;;  %v1533_v19 = vrot.slane %v1519_v7, %v9806_v55 }
 0x27b   : > { %v9845_v60 = vpop.f32.mrb[4].mxu0  ;;  %v1392_v63 = vcombine.high %v9841_v54, %v9841_v54  ;;  %v1560_v11 = vrot.slane %v1553_v59, %v9806_v55  ;;  %v1407_v14 = vrot.slane %v1393_v4, %v9806_v55  ;;  %v1408_v15 = vcombine.high %v1400_v5, %v1400_v5 }
 0x27c   : > { %v1359_v0 = vpop.f32.mrb[5].mxu0  ;;  %v1534_v20 = vcombine.high %v1526_v12, %v1526_v12  ;;  %v1569_v24 = vcombine.low %v1518_v6, %v1526_v12  ;;  %v1601_v25 = vcombine.low %v1551_v10, %v1550_v61  ;;  %v1535_v27 = vcombine.high %v1533_v19, %v1533_v19 }
 0x27d   : > { %v8605_v3 = vpop.f32.mrb[6].mxu0  ;;  %v1443_v16 = vcombine.low %v1392_v63, %v1400_v5  ;;  %v1409_v21 = vcombine.high %v1407_v14, %v1407_v14  ;;  %v1457_v23 = vrot.slane %v1408_v15, %v9806_v55  ;;  %v1568_v26 = vcombine.low %v1560_v11, %v1567_v18 }
 0x27e   : > { %v1362_v8 = vpop.f32.mrb[7].mxu0  ;;  %v1583_v28 = vrot.slane %v1534_v20, %v9806_v55  ;;  %v1576_v31 = vrot.slane %v1569_v24, %v9806_v55  ;;  %v1628_v33 = vcombine.high %v1359_v0, %v1359_v0  ;;  %v1473_v34 = vrot.slane %v9856_v9, %v9806_v55 }
 0x27f   : > { %v1450_v22 = vrot.slane %v1443_v16, %v9806_v55  ;;  %v1459_v30 = vcombine.low %v1407_v14, %v1409_v21  ;;  %v1599_v35 = vrot.slane %v1543_v58, %v9806_v55  ;;  %v1427_v36 = vcombine.low %v1383_v2, %v1391_v17 }
 0x280   : > { %v1585_v37 = vcombine.low %v1533_v19, %v1535_v27  ;;  %v1615_v38 = vrot.slane %v1552_v13, %v9806_v55  ;;  %v1584_v41 = vcombine.low %v1576_v31, %v1583_v28  ;;  %v1635_v32 = vrot.slane %v1359_v0, %v9806_v55 }
 0x281   : > { %v1458_v29 = vcombine.low %v1450_v22, %v1457_v23  ;;  %v1466_v39 = vrot.slane %v1459_v30, %v9806_v55  ;;  %v1608_v42 = vrot.slane %v1601_v25, %v9806_v55  ;;  %v9874_v43 = vpack.c.bf16 %v1568_v26, %v1568_v26 }
 0x282   : > { %v1592_v44 = vrot.slane %v1585_v37, %v9806_v55  ;;  %v1642_v45 = vrot.slane %v1628_v33, %v9806_v55  ;;  %v9878_v47 = vpack.c.bf16 %v1584_v41, %v1584_v41  ;;  %v1643_v48 = vcombine.high %v1635_v32, %v1635_v32 }
 0x283   : > { %v1474_v46 = vcombine.low %v1466_v39, %v1473_v34  ;;  %v1645_v49 = vcombine.high %v1362_v8, %v1362_v8  ;;  %v1434_v50 = vrot.slane %v1427_v36, %v9806_v55  ;;  %v1424_v52 = vrot.slane %v1410_v1, %v9806_v55 }
 0x284   : > { %v1600_v51 = vcombine.low %v1592_v44, %v1599_v35  ;;  %v1425_v53 = vcombine.high %v9856_v9, %v9856_v9  ;;  %v1644_v56 = vcombine.high %v1642_v45, %v1642_v45  ;;  %v1652_v57 = vrot.slane %v1362_v8, %v9806_v55 }
 0x285   : > { %v1441_v58 = vrot.slane %v9841_v54, %v9806_v55  ;;  %v1679_v59 = vcombine.low %v1635_v32, %v1643_v48  ;;  %v1659_v61 = vrot.slane %v1645_v49, %v9806_v55  ;;  %v1756_v62 = vsel %vm1751_vm3, %v9874_v43, 0 }
 0x286   : > { %v1616_v63 = vcombine.low %v1608_v42, %v1615_v38  ;;  %v1660_v0 = vcombine.high %v1652_v57, %v1652_v57  ;;  %v1695_v2 = vcombine.low %v1644_v56, %v1652_v57  ;;  %8607 = vmatpush3.bf16.xpose.msra.mxu1 %v1756_v62  ;;  %v1802_v1 = vsel %vm1751_vm3, %v9878_v47, 0 }
 0x287   : > { %v1442_v3 = vcombine.low %v1434_v50, %v1441_v58  ;;  %v9894_v4 = vrot.slane %v9845_v60, %v9806_v55  ;;  %v1661_v5 = vcombine.high %v1659_v61, %v1659_v61  ;;  %8613 = vmatpush3.bf16.xpose.msra.mxu0 %v1802_v1  ;;  %8618 = vmatprep.subr.bf16.mxu1 %v9556_v40 }
 0x288   : > { %v1426_v54 = vcombine.high %v1424_v52, %v1424_v52  ;;  %v1475_v6 = vcombine.low %v1425_v53, %v1424_v52  ;;  %v1702_v7 = vrot.slane %v1695_v2, %v9806_v55  ;;  %v1709_v8 = vrot.slane %v1660_v0, %v9806_v55  ;;  %8624 = vmatprep.subr.bf16.mxu0 %v9556_v40 }
 0x289   : > { %v9900_v9 = vpack.c.bf16 %v1600_v51, %v1600_v51  ;;  %v1686_v10 = vrot.slane %v1679_v59, %v9806_v55  ;;  %v1711_v11 = vcombine.low %v1659_v61, %v1661_v5  ;;  %v9903_v12 = vpack.c.bf16 %v1616_v63, %v1616_v63 }
 0x28a   : > { %v1710_v13 = vcombine.low %v1702_v7, %v1709_v8  ;;  %v9905_v14 = vpack.c.bf16 %v1442_v3, %v1442_v3  ;;  %v1725_v15 = vrot.slane %v9894_v4, %v9806_v55  ;;  %v1693_v16 = vrot.slane %v1642_v45, %v9806_v55 }
 0x28b   : > { %v1718_v17 = vrot.slane %v1711_v11, %v9806_v55  ;;  %v1482_v18 = vrot.slane %v1475_v6, %v9806_v55  ;;  %v1489_v19 = vrot.slane %v1426_v54, %v9806_v55  ;;  %v9913_v20 = vpack.c.bf16 %v1458_v29, %v1458_v29 }
 0x28c   : > { %v1694_v21 = vcombine.low %v1686_v10, %v1693_v16  ;;  %v1848_v23 = vsel %vm1751_vm3, %v9900_v9, 0  ;;  %v1894_v24 = vsel %vm1751_vm3, %v9903_v12, 0  ;;  %v9933_v27 = vpack.c.bf16 %v1710_v13, %v1710_v13 }
 0x28d   : > { %v9915_v22 = vcombine.low %v1718_v17, %v1725_v15  ;;  %8609 = vmatmul.mubr.msk.bf16.vlgmr.msra.gmra.mrb[4].mxu1 %vm1751_vm3, %v9905_v14  ;;  %v1490_v25 = vcombine.low %v1482_v18, %v1489_v19  ;;  %v9935_v28 = vpack.c.bf16 %v1474_v46, %v1474_v46  ;;  %v1662_v17 = vcombine.high %v9845_v60, %v9845_v60 }
 0x28e   : > { %8619 = vmatpush3.bf16.xpose.msra.mxu1 %v1848_v23  ;;  %8615 = vmatmul.mubr.msk.bf16.vlgmr.msra.gmra.mrb[8].mxu0 %vm1751_vm3, %v9913_v20  ;;  %v9930_v26 = vpack.c.bf16 %v1694_v21, %v1694_v21  ;;  %v2037_v31 = vsel %vm1989_vm4, %v9933_v27, 0  ;;  %v1677_v19 = vcombine.high %v9894_v4, %v9894_v4 }
 0x28f   : > { %8625 = vmatpush3.bf16.xpose.msra.mxu0 %v1894_v24  ;;  %8620 = vmatprep.mubr.msk.bf16.mxu1 %vm9557_vm2, %v9556_v40  ;;  %v9937_v29 = vpack.c.bf16 %v1490_v25, %v1490_v25  ;;  %v1676_v18 = vrot.slane %v1662_v17, %v9806_v55 }
 0x290   : > { %8630 = vmatprep.subr.bf16.mxu1 %v9556_v40  ;;  %8626 = vmatprep.mubr.msk.bf16.mxu0 %vm9557_vm2, %v9556_v40  ;;  %v1991_v30 = vsel %vm1989_vm4, %v9930_v26, 0 }
 0x291   : > { %8636 = vmatprep.subr.bf16.mxu0 %v9556_v40  ;;  %v1678_v23 = vcombine.high %v1676_v18, %v1676_v18  ;;  %v1727_v24 = vcombine.low %v1677_v19, %v1676_v18 }
 0x295   : > { %8621 = vmatmul.mubr.msk.bf16.vlgmr.msra.gmra.mrb[8].mxu1 %vm1751_vm3, %v9935_v28 }
 0x296   : > { %8631 = vmatpush3.bf16.msra.mxu1 %v1991_v30  ;;  %8627 = vmatmul.mubr.msk.bf16.vlgmr.msra.gmra.mrb[12].mxu0 %vm1751_vm3, %v9937_v29  ;;  %v1734_v30 = vrot.slane %v1727_v24, %v9806_v55 }
 0x297   : > { %8637 = vmatpush3.bf16.msra.mxu0 %v2037_v31  ;;  %8632 = vmatprep.mubr.msk.bf16.mxu1 %vm9557_vm2, %v9556_v40  ;;  %v1741_v31 = vrot.slane %v1678_v23, %v9806_v55 }
 0x298   : > { %8642 = vmatprep.subr.bf16.mxu1 %v9556_v40  ;;  %8638 = vmatprep.mubr.msk.bf16.mxu0 %vm9557_vm2, %v9556_v40 }
 0x299   : > { %8648 = vmatprep.subr.bf16.mxu0 %v9556_v40 }
 0x360   : > { %v1792_v33 = vpop.f32.mrb[4].mxu1 }
 0x361   : > { %v8610_v34 = vpop.f32.mrb[5].mxu1  ;;  %v1937_v35 = vsel %vm1936_vm5, %v1792_v33, -inf  ;;  %v1838_v36 = vpop.f32.mrb[8].mxu0 }
 0x362   : > { %1938 = vmax.xlane.f32.xlu0 %v1937_v35  ;;  %v1795_v37 = vpop.f32.mrb[6].mxu1  ;;  %v8616_v38 = vpop.f32.mrb[9].mxu0  ;;  %v1940_v39 = vsel %vm1936_vm5, %v1838_v36, -inf  ;;  %v1742_v34 = vcombine.low %v1734_v30, %v1741_v31 }
 0x363   : > { %v8611_v41 = vpop.f32.mrb[7].mxu1  ;;  %1941 = vmax.xlane.f32.xlu1 %v1940_v39  ;;  %v1841_v32 = vpop.f32.mrb[10].mxu0 }
 0x364   : > { %v8617_v42 = vpop.f32.mrb[11].mxu0  ;;  %v9988_v37 = vpack.c.bf16 %v1742_v34, %v1742_v34 }
 0x366   : > { %v2129_v42 = vsel %vm1989_vm4, %v9988_v37, 0 }
 0x368   : > { %v1884_v44 = vpop.f32.mrb[8].mxu1 }
 0x369   : > { %v8622_v45 = vpop.f32.mrb[9].mxu1  ;;  %v1930_v46 = vpop.f32.mrb[12].mxu0  ;;  %v1943_v48 = vsel %vm1936_vm5, %v1884_v44, -inf }
 0x36a   : > { %1944 = vmax.xlane.f32.xlu0 %v1943_v48  ;;  %v1887_v49 = vpop.f32.mrb[10].mxu1  ;;  %v8628_v50 = vpop.f32.mrb[13].mxu0  ;;  %v1946_v51 = vsel %vm1936_vm5, %v1930_v46, -inf }
 0x36b   : > { %v8623_v52 = vpop.f32.mrb[11].mxu1  ;;  %1947 = vmax.xlane.f32.xlu1 %v1946_v51  ;;  %v1933_v53 = vpop.f32.mrb[14].mxu0 }
 0x36c   : > { %v8629_v56 = vpop.f32.mrb[15].mxu0 }
 0x3ef   : > { %v1939_v57 = vpop.xlane.xlu0 %1938 }
 0x3f0   : > { %v1949_v58 = vsub.f32 %v1792_v33, %v1939_v57  ;;  %v1942_v59 = vpop.xlane.xlu1 %1941 }
 0x3f1   : > { %v1950_v61 = vsub.f32 %v1838_v36, %v1942_v59  ;;  %v9986_v36 = vpack.c.bf16 %v9915_v22, %v9915_v22 }
 0x3f2   : > { %v1953_v62 = vmul.f32 1.442695, %v1949_v58 }
 0x3f3   : > { %v1955_v63 = vmul.f32 1.442695, %v1950_v61  ;;  %v2083_v32 = vsel %vm1989_vm4, %v9986_v36, 0 }
 0x3f4   : > { %9292 = vpow2.f32 %v1953_v62 }
 0x3f5   : > { %9294 = vpow2.f32 %v1955_v63 }
 0x3f7   : > { %v1945_v0 = vpop.xlane.xlu0 %1944 }
 0x3f8   : > { %v1951_v2 = vsub.f32 %v1884_v44, %v1945_v0  ;;  %v1948_v10 = vpop.xlane.xlu1 %1947 }
 0x3f9   : > { %v1952_v11 = vsub.f32 %v1930_v46, %v1948_v10 }
 0x3fa   : > { %v1957_v1 = vmul.f32 1.442695, %v1951_v2 }
 0x3fb   : > { %v1959_v13 = vmul.f32 1.442695, %v1952_v11 }
 0x3fc   : > { %9296 = vpow2.f32 %v1957_v1 }
 0x3fd   : > { %9298 = vpow2.f32 %v1959_v13 }
 0x3fe   : > { %v9293_v3 = vpop.eup %9292 }
 0x3ff   : > { %v9295_v5 = vpop.eup %9294  ;;  %v1961_v54 = vsel %vm1936_vm5, %v9293_v3, 0.0 }
 0x400   : > { %1962 = vadd.xlane.f32.xlu0 %v1961_v54  ;;  %v1964_v6 = vsel %vm1936_vm5, %v9295_v5, 0.0 }
 0x401   : > { %1965 = vadd.xlane.f32.xlu1 %v1964_v6 }
 0x406   : > { %v9297_v7 = vpop.eup %9296 }
 0x407   : > { %v1967_v8 = vsel %vm1936_vm5, %v9297_v7, 0.0  ;;  %v9299_v15 = vpop.eup %9298 }
 0x408   : > { %1968 = vadd.xlane.f32.xlu0 %v1967_v8  ;;  %v1970_v16 = vsel %vm1936_vm5, %v9299_v15, 0.0 }
 0x412   : > { %2227 = vrot.lane.b32.xlu1 %v9878_v47, %s11103_s23 }
 0x416   : > { %2172 = vrot.lane.b32.xlu1 %v9905_v14, %s11103_s23 }
 0x41e   : > { %2175 = vrot.lane.b32.xlu0 %v9874_v43, %s11103_s23 }
 0x422   : > { %2224 = vrot.lane.b32.xlu0 %v9913_v20, %s11103_s23 }
 0x426   : > { %2276 = vrot.lane.b32.xlu0 %v9935_v28, %s11103_s23 }
 0x43a   : > { %1971 = vadd.xlane.f32.xlu1 %v1970_v16 }
 0x44b   : > { %2279 = vrot.lane.b32.xlu1 %v9900_v9, %s11103_s23 }
 0x44f   : > { %2331 = vrot.lane.b32.xlu1 %v9903_v12, %s11103_s23 }
 0x453   : > { %2328 = vrot.lane.b32.xlu1 %v9937_v29, %s11103_s23 }
 0x48d   : > { %v1963_v21 = vpop.xlane.xlu0 %1962 }
 0x48e   : > { %9300 = vrcp.f32 %v1963_v21  ;;  %v1966_v25 = vpop.xlane.xlu1 %1965 }
 0x48f   : > { %9302 = vrcp.f32 %v1966_v25 }
 0x492   : > { %v2228_v49 = vpop.permute.xlu1 %2227 }
 0x493   : > { %v2233_v62 = vsel %vm1751_vm3, %v2228_v49, 0 }
 0x495   : > { %v1969_v33 = vpop.xlane.xlu0 %1968 }
 0x496   : > { %9304 = vrcp.f32 %v1969_v33  ;;  %v2173_v50 = vpop.permute.xlu1 %2172 }
 0x498   : > { %v9301_v35 = vpop.eup %9300 }
 0x499   : > { %v9303_v60 = vpop.eup %9302  ;;  %v1977_v4 = vmul.f32 %v9301_v35, %v9293_v3  ;;  %v2176_v45 = vpop.permute.xlu0 %2175 }
 0x49a   : > { %v1978_v38 = vmul.f32 %v9303_v60, %v9295_v5  ;;  %v2181_v48 = vsel %vm1751_vm3, %v2176_v45, 0 }
 0x49b   : > { %v1981_v39 = vpack.c.bf16 %v1977_v4, %v1977_v4 }
 0x49c   : > { %v1982_v41 = vpack.c.bf16 %v1978_v38, %v1978_v38 }
 0x49d   : > { %8633 = vmatmul.mubr.msk.bf16.vlgmr.msra.gmra.mrb[12].mxu1 %vm1985_vm6, %v1981_v39  ;;  %v2225_v56 = vpop.permute.xlu0 %2224 }
 0x49e   : > { %8643 = vmatpush3.bf16.msra.mxu1 %v2083_v32  ;;  %8639 = vmatmul.mubr.msk.bf16.vlgmr.msra.gmra.mrb[16].mxu0 %vm1985_vm6, %v1982_v41 }
 0x49f   : > { %8649 = vmatpush3.bf16.msra.mxu0 %v2129_v42  ;;  %8644 = vmatprep.mubr.msk.bf16.mxu1 %vm9557_vm2, %v9556_v40 }
 0x4a0   : > { %v9305_v22 = vpop.eup %9304  ;;  %8654 = vmatprep.subr.bf16.mxu1 %v9556_v40  ;;  %8650 = vmatprep.mubr.msk.bf16.mxu0 %vm9557_vm2, %v9556_v40 }
 0x4a1   : > { %v1979_v44 = vmul.f32 %v9305_v22, %v9297_v7  ;;  %8660 = vmatprep.subr.bf16.mxu0 %v9556_v40  ;;  %v2277_v58 = vpop.permute.xlu0 %2276 }
 0x4a3   : > { %v1983_v46 = vpack.c.bf16 %v1979_v44, %v1979_v44 }
 0x4a5   : > { %8645 = vmatmul.mubr.msk.bf16.vlgmr.msra.gmra.mrb[16].mxu1 %vm1985_vm6, %v1983_v46 }
 0x4a6   : > { %8656 = vmatprep.mubr.msk.bf16.mxu1 %vm9557_vm2, %v9556_v40 }
 0x4a7   : > { %8655 = vmatpush3.bf16.xpose.msra.mxu1 %v2181_v48 }
 0x4a8   : > { %8666 = vmatprep.subr.bf16.mxu1 %v9556_v40 }
 0x4ae   : > { %8657 = vmatmul.mubr.msk.bf16.vlgmr.msra.gmra.mrb[20].mxu1 %vm1751_vm3, %v2173_v50 }
 0x4af   : > { %8668 = vmatprep.mubr.msk.bf16.mxu1 %vm9557_vm2, %v9556_v40 }
 0x4c7   : > { %v1972_v51 = vpop.xlane.xlu1 %1971 }
 0x4c8   : > { %9306 = vrcp.f32 %v1972_v51 }
 0x4cb   : > { %v2280_v52 = vpop.permute.xlu1 %2279 }
 0x4cc   : > { %v2285_v53 = vsel %vm1751_vm3, %v2280_v52, 0 }
 0x4cd   : > { %8667 = vmatpush3.bf16.xpose.msra.mxu1 %v2285_v53 }
 0x4ce   : > { %8678 = vmatprep.subr.bf16.mxu1 %v9556_v40 }
 0x4cf   : > { %v2332_v63 = vpop.permute.xlu1 %2331 }
 0x4d0   : > { %v2337_v0 = vsel %vm1751_vm3, %v2332_v63, 0 }
 0x4d2   : > { %v9307_v57 = vpop.eup %9306 }
 0x4d3   : > { %v1980_v59 = vmul.f32 %v9307_v57, %v9299_v15  ;;  %v2329_v2 = vpop.permute.xlu1 %2328 }
 0x4d4   : > { %8669 = vmatmul.mubr.msk.bf16.vlgmr.msra.gmra.mrb[24].mxu1 %vm1751_vm3, %v2277_v58 }
 0x4d5   : > { %v1984_v61 = vpack.c.bf16 %v1980_v59, %v1980_v59  ;;  %8680 = vmatprep.mubr.msk.bf16.mxu1 %vm9557_vm2, %v9556_v40 }
 0x4d7   : > { %8651 = vmatmul.mubr.msk.bf16.vlgmr.msra.gmra.mrb[20].mxu0 %vm1985_vm6, %v1984_v61 }
 0x4d8   : > { %8661 = vmatpush3.bf16.xpose.msra.mxu0 %v2233_v62  ;;  %8662 = vmatprep.mubr.msk.bf16.mxu0 %vm9557_vm2, %v9556_v40 }
 0x4d9   : > { %8672 = vmatprep.subr.bf16.mxu0 %v9556_v40 }
 0x4df   : > { %8663 = vmatmul.mubr.msk.bf16.vlgmr.msra.gmra.mrb[24].mxu0 %vm1751_vm3, %v2225_v56 }
 0x4e0   : > { %8673 = vmatpush3.bf16.xpose.msra.mxu0 %v2337_v0  ;;  %8674 = vmatprep.mubr.msk.bf16.mxu0 %vm9557_vm2, %v9556_v40 }
 0x4e1   : > { %8684 = vmatprep.subr.bf16.mxu0 %v9556_v40 }
 0x4e7   : > { %8675 = vmatmul.mubr.msk.bf16.vlgmr.msra.gmra.mrb[28].mxu0 %vm1751_vm3, %v2329_v2 }
 0x4e8   : > { %8686 = vmatprep.mubr.msk.bf16.mxu0 %vm9557_vm2, %v9556_v40 }
 0x570   : > { %v10028_v1 = vpop.f32.mrb[12].mxu1 }
 0x571   : > { %v8634_v3 = vpop.f32.mrb[13].mxu1  ;;  %v10030_v5 = vpop.f32.mrb[16].mxu0 }
 0x572   : > { %v2030_v54 = vpop.f32.mrb[14].mxu1  ;;  %v8640_v6 = vpop.f32.mrb[17].mxu0 }
 0x573   : > { %v8635_v7 = vpop.f32.mrb[15].mxu1  ;;  %v2076_v8 = vpop.f32.mrb[18].mxu0 }
 0x574   : > { %v8641_v10 = vpop.f32.mrb[19].mxu0 }
 0x578   : > { %v10032_v11 = vpop.f32.mrb[16].mxu1 }
 0x579   : > { %v8646_v13 = vpop.f32.mrb[17].mxu1 }
 0x57a   : > { %v2122_v15 = vpop.f32.mrb[18].mxu1 }
 0x57b   : > { %v8647_v16 = vpop.f32.mrb[19].mxu1 }
 0x581   : > { %v2217_v17 = vpop.f32.mrb[20].mxu1 }
 0x582   : > { %v8658_v18 = vpop.f32.mrb[21].mxu1  ;;  %v2379_v19 = vsel %vm1936_vm5, %v2217_v17, -inf }
 0x583   : > { %2380 = vmax.xlane.f32.xlu0 %v2379_v19  ;;  %v2220_v21 = vpop.f32.mrb[22].mxu1 }
 0x584   : > { %v8659_v23 = vpop.f32.mrb[23].mxu1 }
 0x5a7   : > { %v2321_v24 = vpop.f32.mrb[24].mxu1 }
 0x5a8   : > { %v8670_v25 = vpop.f32.mrb[25].mxu1  ;;  %v2385_v30 = vsel %vm1936_vm5, %v2321_v24, -inf }
 0x5a9   : > { %2386 = vmax.xlane.f32.xlu0 %v2385_v30  ;;  %v2324_v31 = vpop.f32.mrb[26].mxu1 }
 0x5aa   : > { %v10036_v33 = vpop.f32.mrb[20].mxu0  ;;  %v8671_v34 = vpop.f32.mrb[27].mxu1 }
 0x5ab   : > { %v8652_v35 = vpop.f32.mrb[21].mxu0 }
 0x5ac   : > { %v2168_v60 = vpop.f32.mrb[22].mxu0 }
 0x5ad   : > { %v8653_v4 = vpop.f32.mrb[23].mxu0 }
 0x5b2   : > { %v2269_v38 = vpop.f32.mrb[24].mxu0 }
 0x5b3   : > { %v8664_v39 = vpop.f32.mrb[25].mxu0  ;;  %v2382_v41 = vsel %vm1936_vm5, %v2269_v38, -inf }
 0x5b4   : > { %2383 = vmax.xlane.f32.xlu1 %v2382_v41  ;;  %v2272_v32 = vpop.f32.mrb[26].mxu0 }
 0x5b5   : > { %v8665_v42 = vpop.f32.mrb[27].mxu0 }
 0x5ba   : > { %v2373_v22 = vpop.f32.mrb[28].mxu0 }
 0x5bb   : > { %v8676_v44 = vpop.f32.mrb[29].mxu0  ;;  %v2388_v45 = vsel %vm1936_vm5, %v2373_v22, -inf }
 0x5bc   : > { %v2376_v46 = vpop.f32.mrb[30].mxu0  ;;  %2389 = vmax.xlane.f32.xlu0 %v2388_v45 }
 0x5bd   : > { %v8677_v48 = vpop.f32.mrb[31].mxu0 }
 0x5c5   : > { %2477 = vrot.lane.b32.xlu1 %v9933_v27, %s11103_s23 }
 0x5c9   : > { %2526 = vrot.lane.b32.xlu1 %v9986_v36, %s11103_s23 }
 0x5cd   : > { %2575 = vrot.lane.b32.xlu1 %v9988_v37, %s11103_s23 }
 0x610   : > { %v2381_v49 = vpop.xlane.xlu0 %2380 }
 0x611   : > { %v2391_v50 = vsub.f32 %v2217_v17, %v2381_v49 }
 0x613   : > { %v2395_v51 = vmul.f32 1.442695, %v2391_v50 }
 0x615   : > { %9308 = vpow2.f32 %v2395_v51 }
 0x61f   : > { %v9309_v52 = vpop.eup %9308 }
 0x620   : > { %v2403_v53 = vsel %vm1936_vm5, %v9309_v52, 0.0 }
 0x621   : > { %2404 = vadd.xlane.f32.xlu0 %v2403_v53 }
 0x636   : > { %v2387_v56 = vpop.xlane.xlu0 %2386 }
 0x637   : > { %2428 = vrot.lane.b32.xlu0 %v9930_v26, %s11103_s23  ;;  %v2393_v57 = vsub.f32 %v2321_v24, %v2387_v56  ;;  %s11109_s23 = smov 8  }
 0x639   : > { %v2399_v61 = vmul.f32 1.442695, %v2393_v57 }
 0x641   : > { %v2384_v58 = vpop.xlane.xlu1 %2383 }
 0x642   : > { %v2392_v59 = vsub.f32 %v2269_v38, %v2384_v58 }
 0x644   : > { %v2397_v62 = vmul.f32 1.442695, %v2392_v59 }
 0x645   : > { %v2478_v63 = vpop.permute.xlu1 %2477 }
 0x646   : > { %9310 = vpow2.f32 %v2397_v62  ;;  %v2483_v0 = vsel %vm1989_vm4, %v2478_v63, 0 }
 0x647   : > { %8685 = vmatpush3.bf16.msra.mxu0 %v2483_v0  ;;  %9312 = vpow2.f32 %v2399_v61 }
 0x648   : > { %8696 = vmatprep.subr.bf16.mxu0 %v9556_v40 }
 0x649   : > { %v2390_v7 = vpop.xlane.xlu0 %2389  ;;  %v2527_v23 = vpop.permute.xlu1 %2526 }
 0x64a   : > { %v2394_v8 = vsub.f32 %v2373_v22, %v2390_v7  ;;  %v2532_v25 = vsel %vm1989_vm4, %v2527_v23, 0 }
 0x64c   : > { %v2401_v10 = vmul.f32 1.442695, %v2394_v8 }
 0x64d   : > { %v2576_v30 = vpop.permute.xlu1 %2575 }
 0x64e   : > { %9314 = vpow2.f32 %v2401_v10  ;;  %v2581_v39 = vsel %vm1989_vm4, %v2576_v30, 0 }
 0x650   : > { %v9311_v2 = vpop.eup %9310 }
 0x651   : > { %v2406_v3 = vsel %vm1936_vm5, %v9311_v2, 0.0  ;;  %v9313_v54 = vpop.eup %9312 }
 0x652   : > { %2407 = vadd.xlane.f32.xlu1 %v2406_v3  ;;  %v2409_v6 = vsel %vm1936_vm5, %v9313_v54, 0.0 }
 0x656   : > { %2410 = vadd.xlane.f32.xlu0 %v2409_v6 }
 0x658   : > { %v9315_v13 = vpop.eup %9314 }
 0x659   : > { %v2412_v15 = vsel %vm1936_vm5, %v9315_v13, 0.0 }
 0x663   : > { %2675 = vrot.lane.b32.xlu1 %v9878_v47, %s11101_s16 }
 0x66c   : > { %2625 = vrot.lane.b32.xlu0 %v9874_v43, %s11101_s16 }
 0x670   : > { %2623 = vrot.lane.b32.xlu0 %v9905_v14, %s11101_s16 }
 0x674   : > { %2673 = vrot.lane.b32.xlu0 %v9913_v20, %s11101_s16 }
 0x678   : > { %2723 = vrot.lane.b32.xlu0 %v9935_v28, %s11101_s16 }
 0x687   : > { %2413 = vadd.xlane.f32.xlu1 %v2412_v15 }
 0x698   : > { %2725 = vrot.lane.b32.xlu1 %v9900_v9, %s11101_s16 }
 0x69c   : > { %2775 = vrot.lane.b32.xlu1 %v9903_v12, %s11101_s16 }
 0x6a0   : > { %2773 = vrot.lane.b32.xlu1 %v9937_v29, %s11101_s16 }
 0x6ae   : > { %v2405_v16 = vpop.xlane.xlu0 %2404 }
 0x6af   : > { %9316 = vrcp.f32 %v2405_v16 }
 0x6b2   : > { %v2429_v17 = vpop.permute.xlu0 %2428 }
 0x6b3   : > { %v2434_v18 = vsel %vm1989_vm4, %v2429_v17, 0 }
 0x6b4   : > { %8679 = vmatpush3.bf16.msra.mxu1 %v2434_v18 }
 0x6b5   : > { %8690 = vmatprep.subr.bf16.mxu1 %v9556_v40 }
 0x6b9   : > { %v9317_v19 = vpop.eup %9316 }
 0x6ba   : > { %v2419_v21 = vmul.f32 %v9317_v19, %v9309_v52 }
 0x6bc   : > { %v2423_v24 = vpack.c.bf16 %v2419_v21, %v2419_v21 }
 0x6be   : > { %8681 = vmatmul.mubr.msk.bf16.vlgmr.msra.gmra.mrb[28].mxu1 %vm1985_vm6, %v2423_v24 }
 0x6bf   : > { %8691 = vmatpush3.bf16.msra.mxu1 %v2532_v25  ;;  %8692 = vmatprep.mubr.msk.bf16.mxu1 %vm9557_vm2, %v9556_v40 }
 0x6c0   : > { %8702 = vmatprep.subr.bf16.mxu1 %v9556_v40 }
 0x6df   : > { %v2408_v31 = vpop.xlane.xlu1 %2407 }
 0x6e0   : > { %9318 = vrcp.f32 %v2408_v31 }
 0x6e3   : > { %v2411_v34 = vpop.xlane.xlu0 %2410  ;;  %v2676_v45 = vpop.permute.xlu1 %2675 }
 0x6e4   : > { %9320 = vrcp.f32 %v2411_v34  ;;  %v2681_v57 = vsel %vm1751_vm3, %v2676_v45, 0 }
 0x6e7   : > { %v2626_v32 = vpop.permute.xlu0 %2625 }
 0x6e8   : > { %v2631_v22 = vsel %vm1751_vm3, %v2626_v32, 0 }
 0x6ea   : > { %v9319_v35 = vpop.eup %9318 }
 0x6eb   : > { %v2420_v60 = vmul.f32 %v9319_v35, %v9311_v2  ;;  %v2624_v44 = vpop.permute.xlu0 %2623 }
 0x6ed   : > { %v2424_v4 = vpack.c.bf16 %v2420_v60, %v2420_v60 }
 0x6ee   : > { %v9321_v38 = vpop.eup %9320 }
 0x6ef   : > { %8687 = vmatmul.mubr.msk.bf16.vlgmr.msra.gmra.mrb[32].mxu0 %vm1985_vm6, %v2424_v4  ;;  %v2421_v41 = vmul.f32 %v9321_v38, %v9313_v54  ;;  %v2674_v50 = vpop.permute.xlu0 %2673 }
 0x6f0   : > { %8697 = vmatpush3.bf16.msra.mxu0 %v2581_v39  ;;  %8698 = vmatprep.mubr.msk.bf16.mxu0 %vm9557_vm2, %v9556_v40 }
 0x6f1   : > { %v2425_v42 = vpack.c.bf16 %v2421_v41, %v2421_v41  ;;  %8708 = vmatprep.subr.bf16.mxu0 %v9556_v40 }
 0x6f3   : > { %8693 = vmatmul.mubr.msk.bf16.vlgmr.msra.gmra.mrb[32].mxu1 %vm1985_vm6, %v2425_v42  ;;  %v2724_v52 = vpop.permute.xlu0 %2723 }
 0x6f4   : > { %8703 = vmatpush3.bf16.xpose.msra.mxu1 %v2631_v22  ;;  %8704 = vmatprep.mubr.msk.bf16.mxu1 %vm9557_vm2, %v9556_v40 }
 0x6f5   : > { %8714 = vmatprep.subr.bf16.mxu1 %v9556_v40 }
 0x6fb   : > { %8705 = vmatmul.mubr.msk.bf16.vlgmr.msra.gmra.mrb[36].mxu1 %vm1751_vm3, %v2624_v44 }
 0x6fc   : > { %8716 = vmatprep.mubr.msk.bf16.mxu1 %vm9557_vm2, %v9556_v40 }
 0x714   : > { %v2414_v46 = vpop.xlane.xlu1 %2413 }
 0x715   : > { %9322 = vrcp.f32 %v2414_v46 }
 0x718   : > { %v2726_v48 = vpop.permute.xlu1 %2725 }
 0x719   : > { %v2731_v49 = vsel %vm1751_vm3, %v2726_v48, 0 }
 0x71a   : > { %8715 = vmatpush3.bf16.xpose.msra.mxu1 %v2731_v49 }
 0x71b   : > { %8726 = vmatprep.subr.bf16.mxu1 %v9556_v40 }
 0x71c   : > { %v2776_v58 = vpop.permute.xlu1 %2775 }
 0x71d   : > { %v2781_v59 = vsel %vm1751_vm3, %v2776_v58, 0 }
 0x71f   : > { %v9323_v51 = vpop.eup %9322 }
 0x720   : > { %v2422_v53 = vmul.f32 %v9323_v51, %v9315_v13  ;;  %v2774_v61 = vpop.permute.xlu1 %2773 }
 0x721   : > { %8717 = vmatmul.mubr.msk.bf16.vlgmr.msra.gmra.mrb[40].mxu1 %vm1751_vm3, %v2724_v52 }
 0x722   : > { %v2426_v56 = vpack.c.bf16 %v2422_v53, %v2422_v53  ;;  %8728 = vmatprep.mubr.msk.bf16.mxu1 %vm9557_vm2, %v9556_v40 }
 0x724   : > { %8699 = vmatmul.mubr.msk.bf16.vlgmr.msra.gmra.mrb[36].mxu0 %vm1985_vm6, %v2426_v56 }
 0x725   : > { %8709 = vmatpush3.bf16.xpose.msra.mxu0 %v2681_v57  ;;  %8710 = vmatprep.mubr.msk.bf16.mxu0 %vm9557_vm2, %v9556_v40 }
 0x726   : > { %8720 = vmatprep.subr.bf16.mxu0 %v9556_v40 }
 0x72c   : > { %8711 = vmatmul.mubr.msk.bf16.vlgmr.msra.gmra.mrb[40].mxu0 %vm1751_vm3, %v2674_v50 }
 0x72d   : > { %8721 = vmatpush3.bf16.xpose.msra.mxu0 %v2781_v59  ;;  %8722 = vmatprep.mubr.msk.bf16.mxu0 %vm9557_vm2, %v9556_v40 }
 0x72e   : > { %8732 = vmatprep.subr.bf16.mxu0 %v9556_v40 }
 0x734   : > { %8723 = vmatmul.mubr.msk.bf16.vlgmr.msra.gmra.mrb[44].mxu0 %vm1751_vm3, %v2774_v61 }
 0x735   : > { %8734 = vmatprep.mubr.msk.bf16.mxu0 %vm9557_vm2, %v9556_v40 }
 0x791   : > { %v10108_v62 = vpop.f32.mrb[28].mxu1 }
 0x792   : > { %v8682_v63 = vpop.f32.mrb[29].mxu1 }
 0x793   : > { %v2473_v0 = vpop.f32.mrb[30].mxu1 }
 0x794   : > { %v8683_v2 = vpop.f32.mrb[31].mxu1 }
 0x7c2   : > { %v10110_v3 = vpop.f32.mrb[32].mxu0 }
 0x7c3   : > { %v8688_v54 = vpop.f32.mrb[33].mxu0 }
 0x7c4   : > { %v2522_v6 = vpop.f32.mrb[34].mxu0 }
 0x7c5   : > { %v8689_v7 = vpop.f32.mrb[35].mxu0 }
 0x7c6   : > { %v10112_v8 = vpop.f32.mrb[32].mxu1 }
 0x7c7   : > { %v8694_v10 = vpop.f32.mrb[33].mxu1 }
 0x7c8   : > { %v2571_v13 = vpop.f32.mrb[34].mxu1 }
 0x7c9   : > { %v8695_v15 = vpop.f32.mrb[35].mxu1 }
 0x7ce   : > { %v2667_v16 = vpop.f32.mrb[36].mxu1 }
 0x7cf   : > { %v8706_v17 = vpop.f32.mrb[37].mxu1  ;;  %v2823_v18 = vsel %vm1936_vm5, %v2667_v16, -inf }
 0x7d0   : > { %2824 = vmax.xlane.f32.xlu0 %v2823_v18  ;;  %v2670_v19 = vpop.f32.mrb[38].mxu1 }
 0x7d1   : > { %v8707_v21 = vpop.f32.mrb[39].mxu1 }
 0x7f4   : > { %v2767_v23 = vpop.f32.mrb[40].mxu1 }
 0x7f5   : > { %v8718_v24 = vpop.f32.mrb[41].mxu1  ;;  %v2829_v25 = vsel %vm1936_vm5, %v2767_v23, -inf }
 0x7f6   : > { %2830 = vmax.xlane.f32.xlu0 %v2829_v25  ;;  %v2770_v30 = vpop.f32.mrb[42].mxu1 }
 0x7f7   : > { %v10116_v31 = vpop.f32.mrb[36].mxu0  ;;  %v8719_v34 = vpop.f32.mrb[43].mxu1 }
 0x7f8   : > { %v8700_v35 = vpop.f32.mrb[37].mxu0 }
 0x7f9   : > { %v2620_v60 = vpop.f32.mrb[38].mxu0 }
 0x7fa   : > { %v8701_v4 = vpop.f32.mrb[39].mxu0 }
 0x7ff   : > { %v2717_v38 = vpop.f32.mrb[40].mxu0 }
 0x800   : > { %v8712_v39 = vpop.f32.mrb[41].mxu0  ;;  %v2826_v41 = vsel %vm1936_vm5, %v2717_v38, -inf }
 0x801   : > { %2827 = vmax.xlane.f32.xlu1 %v2826_v41  ;;  %v2720_v32 = vpop.f32.mrb[42].mxu0 }
 0x802   : > { %v8713_v42 = vpop.f32.mrb[43].mxu0 }
 0x807   : > { %v2817_v22 = vpop.f32.mrb[44].mxu0 }
 0x808   : > { %v8724_v44 = vpop.f32.mrb[45].mxu0  ;;  %v2832_v45 = vsel %vm1936_vm5, %v2817_v22, -inf }
 0x809   : > { %v2820_v46 = vpop.f32.mrb[46].mxu0  ;;  %2833 = vmax.xlane.f32.xlu0 %v2832_v45 }
 0x80a   : > { %v8725_v48 = vpop.f32.mrb[47].mxu0 }
 0x812   : > { %2919 = vrot.lane.b32.xlu1 %v9933_v27, %s11101_s16 }
 0x816   : > { %2967 = vrot.lane.b32.xlu1 %v9986_v36, %s11101_s16 }
 0x81a   : > { %3015 = vrot.lane.b32.xlu1 %v9988_v37, %s11101_s16 }
 0x85d   : > { %v2825_v49 = vpop.xlane.xlu0 %2824 }
 0x85e   : > { %v2835_v50 = vsub.f32 %v2667_v16, %v2825_v49 }
 0x860   : > { %v2839_v51 = vmul.f32 1.442695, %v2835_v50 }
 0x862   : > { %9324 = vpow2.f32 %v2839_v51 }
 0x86c   : > { %v9325_v52 = vpop.eup %9324 }
 0x86d   : > { %v2847_v53 = vsel %vm1936_vm5, %v9325_v52, 0.0 }
 0x86e   : > { %2848 = vadd.xlane.f32.xlu0 %v2847_v53 }
 0x883   : > { %v2831_v56 = vpop.xlane.xlu0 %2830 }
 0x884   : > { %2871 = vrot.lane.b32.xlu0 %v9930_v26, %s11101_s16  ;;  %v2837_v57 = vsub.f32 %v2767_v23, %v2831_v56  ;;  %s11111_s16 = smov 104  }
 0x886   : > { %v2843_v61 = vmul.f32 1.442695, %v2837_v57 }
 0x88e   : > { %v2828_v58 = vpop.xlane.xlu1 %2827 }
 0x88f   : > { %v2836_v59 = vsub.f32 %v2717_v38, %v2828_v58 }
 0x891   : > { %v2841_v63 = vmul.f32 1.442695, %v2836_v59 }
 0x892   : > { %v2920_v0 = vpop.permute.xlu1 %2919 }
 0x893   : > { %9326 = vpow2.f32 %v2841_v63  ;;  %v2925_v2 = vsel %vm1989_vm4, %v2920_v0, 0 }
 0x894   : > { %8733 = vmatpush3.bf16.msra.mxu0 %v2925_v2  ;;  %9328 = vpow2.f32 %v2843_v61 }
 0x895   : > { %8744 = vmatprep.subr.bf16.mxu0 %v9556_v40 }
 0x896   : > { %v2834_v13 = vpop.xlane.xlu0 %2833  ;;  %v2968_v19 = vpop.permute.xlu1 %2967 }
 0x897   : > { %v2838_v15 = vsub.f32 %v2817_v22, %v2834_v13 }
 0x899   : > { %v2845_v16 = vmul.f32 1.442695, %v2838_v15 }
 0x89b   : > { %9330 = vpow2.f32 %v2845_v16 }
 0x89d   : > { %v9327_v54 = vpop.eup %9326 }
 0x89e   : > { %v2850_v6 = vsel %vm1936_vm5, %v9327_v54, 0.0  ;;  %v9329_v7 = vpop.eup %9328 }
 0x89f   : > { %2851 = vadd.xlane.f32.xlu1 %v2850_v6  ;;  %v2853_v10 = vsel %vm1936_vm5, %v9329_v7, 0.0 }
 0x8a3   : > { %2854 = vadd.xlane.f32.xlu0 %v2853_v10 }
 0x8a5   : > { %v9331_v17 = vpop.eup %9330 }
 0x8a6   : > { %v2856_v18 = vsel %vm1936_vm5, %v9331_v17, 0.0 }
 0x8b0   : > { %3115 = vrot.lane.b32.xlu1 %v9878_v47, %s11111_s16 }
 0x8b9   : > { %3065 = vrot.lane.b32.xlu0 %v9874_v43, %s11111_s16 }
 0x8bd   : > { %3063 = vrot.lane.b32.xlu0 %v9905_v14, %s11111_s16 }
 0x8c1   : > { %3113 = vrot.lane.b32.xlu0 %v9913_v20, %s11111_s16 }
 0x8c5   : > { %3163 = vrot.lane.b32.xlu0 %v9935_v28, %s11111_s16 }
 0x8d4   : > { %2857 = vadd.xlane.f32.xlu1 %v2856_v18 }
 0x8e5   : > { %3165 = vrot.lane.b32.xlu1 %v9900_v9, %s11111_s16  ;;  %v2973_v9 = vsel %vm1989_vm4, %v2968_v19, 0 }
 0x8e9   : > { %3215 = vrot.lane.b32.xlu1 %v9903_v12, %s11111_s16  ;;  %v3016_v12 = vpop.permute.xlu1 %3015 }
 0x8ea   : > { %v3021_v35 = vsel %vm1989_vm4, %v3016_v12, 0 }
 0x8ed   : > { %3213 = vrot.lane.b32.xlu1 %v9937_v29, %s11111_s16 }
 0x8fb   : > { %v2849_v43 = vpop.xlane.xlu0 %2848 }
 0x8fc   : > { %9332 = vrcp.f32 %v2849_v43 }
 0x8ff   : > { %v2872_v47 = vpop.permute.xlu0 %2871 }
 0x900   : > { %v2877_v14 = vsel %vm1989_vm4, %v2872_v47, 0 }
 0x901   : > { %8727 = vmatpush3.bf16.msra.mxu1 %v2877_v14 }
 0x902   : > { %8738 = vmatprep.subr.bf16.mxu1 %v9556_v40 }
 0x906   : > { %v9333_v20 = vpop.eup %9332 }
 0x907   : > { %v2863_v28 = vmul.f32 %v9333_v20, %v9325_v52 }
 0x909   : > { %v2867_v21 = vpack.c.bf16 %v2863_v28, %v2863_v28 }
 0x90b   : > { %8729 = vmatmul.mubr.msk.bf16.vlgmr.msra.gmra.mrb[44].mxu1 %vm1985_vm6, %v2867_v21 }
 0x90c   : > { %8739 = vmatpush3.bf16.msra.mxu1 %v2973_v9  ;;  %8740 = vmatprep.mubr.msk.bf16.mxu1 %vm9557_vm2, %v9556_v40 }
 0x90d   : > { %8750 = vmatprep.subr.bf16.mxu1 %v9556_v40 }
 0x92c   : > { %v2852_v29 = vpop.xlane.xlu1 %2851 }
 0x92d   : > { %9334 = vrcp.f32 %v2852_v29 }
 0x930   : > { %v2855_v23 = vpop.xlane.xlu0 %2854  ;;  %v3116_v32 = vpop.permute.xlu1 %3115 }
 0x931   : > { %9336 = vrcp.f32 %v2855_v23  ;;  %v3121_v51 = vsel %vm1751_vm3, %v3116_v32, 0 }
 0x934   : > { %v3066_v4 = vpop.permute.xlu0 %3065 }
 0x935   : > { %v3071_v39 = vsel %vm1751_vm3, %v3066_v4, 0 }
 0x937   : > { %v9335_v24 = vpop.eup %9334 }
 0x938   : > { %v2864_v25 = vmul.f32 %v9335_v24, %v9327_v54  ;;  %v3064_v41 = vpop.permute.xlu0 %3063 }
 0x93a   : > { %v2868_v30 = vpack.c.bf16 %v2864_v25, %v2864_v25 }
 0x93b   : > { %v9337_v34 = vpop.eup %9336 }
 0x93c   : > { %8735 = vmatmul.mubr.msk.bf16.vlgmr.msra.gmra.mrb[48].mxu0 %vm1985_vm6, %v2868_v30  ;;  %v2865_v60 = vmul.f32 %v9337_v34, %v9329_v7  ;;  %v3114_v45 = vpop.permute.xlu0 %3113 }
 0x93d   : > { %8745 = vmatpush3.bf16.msra.mxu0 %v3021_v35  ;;  %8746 = vmatprep.mubr.msk.bf16.mxu0 %vm9557_vm2, %v9556_v40 }
 0x93e   : > { %v2869_v38 = vpack.c.bf16 %v2865_v60, %v2865_v60  ;;  %8756 = vmatprep.subr.bf16.mxu0 %v9556_v40 }
 0x940   : > { %8741 = vmatmul.mubr.msk.bf16.vlgmr.msra.gmra.mrb[48].mxu1 %vm1985_vm6, %v2869_v38  ;;  %v3164_v48 = vpop.permute.xlu0 %3163 }
 0x941   : > { %8751 = vmatpush3.bf16.xpose.msra.mxu1 %v3071_v39  ;;  %8752 = vmatprep.mubr.msk.bf16.mxu1 %vm9557_vm2, %v9556_v40 }
 0x942   : > { %8762 = vmatprep.subr.bf16.mxu1 %v9556_v40 }
 0x948   : > { %8753 = vmatmul.mubr.msk.bf16.vlgmr.msra.gmra.mrb[52].mxu1 %vm1751_vm3, %v3064_v41 }
 0x949   : > { %8764 = vmatprep.mubr.msk.bf16.mxu1 %vm9557_vm2, %v9556_v40 }
 0x961   : > { %v2858_v42 = vpop.xlane.xlu1 %2857 }
 0x962   : > { %9338 = vrcp.f32 %v2858_v42 }
 0x965   : > { %v3166_v22 = vpop.permute.xlu1 %3165 }
 0x966   : > { %v3171_v44 = vsel %vm1751_vm3, %v3166_v22, 0 }
 0x967   : > { %8763 = vmatpush3.bf16.xpose.msra.mxu1 %v3171_v44 }
 0x968   : > { %8774 = vmatprep.subr.bf16.mxu1 %v9556_v40 }
 0x969   : > { %v3216_v52 = vpop.permute.xlu1 %3215 }
 0x96a   : > { %v3221_v53 = vsel %vm1751_vm3, %v3216_v52, 0 }
 0x96c   : > { %v9339_v46 = vpop.eup %9338 }
 0x96d   : > { %v2866_v49 = vmul.f32 %v9339_v46, %v9331_v17  ;;  %v3214_v56 = vpop.permute.xlu1 %3213 }
 0x96e   : > { %8765 = vmatmul.mubr.msk.bf16.vlgmr.msra.gmra.mrb[56].mxu1 %vm1751_vm3, %v3164_v48 }
 0x96f   : > { %v2870_v50 = vpack.c.bf16 %v2866_v49, %v2866_v49  ;;  %8776 = vmatprep.mubr.msk.bf16.mxu1 %vm9557_vm2, %v9556_v40 }
 0x971   : > { %8747 = vmatmul.mubr.msk.bf16.vlgmr.msra.gmra.mrb[52].mxu0 %vm1985_vm6, %v2870_v50 }
 0x972   : > { %8757 = vmatpush3.bf16.xpose.msra.mxu0 %v3121_v51  ;;  %8758 = vmatprep.mubr.msk.bf16.mxu0 %vm9557_vm2, %v9556_v40 }
 0x973   : > { %8768 = vmatprep.subr.bf16.mxu0 %v9556_v40 }
 0x979   : > { %8759 = vmatmul.mubr.msk.bf16.vlgmr.msra.gmra.mrb[56].mxu0 %vm1751_vm3, %v3114_v45 }
 0x97a   : > { %8769 = vmatpush3.bf16.xpose.msra.mxu0 %v3221_v53  ;;  %8770 = vmatprep.mubr.msk.bf16.mxu0 %vm9557_vm2, %v9556_v40 }
 0x97b   : > { %8780 = vmatprep.subr.bf16.mxu0 %v9556_v40 }
 0x981   : > { %8771 = vmatmul.mubr.msk.bf16.vlgmr.msra.gmra.mrb[60].mxu0 %vm1751_vm3, %v3214_v56 }
 0x982   : > { %8782 = vmatprep.mubr.msk.bf16.mxu0 %vm9557_vm2, %v9556_v40 }
 0x9de   : > { %v10188_v57 = vpop.f32.mrb[44].mxu1 }
 0x9df   : > { %v8730_v58 = vpop.f32.mrb[45].mxu1 }
 0x9e0   : > { %v2916_v59 = vpop.f32.mrb[46].mxu1 }
 0x9e1   : > { %v8731_v61 = vpop.f32.mrb[47].mxu1 }
 0xa0f   : > { %v10190_v63 = vpop.f32.mrb[48].mxu0 }
 0xa10   : > { %v8736_v0 = vpop.f32.mrb[49].mxu0 }
 0xa11   : > { %v2964_v2 = vpop.f32.mrb[50].mxu0 }
 0xa12   : > { %v8737_v54 = vpop.f32.mrb[51].mxu0 }
 0xa13   : > { %v3009_v6 = vpop.f32.mrb[48].mxu1 }
 0xa14   : > { %v8742_v7 = vpop.f32.mrb[49].mxu1 }
 0xa15   : > { %v3012_v10 = vpop.f32.mrb[50].mxu1 }
 0xa16   : > { %v8743_v13 = vpop.f32.mrb[51].mxu1 }
 0xa1b   : > { %v3107_v15 = vpop.f32.mrb[52].mxu1 }
 0xa1c   : > { %v8754_v16 = vpop.f32.mrb[53].mxu1  ;;  %v3263_v17 = vsel %vm1936_vm5, %v3107_v15, -inf }
 0xa1d   : > { %3264 = vmax.xlane.f32.xlu0 %v3263_v17  ;;  %v3110_v18 = vpop.f32.mrb[54].mxu1 }
 0xa1e   : > { %v8755_v43 = vpop.f32.mrb[55].mxu1 }
 0xa41   : > { %v3207_v47 = vpop.f32.mrb[56].mxu1 }
 0xa42   : > { %v8766_v14 = vpop.f32.mrb[57].mxu1  ;;  %v3269_v20 = vsel %vm1936_vm5, %v3207_v47, -inf }
 0xa43   : > { %3270 = vmax.xlane.f32.xlu0 %v3269_v20  ;;  %v3210_v28 = vpop.f32.mrb[58].mxu1 }
 0xa44   : > { %v3057_v19 = vpop.f32.mrb[52].mxu0  ;;  %v8767_v21 = vpop.f32.mrb[59].mxu1 }
 0xa45   : > { %v8748_v9 = vpop.f32.mrb[53].mxu0 }
 0xa46   : > { %v3060_v12 = vpop.f32.mrb[54].mxu0 }
 0xa47   : > { %v8749_v29 = vpop.f32.mrb[55].mxu0 }
 0xa4c   : > { %v3157_v23 = vpop.f32.mrb[56].mxu0 }
 0xa4d   : > { %v8760_v24 = vpop.f32.mrb[57].mxu0  ;;  %v3266_v25 = vsel %vm1936_vm5, %v3157_v23, -inf }
 0xa4e   : > { %3267 = vmax.xlane.f32.xlu1 %v3266_v25  ;;  %v3160_v30 = vpop.f32.mrb[58].mxu0 }
 0xa4f   : > { %v8761_v34 = vpop.f32.mrb[59].mxu0 }
 0xa54   : > { %v3257_v35 = vpop.f32.mrb[60].mxu0 }
 0xa55   : > { %v8772_v60 = vpop.f32.mrb[61].mxu0  ;;  %v3272_v4 = vsel %vm1936_vm5, %v3257_v35, -inf }
 0xa56   : > { %v3260_v38 = vpop.f32.mrb[62].mxu0  ;;  %3273 = vmax.xlane.f32.xlu0 %v3272_v4 }
 0xa57   : > { %v8773_v39 = vpop.f32.mrb[63].mxu0  ;;  %v9254_v38 = vld [vmem:[%s11138_s3] sm:$0xff]  }
 0xa58   : > { %v9255_v39 = vld [vmem:[%s11138_s3 + $0x8] sm:$0xff]   ;;  %s11151_s3 = smov 8  }
 0xaaa   : > { %v3265_v41 = vpop.xlane.xlu0 %3264 }
 0xaab   : > { %v3275_v32 = vsub.f32 %v3107_v15, %v3265_v41 }
 0xaad   : > { %v3279_v42 = vmul.f32 1.442695, %v3275_v32 }
 0xaaf   : > { %9340 = vpow2.f32 %v3279_v42 }
 0xab9   : > { %v9341_v22 = vpop.eup %9340 }
 0xaba   : > { %v3287_v44 = vsel %vm1936_vm5, %v9341_v22, 0.0 }
 0xabb   : > { %3288 = vadd.xlane.f32.xlu0 %v3287_v44 }
 0xad0   : > { %v3271_v45 = vpop.xlane.xlu0 %3270 }
 0xad1   : > { %v3277_v46 = vsub.f32 %v3207_v47, %v3271_v45 }
 0xad3   : > { %v3283_v48 = vmul.f32 1.442695, %v3277_v46 }
 0xad5   : > { %9342 = vpow2.f32 %v3283_v48 }
 0xadb   : > { %v3268_v49 = vpop.xlane.xlu1 %3267 }
 0xadc   : > { %v3276_v50 = vsub.f32 %v3157_v23, %v3268_v49 }
 0xade   : > { %v3281_v51 = vmul.f32 1.442695, %v3276_v50 }
 0xadf   : > { %v9343_v52 = vpop.eup %9342 }
 0xae0   : > { %9344 = vpow2.f32 %v3281_v51  ;;  %v3293_v53 = vsel %vm1936_vm5, %v9343_v52, 0.0 }
 0xae1   : > { %3294 = vadd.xlane.f32.xlu0 %v3293_v53 }
 0xaea   : > { %v9345_v56 = vpop.eup %9344 }
 0xaeb   : > { %v3290_v58 = vsel %vm1936_vm5, %v9345_v56, 0.0 }
 0xaec   : > { %3291 = vadd.xlane.f32.xlu1 %v3290_v58 }
 0xaf7   : > { %3311 = vrot.lane.b32.xlu0 %v9930_v26, %s11111_s16  ;;  %v3274_v26 = vpop.xlane.xlu0 %3273 }
 0xaf8   : > { %v3278_v59 = vsub.f32 %v3257_v35, %v3274_v26 }
 0xafa   : > { %v3285_v61 = vmul.f32 1.442695, %v3278_v59 }
 0xafb   : > { %3507 = vrot.lane.b32.xlu0 %v10108_v62, %s11109_s23 }
 0xafc   : > { %9346 = vpow2.f32 %v3285_v61 }
 0xafd   : > { %3359 = vrot.lane.b32.xlu1 %v9933_v27, %s11111_s16 }
 0xaff   : > { %3511 = vrot.lane.b32.xlu0 %v10112_v8, %s11109_s23 }
 0xb01   : > { %3407 = vrot.lane.b32.xlu1 %v9986_v36, %s11111_s16 }
 0xb03   : > { %3523 = vrot.lane.b32.xlu0 %v10188_v57, %s11105_s5 }
 0xb06   : > { %v9347_v62 = vpop.eup %9346 }
 0xb07   : > { %3527 = vrot.lane.b32.xlu0 %v3009_v6, %s11105_s5  ;;  %v3296_v0 = vsel %vm1936_vm5, %v9347_v62, 0.0 }
 0xb25   : > { %3297 = vadd.xlane.f32.xlu1 %v3296_v0 }
 0xb36   : > { %3455 = vrot.lane.b32.xlu1 %v9988_v37, %s11111_s16  ;;  %s11147_s16 = sld [smem:[#allocation13_spill]] }
 0xb3a   : > { %3509 = vrot.lane.b32.xlu1 %v10110_v3, %s11109_s23 }
 0xb3e   : > { %3513 = vrot.lane.b32.xlu1 %v10116_v31, %s11109_s23 }
 0xb42   : > { %3525 = vrot.lane.b32.xlu1 %v10190_v63, %s11105_s5 }
 0xb46   : > { %3529 = vrot.lane.b32.xlu1 %v3057_v19, %s11105_s5  ;;  %s11107_s5 = smov 24  }
 0xb48   : > { %v3289_v27 = vpop.xlane.xlu0 %3288 }
 0xb49   : > { %9348 = vrcp.f32 %v3289_v27 }
 0xb53   : > { %v9349_v36 = vpop.eup %9348 }
 0xb54   : > { %v3303_v57 = vmul.f32 %v9349_v36, %v9341_v22 }
 0xb56   : > { %v3307_v54 = vpack.c.bf16 %v3303_v57, %v3303_v57 }
 0xb6e   : > { %v3295_v8 = vpop.xlane.xlu0 %3294 }
 0xb6f   : > { %9350 = vrcp.f32 %v3295_v8 }
 0xb72   : > { %v3312_v2 = vpop.permute.xlu0 %3311 }
 0xb73   : > { %v3317_v37 = vsel %vm1989_vm4, %v3312_v2, 0 }
 0xb74   : > { %8775 = vmatpush3.bf16.msra.mxu1 %v3317_v37 }
 0xb75   : > { %8786 = vmatprep.subr.bf16.mxu1 %v9556_v40 }
 0xb76   : > { %v3508_v44 = vpop.permute.xlu0 %3507 }
 0xb77   : > { %8777 = vmatmul.mubr.msk.bf16.vlgmr.msra.gmra.mrb[60].mxu1 %vm1985_vm6, %v3307_v54 }
 0xb78   : > { %8788 = vmatprep.mubr.msk.bf16.mxu1 %vm9557_vm2, %v9556_v40 }
 0xb79   : > { %v3292_v3 = vpop.xlane.xlu1 %3291  ;;  %v9351_v31 = vpop.eup %9350 }
 0xb7a   : > { %9352 = vrcp.f32 %v3292_v3  ;;  %v3305_v7 = vmul.f32 %v9351_v31, %v9343_v52  ;;  %v3512_v45 = vpop.permute.xlu0 %3511  ;;  %v3551_v52 = vsel %vm1751_vm3, %v10028_v1, %v3508_v44 }
 0xb7b   : > { %v3553_v59 = vsel %vm1751_vm3, %v10032_v11, %v3512_v45 }
 0xb7c   : > { %v3309_v16 = vpack.c.bf16 %v3305_v7, %v3305_v7 }
 0xb7d   : > { %v3360_v63 = vpop.permute.xlu1 %3359 }
 0xb7e   : > { %v3365_v6 = vsel %vm1989_vm4, %v3360_v63, 0  ;;  %v3524_v46 = vpop.permute.xlu0 %3523 }
 0xb7f   : > { %8781 = vmatpush3.bf16.msra.mxu0 %v3365_v6  ;;  %v3556_v53 = vsel %vm3555_vm7, %v3551_v52, %v3524_v46 }
 0xb80   : > { %8792 = vmatprep.subr.bf16.mxu0 %v9556_v40 }
 0xb81   : > { %v3408_v10 = vpop.permute.xlu1 %3407 }
 0xb82   : > { %v3413_v13 = vsel %vm1989_vm4, %v3408_v10, 0  ;;  %v3528_v49 = vpop.permute.xlu0 %3527 }
 0xb83   : > { %8787 = vmatpush3.bf16.msra.mxu1 %v3413_v13 }
 0xb84   : > { %v9353_v15 = vpop.eup %9352  ;;  %8798 = vmatprep.subr.bf16.mxu1 %v9254_v38 }
 0xb85   : > { %v3304_v17 = vmul.f32 %v9353_v15, %v9345_v56 }
 0xb86   : > { %8789 = vmatmul.mubr.msk.bf16.vlgmr.msra.gmra.mrb[64].mxu1 %vm1985_vm6, %v3309_v16 }
 0xb87   : > { %v3308_v18 = vpack.c.bf16 %v3304_v17, %v3304_v17  ;;  %8799 = vmatpush3.bf16.msra.mxu1 %v9254_v38 }
 0xb88   : > { %8800 = vmatprep.subr.bf16.mxu1 %v9255_v39 }
 0xb89   : > { %8783 = vmatmul.mubr.msk.bf16.vlgmr.msra.gmra.mrb[64].mxu0 %vm1985_vm6, %v3308_v18 }
 0xb8a   : > { %8794 = vmatprep.mubr.msk.bf16.mxu0 %vm9557_vm2, %v9556_v40 }
 0xb8b   : > { %8801 = vmatpush3.bf16.msra.mxu1 %v9255_v39 }
 0xbb2   : > { %v3298_v43 = vpop.xlane.xlu1 %3297 }
 0xbb3   : > { %9354 = vrcp.f32 %v3298_v43 }
 0xbb6   : > { %v3456_v47 = vpop.permute.xlu1 %3455 }
 0xbb7   : > { %v3461_v14 = vsel %vm1989_vm4, %v3456_v47, 0 }
 0xbb8   : > { %8793 = vmatpush3.bf16.msra.mxu0 %v3461_v14 }
 0xbba   : > { %v3510_v48 = vpop.permute.xlu1 %3509 }
 0xbbb   : > { %v3552_v1 = vsel %vm1751_vm3, %v10030_v5, %v3510_v48 }
 0xbbd   : > { %v9355_v20 = vpop.eup %9354 }
 0xbbe   : > { %v3306_v28 = vmul.f32 %v9355_v20, %v9347_v62  ;;  %v3514_v50 = vpop.permute.xlu1 %3513  ;;  %v3558_v62 = vsel %vm3555_vm7, %v3553_v59, %v3528_v49 }
 0xbc0   : > { %v3310_v19 = vpack.c.bf16 %v3306_v28, %v3306_v28 }
 0xbc2   : > { %8795 = vmatmul.mubr.msk.bf16.vlgmr.msra.gmra.mrb[68].mxu0 %vm1985_vm6, %v3310_v19  ;;  %v3526_v56 = vpop.permute.xlu1 %3525  ;;  %v3554_v19 = vsel %vm1751_vm3, %v10036_v33, %v3514_v50 }
 0xbc3   : > { %v3557_v2 = vsel %vm3555_vm7, %v3552_v1, %v3526_v56 }
 0xbc6   : > { %v3530_v61 = vpop.permute.xlu1 %3529 }
 0xc4a   : > { %v3353_v21 = vpop.f32.mrb[60].mxu1 }
 0xc4b   : > { %3539 = vrot.lane.b32.xlu0 %v3353_v21, %s11107_s5  ;;  %v8778_v9 = vpop.f32.mrb[61].mxu1  ;;  %v3559_v21 = vsel %vm3555_vm7, %v3554_v19, %v3530_v61 }
 0xc4c   : > { %v3356_v12 = vpop.f32.mrb[62].mxu1 }
 0xc4d   : > { %v8779_v29 = vpop.f32.mrb[63].mxu1 }
 0xc59   : > { %v3449_v23 = vpop.f32.mrb[64].mxu1 }
 0xc5a   : > { %3543 = vrot.lane.b32.xlu0 %v3449_v23, %s11107_s5  ;;  %v8790_v24 = vpop.f32.mrb[65].mxu1 }
 0xc5b   : > { %v3452_v25 = vpop.f32.mrb[66].mxu1 }
 0xc5c   : > { %v3401_v30 = vpop.f32.mrb[64].mxu0  ;;  %v8791_v34 = vpop.f32.mrb[67].mxu1 }
 0xc5d   : > { %v8784_v35 = vpop.f32.mrb[65].mxu0  ;;  %3541 = vrot.lane.b32.xlu1 %v3401_v30, %s11107_s5 }
 0xc5e   : > { %v3404_v60 = vpop.f32.mrb[66].mxu0 }
 0xc5f   : > { %v8785_v4 = vpop.f32.mrb[67].mxu0 }
 0xc95   : > { %v3497_v41 = vpop.f32.mrb[68].mxu0 }
 0xc96   : > { %3545 = vrot.lane.b32.xlu1 %v3497_v41, %s11107_s5  ;;  %v8796_v32 = vpop.f32.mrb[69].mxu0  ;;  %s8198_s5 = sshll.u32 %s11171_s2, 2 }
 0xc97   : > { %v3500_v42 = vpop.f32.mrb[70].mxu0  ;;  %s10293_s23 = scalar_lea.vmem %s11143_s9, %s8198_s5  ;;  %s11145_s5 = sld [smem:[#allocation10_spill]] }
 0xc98   : > { %v8797_v22 = vpop.f32.mrb[71].mxu0  ;;  %s11165_s9 = sand.u32 1, %s9516_s10  }
 0xcbd   : > { %v3540_v51 = vpop.permute.xlu0 %3539 }
 0xcbe   : > { %v3561_v58 = vsel %vm3560_vm8, %v3556_v53, %v3540_v51 }
 0xcbf   : > { %v3576_v26 = vrot.slane %v3561_v58, %v9806_v55  ;;  %v3569_v27 = vcombine.high %v3561_v58, %v3561_v58 }
 0xcc1   : > { %v3584_v36 = vcombine.high %v3576_v26, %v3576_v26  ;;  %v3583_v11 = vrot.slane %v3569_v27, %v9806_v55 }
 0xcc3   : > { %v3633_v31 = vcombine.low %v3576_v26, %v3584_v36 }
 0xcc5   : > { %v3641_v5 = vrot.slane %v3633_v31, %v9806_v55 }
 0xccc   : > { %v3544_v0 = vpop.permute.xlu0 %3543 }
 0xccd   : > { %v3563_v8 = vsel %vm3560_vm8, %v3558_v62, %v3544_v0 }
 0xcce   : > { %v3608_v57 = vrot.slane %v3563_v8, %v9806_v55  ;;  %v3601_v28 = vcombine.high %v3563_v8, %v3563_v8 }
 0xccf   : > { %v3542_v37 = vpop.permute.xlu1 %3541 }
 0xcd0   : > { %v3616_v54 = vcombine.high %v3608_v57, %v3608_v57  ;;  %v3562_v3 = vsel %vm3560_vm8, %v3557_v2, %v3542_v37  ;;  %v3615_v29 = vrot.slane %v3601_v28, %v9806_v55 }
 0xcd1   : > { %v3585_v63 = vcombine.high %v3562_v3, %v3562_v3  ;;  %v3592_v6 = vrot.slane %v3562_v3, %v9806_v55 }
 0xcd2   : > { %v3651_v7 = vcombine.low %v3608_v57, %v3616_v54 }
 0xcd3   : > { %v3599_v10 = vrot.slane %v3585_v63, %v9806_v55  ;;  %v3600_v13 = vcombine.high %v3592_v6, %v3592_v6  ;;  %v3634_v15 = vcombine.low %v3583_v11, %v3592_v6  ;;  %v9454_v63 = vld [vmem:[%s9778_s22] sm:$0x3f] }
 0xcd4   : > { %v3665_v18 = vrot.slane %v3651_v7, %v9806_v55 }
 0xcd5   : > { %v3648_v16 = vrot.slane %v3634_v15, %v9806_v55  ;;  %v3650_v17 = vcombine.low %v3600_v13, %v3599_v10  ;;  %v9455_v13 = vld [vmem:[%s9778_s22 + $0x8] sm:$0x3f] }
 0xcd7   : > { %v3649_v43 = vcombine.low %v3641_v5, %v3648_v16  ;;  %v3658_v47 = vrot.slane %v3650_v17, %v9806_v55  ;;  %v4383_v17 = vld [vmem:[%s10293_s23 + $0x4] sm:$0xf] }
 0xcd8   : > { %v4430_v19 = vsel %vm4426_vm9, %v4383_v17, 0.0 }
 0xcd9   : > { %v3666_v14 = vcombine.low %v3658_v47, %v3665_v18 }
 0xcdb   : > { %v3687_v20 = vpack.c.bf16 %v3666_v14, %v3649_v43  ;;  %v9456_v43 = vld [vmem:[%s9778_s22 + $0x10] sm:$0x3f] }
 0xcdd   : > { %8802 = vmatprep.mubr.msk.bf16.mxu1 %vm1195_vm1, %v3687_v20  ;;  %v9457_v20 = vld [vmem:[%s9778_s22 + $0x18] sm:$0x3f]  ;;  %s11146_s22 = sld [smem:[#allocation12_spill]] }
 0xd08   : > { %v3546_v9 = vpop.permute.xlu1 %3545 }
 0xd09   : > { %v3564_v12 = vsel %vm3560_vm8, %v3559_v21, %v3546_v9  ;;  %v4385_v21 = vld [vmem:[%s10293_s23 + $0xc] sm:$0xf]  ;;  %v4382_v9 = vld [vmem:[%s10293_s23] sm:$0xf] }
 0xd0a   : > { %v3617_v23 = vcombine.high %v3564_v12, %v3564_v12  ;;  %v3624_v24 = vrot.slane %v3564_v12, %v9806_v55 }
 0xd0c   : > { %v3631_v25 = vrot.slane %v3617_v23, %v9806_v55  ;;  %v3632_v30 = vcombine.high %v3624_v24, %v3624_v24  ;;  %v3667_v34 = vcombine.low %v3615_v29, %v3624_v24  ;;  %v4436_v29 = vsel %vm4426_vm9, %v4385_v21, 0.0  ;;  %v4384_v24 = vld [vmem:[%s10293_s23 + $0x8] sm:$0xf] }
 0xd0d   : > { %v4427_v23 = vsel %vm4426_vm9, %v4382_v9, 0.0 }
 0xd0e   : > { %v3668_v35 = vcombine.low %v3632_v30, %v3631_v25  ;;  %v3675_v60 = vrot.slane %v3667_v34, %v9806_v55  ;;  %v4433_v25 = vsel %vm4426_vm9, %v4384_v24, 0.0 }
 0xd10   : > { %v3682_v4 = vrot.slane %v3668_v35, %v9806_v55 }
 0xd12   : > { %v3683_v33 = vcombine.low %v3675_v60, %v3682_v4 }
 0xd14   : > { %v3688_v38 = vpack.c.bf16 %v3683_v33, %v3683_v33 }
 0xd16   : > { %8803 = vmatmul.mubr.msk.bf16.vlgmr.msra.gmra.mrb[68].mxu1 %vm1195_vm1, %v3688_v38 }
 0xde9   : > { %v8804_v39 = vpop.f32.mrb[68].mxu1 }
 0xdea   : > { %v3792_v41 = vcombine.high %v8804_v39, %v8804_v39  ;;  %v3799_v32 = vrot.slane %v8804_v39, %v9806_v55  ;;  %v3741_v42 = vpop.f32.mrb[69].mxu1 }
 0xdeb   : > { %v3758_v22 = vcombine.high %v3741_v42, %v3741_v42  ;;  %v3765_v44 = vrot.slane %v3741_v42, %v9806_v55  ;;  %v8805_v45 = vpop.f32.mrb[70].mxu1 }
 0xdec   : > { %v3806_v46 = vrot.slane %v3792_v41, %v9806_v55  ;;  %v3807_v48 = vcombine.high %v3799_v32, %v3799_v32  ;;  %v3744_v49 = vpop.f32.mrb[71].mxu1  ;;  %v3855_v11 = vrot.slane %v3799_v32, %v9806_v55 }
 0xded   : > { %v3772_v50 = vrot.slane %v3758_v22, %v9806_v55  ;;  %v3773_v51 = vcombine.high %v3765_v44, %v3765_v44  ;;  %v3775_v52 = vcombine.high %v3744_v49, %v3744_v49  ;;  %v3782_v53 = vrot.slane %v3744_v49, %v9806_v55 }
 0xdee   : > { %v3808_v56 = vcombine.high %v3806_v46, %v3806_v46  ;;  %v3857_v58 = vcombine.low %v3807_v48, %v3806_v46 }
 0xdef   : > { %v3809_v26 = vcombine.low %v3765_v44, %v3773_v51  ;;  %v3774_v59 = vcombine.high %v3772_v50, %v3772_v50  ;;  %v3789_v61 = vrot.slane %v3775_v52, %v9806_v55  ;;  %v3790_v62 = vcombine.high %v3782_v53, %v3782_v53 }
 0xdf0   : > { %v3823_v27 = vrot.slane %v3772_v50, %v9806_v55  ;;  %v3864_v1 = vrot.slane %v3857_v58, %v9806_v55  ;;  %v3871_v57 = vrot.slane %v3808_v56, %v9806_v55 }
 0xdf1   : > { %v3816_v0 = vrot.slane %v3809_v26, %v9806_v55  ;;  %v3791_v36 = vcombine.high %v3789_v61, %v3789_v61  ;;  %v3825_v8 = vcombine.low %v3774_v59, %v3782_v53  ;;  %v3839_v37 = vrot.slane %v3790_v62, %v9806_v55 }
 0xdf2   : > { %v3872_v16 = vcombine.low %v3864_v1, %v3871_v57 }
 0xdf3   : > { %v3832_v2 = vrot.slane %v3825_v8, %v9806_v55  ;;  %v3841_v54 = vcombine.low %v3789_v61, %v3791_v36  ;;  %v3824_v3 = vcombine.low %v3816_v0, %v3823_v27 }
 0xdf4   : > { %v10309_v28 = vadd.f32 %v9457_v20, %v3872_v16  ;;  %v9266_v16 = vld [vmem:[%s9631_s24 + $0x10] sm:$0xff]  }
 0xdf5   : > { %v3848_v31 = vrot.slane %v3841_v54, %v9806_v55  ;;  %v10290_v6 = vadd.f32 %v9454_v63, %v3824_v3  ;;  %v3840_v7 = vcombine.low %v3832_v2, %v3839_v37 }
 0xdf6   : > { %v3890_v12 = vsel %vm985_vm0, %v10309_v28, 0.0 }
 0xdf7   : > { %v3881_v10 = vsel %vm985_vm0, %v10290_v6, 0.0  ;;  %v10298_v15 = vadd.f32 %v9455_v13, %v3840_v7  ;;  %v3856_v5 = vcombine.low %v3848_v31, %v3855_v11  ;;  %v9256_v7 = vld [vmem:[%s9626_s19] sm:$0xff]  }
 0xdf8   : > { %3882 = vadd.xlane.f32.xlu0 %v3881_v10  ;;  %v9257_v10 = vld [vmem:[%s9626_s19 + $0x8] sm:$0xff]   ;;  %8806 = vmatprep.subr.bf16.mxu0 %v9256_v7  ;;  %v9264_v13 = vld [vmem:[%s9631_s24] sm:$0xff]  }
 0xdf9   : > { %v3884_v18 = vsel %vm985_vm0, %v10298_v15, 0.0  ;;  %v10304_v47 = vadd.f32 %v9456_v43, %v3856_v5  ;;  %8807 = vmatpush3.bf16.msra.mxu0 %v9256_v7  ;;  %v9265_v5 = vld [vmem:[%s9631_s24 + $0x8] sm:$0xff]   ;;  %8814 = vmatprep.subr.bf16.mxu1 %v9264_v13 }
 0xdfa   : > { %3885 = vadd.xlane.f32.xlu1 %v3884_v18  ;;  %8808 = vmatprep.subr.bf16.mxu0 %v9257_v10 }
 0xdfb   : > { %v3887_v14 = vsel %vm985_vm0, %v10304_v47, 0.0  ;;  %8815 = vmatpush3.bf16.msra.mxu1 %v9264_v13 }
 0xdfc   : > { %3888 = vadd.xlane.f32.xlu0 %v3887_v14  ;;  %8816 = vmatprep.subr.bf16.mxu1 %v9265_v5 }
 0xdfd   : > { %8809 = vmatpush3.bf16.msra.mxu0 %v9257_v10 }
 0xdfe   : > { %4431 = vadd.xlane.f32.xlu1 %v4430_v19  ;;  %8834 = vmatprep.subr.bf16.mxu0 %v9556_v40 }
 0xdff   : > { %8817 = vmatpush3.bf16.msra.mxu1 %v9265_v5 }
 0xe00   : > { %3891 = vadd.xlane.f32.xlu0 %v3890_v12  ;;  %8818 = vmatprep.subr.bf16.mxu1 %v9266_v16 }
 0xe02   : > { %4437 = vadd.xlane.f32.xlu1 %v4436_v29 }
 0xe03   : > { %8819 = vmatpush3.bf16.msra.mxu1 %v9266_v16 }
 0xe04   : > { %4428 = vadd.xlane.f32.xlu0 %v4427_v23 }
 0xe08   : > { %4434 = vadd.xlane.f32.xlu0 %v4433_v25 }
 0xe85   : > { %v3883_v30 = vpop.xlane.xlu0 %3882 }
 0xe86   : > { %v3893_v34 = vmul.f32 0.03125, %v3883_v30 }
 0xe87   : > { %v3886_v35 = vpop.xlane.xlu1 %3885 }
 0xe88   : > { %v10321_v60 = vsub.f32 %v10290_v6, %v3893_v34  ;;  %v3894_v4 = vmul.f32 0.03125, %v3886_v35 }
 0xe89   : > { %v3889_v33 = vpop.xlane.xlu0 %3888 }
 0xe8a   : > { %v10324_v38 = vsub.f32 %v10298_v15, %v3894_v4  ;;  %v3895_v39 = vmul.f32 0.03125, %v3889_v33  ;;  %v3901_v41 = vmul.f32 %v10321_v60, %v10321_v60 }
 0xe8b   : > { %v4432_v32 = vpop.xlane.xlu1 %4431 }
 0xe8c   : > { %v10329_v42 = vsub.f32 %v10304_v47, %v3895_v39  ;;  %v3905_v22 = vsel %vm985_vm0, %v3901_v41, 0.0  ;;  %v3902_v44 = vmul.f32 %v10324_v38, %v10324_v38  ;;  %v4440_v45 = vmul.f32 0.03125, %v4432_v32  ;;  %v8251_v39 = vld [vmem:[%s11144_s8] ss:$0 sm:$0xff]  ;;  %s11152_s8 = smov 16  }
 0xe8d   : > { %3906 = vadd.xlane.f32.xlu0 %v3905_v22  ;;  %v3892_v46 = vpop.xlane.xlu0 %3891 }
 0xe8e   : > { %v3896_v48 = vmul.f32 0.03125, %v3892_v46  ;;  %v3908_v49 = vsel %vm985_vm0, %v3902_v44, 0.0  ;;  %v10335_v50 = vsub.f32 %v4383_v17, %v4440_v45  ;;  %v3903_v51 = vmul.f32 %v10329_v42, %v10329_v42  ;;  %v9267_v17 = vld [vmem:[%s9631_s24 + $0x18] sm:$0xff]  }
 0xe8f   : > { %3909 = vadd.xlane.f32.xlu1 %v3908_v49  ;;  %v4438_v52 = vpop.xlane.xlu1 %4437  ;;  %8820 = vmatprep.subr.bf16.mxu1 %v9267_v17 }
 0xe90   : > { %v10340_v53 = vsub.f32 %v10309_v28, %v3896_v48  ;;  %v3911_v56 = vsel %vm985_vm0, %v3903_v51, 0.0  ;;  %v4442_v58 = vmul.f32 0.03125, %v4438_v52  ;;  %v4448_v0 = vmul.f32 %v10335_v50, %v10335_v50  ;;  %8821 = vmatpush3.bf16.msra.mxu1 %v9267_v17  ;;  %v8252_v48 = vld [vmem:[%s9621_s14] ss:$0 sm:$0xff] }
 0xe91   : > { %3912 = vadd.xlane.f32.xlu0 %v3911_v56  ;;  %v4429_v26 = vpop.xlane.xlu0 %4428 }
 0xe92   : > { %v4439_v59 = vmul.f32 0.03125, %v4429_v26  ;;  %v10343_v61 = vsub.f32 %v4385_v21, %v4442_v58  ;;  %v3904_v62 = vmul.f32 %v10340_v53, %v10340_v53  ;;  %v4454_v57 = vsel %vm4426_vm9, %v4448_v0, 0.0 }
 0xe94   : > { %v10349_v27 = vsub.f32 %v4382_v9, %v4439_v59  ;;  %v3914_v36 = vsel %vm985_vm0, %v3904_v62, 0.0  ;;  %v4450_v37 = vmul.f32 %v10343_v61, %v10343_v61 }
 0xe95   : > { %3915 = vadd.xlane.f32.xlu1 %v3914_v36  ;;  %v4435_v8 = vpop.xlane.xlu0 %4434 }
 0xe96   : > { %v4441_v1 = vmul.f32 0.03125, %v4435_v8  ;;  %v4447_v2 = vmul.f32 %v10349_v27, %v10349_v27  ;;  %v4460_v11 = vsel %vm4426_vm9, %v4450_v37, 0.0 }
 0xe98   : > { %v10357_v54 = vsub.f32 %v4384_v24, %v4441_v1  ;;  %v4451_v3 = vsel %vm4426_vm9, %v4447_v2, 0.0 }
 0xe99   : > { %4455 = vadd.xlane.f32.xlu1 %v4454_v57  ;;  %4452 = vadd.xlane.f32.xlu0 %v4451_v3 }
 0xe9a   : > { %v4449_v31 = vmul.f32 %v10357_v54, %v10357_v54 }
 0xe9c   : > { %v4457_v63 = vsel %vm4426_vm9, %v4449_v31, 0.0 }
 0xe9d   : > { %4461 = vadd.xlane.f32.xlu1 %v4460_v11  ;;  %4458 = vadd.xlane.f32.xlu0 %v4457_v63 }
 0xf1a   : > { %v3907_v18 = vpop.xlane.xlu0 %3906 }
 0xf1b   : > { %v3917_v43 = vmul.f32 0.03125, %v3907_v18 }
 0xf1c   : > { %v3910_v14 = vpop.xlane.xlu1 %3909 }
 0xf1d   : > { %v3921_v20 = vadd.f32 1e-06, %v3917_v43  ;;  %v3918_v19 = vmul.f32 0.03125, %v3910_v14 }
 0xf1e   : > { %v3913_v21 = vpop.xlane.xlu0 %3912 }
 0xf1f   : > { %9356 = vrsqrt.f32 %v3921_v20  ;;  %v3922_v9 = vadd.f32 1e-06, %v3918_v19  ;;  %v3919_v12 = vmul.f32 0.03125, %v3913_v21 }
 0xf21   : > { %9358 = vrsqrt.f32 %v3922_v9  ;;  %v3923_v29 = vadd.f32 1e-06, %v3919_v12 }
 0xf22   : > { %v3916_v23 = vpop.xlane.xlu1 %3915 }
 0xf23   : > { %9360 = vrsqrt.f32 %v3923_v29  ;;  %v3920_v24 = vmul.f32 0.03125, %v3916_v23 }
 0xf25   : > { %v3924_v25 = vadd.f32 1e-06, %v3920_v24 }
 0xf26   : > { %v4456_v30 = vpop.xlane.xlu1 %4455  ;;  %v4453_v34 = vpop.xlane.xlu0 %4452 }
 0xf27   : > { %9362 = vrsqrt.f32 %v3924_v25  ;;  %v4464_v35 = vmul.f32 0.03125, %v4456_v30  ;;  %v4463_v4 = vmul.f32 0.03125, %v4453_v34 }
 0xf29   : > { %v9357_v33 = vpop.eup %9356  ;;  %v4468_v41 = vadd.f32 1e-06, %v4464_v35  ;;  %v4467_v22 = vadd.f32 1e-06, %v4463_v4 }
 0xf2a   : > { %v3929_v32 = vmul.f32 %v9357_v33, %v10321_v60  ;;  %v4462_v44 = vpop.xlane.xlu1 %4461  ;;  %v4459_v45 = vpop.xlane.xlu0 %4458 }
 0xf2b   : > { %v9359_v46 = vpop.eup %9358  ;;  %v4466_v49 = vmul.f32 0.03125, %v4462_v44  ;;  %v4465_v51 = vmul.f32 0.03125, %v4459_v45  ;;  %9364 = vrsqrt.f32 %v4468_v41 }
 0xf2c   : > { %v3939_v52 = vmul.f32 %v8251_v39, %v3929_v32  ;;  %v3930_v56 = vmul.f32 %v9359_v46, %v10324_v38  ;;  %9366 = vrsqrt.f32 %v4467_v22  ;;  %v8265_v22 = vld [vmem:[%s9636_s30] ss:$0 sm:$0xff] }
 0xf2d   : > { %v9361_v58 = vpop.eup %9360  ;;  %v4470_v26 = vadd.f32 1e-06, %v4466_v49  ;;  %v4469_v59 = vadd.f32 1e-06, %v4465_v51 }
 0xf2e   : > { %v3949_v62 = vadd.f32 %v8252_v48, %v3939_v52  ;;  %v3940_v0 = vmul.f32 %v8251_v39, %v3930_v56  ;;  %v3931_v36 = vmul.f32 %v9361_v58, %v10329_v42 }
 0xf2f   : > { %9368 = vrsqrt.f32 %v4470_v26  ;;  %v9258_v26 = vld [vmem:[%s11137_s12] sm:$0xff]  }
 0xf30   : > { %v3950_v60 = vadd.f32 %v8252_v48, %v3940_v0  ;;  %v3941_v8 = vmul.f32 %v8251_v39, %v3931_v36  ;;  %9370 = vrsqrt.f32 %v4469_v59  ;;  %v3957_v1 = vcombine.high %v3949_v62, %v3949_v62  ;;  %v8266_v59 = vld [vmem:[%s11145_s5] ss:$0 sm:$0xff]  ;;  %s11148_s5 = smov 120  }
 0xf31   : > { %v9363_v57 = vpop.eup %9362  ;;  %v3964_v2 = vrot.slane %v3949_v62, %v9806_v55 }
 0xf32   : > { %v3951_v37 = vadd.f32 %v8252_v48, %v3941_v8  ;;  %v3932_v38 = vmul.f32 %v9363_v57, %v10340_v53  ;;  %v3971_v3 = vrot.slane %v3957_v1, %v9806_v55  ;;  %v3973_v11 = vcombine.high %v3950_v60, %v3950_v60  ;;  %v9259_v8 = vld [vmem:[%s11137_s12 + $0x8] sm:$0xff]   ;;  %s11057_s12 = scalar_lea.sflag [#allocation3], %s11165_s9 }
 0xf33   : > { %v3972_v31 = vcombine.high %v3964_v2, %v3964_v2  ;;  %v3980_v63 = vrot.slane %v3950_v60, %v9806_v55 }
 0xf34   : > { %v3942_v7 = vmul.f32 %v8251_v39, %v3932_v38  ;;  %v3987_v42 = vrot.slane %v3973_v11, %v9806_v55  ;;  %v3996_v10 = vrot.slane %v3951_v37, %v9806_v55  ;;  %v3989_v13 = vcombine.high %v3951_v37, %v3951_v37  ;;  %v9261_v38 = vld [vmem:[%s11146_s22 + $0x8] sm:$0xff]  }
 0xf35   : > { %v3988_v5 = vcombine.high %v3980_v63, %v3980_v63  ;;  %v4021_v16 = vcombine.low %v3964_v2, %v3972_v31  ;;  %v4022_v17 = vcombine.low %v3971_v3, %v3980_v63  ;;  %v9365_v14 = vpop.eup %9364  ;;  %v9260_v2 = vld [vmem:[%s11146_s22] sm:$0xff]   ;;  %v9263_v11 = vld [vmem:[%s11147_s16 + $0x8] sm:$0xff]  }
 0xf36   : > { %v3952_v18 = vadd.f32 %v8252_v48, %v3942_v7  ;;  %v4004_v43 = vcombine.high %v3996_v10, %v3996_v10  ;;  %v9367_v19 = vpop.eup %9366  ;;  %v4003_v25 = vrot.slane %v3989_v13, %v9806_v55  ;;  %v4476_v39 = vmul.f32 %v9365_v14, %v10335_v50  ;;  %v9262_v3 = vld [vmem:[%s11147_s16] sm:$0xff]   ;;  %v9269_v63 = vld [vmem:[%s9631_s24 + $0x28] sm:$0xff]   ;;  %v9270_v7 = vld [vmem:[%s9631_s24 + $0x30] sm:$0xff]  }
 0xf37   : > { %v4029_v53 = vrot.slane %v4021_v16, %v9806_v55  ;;  %v4038_v20 = vcombine.low %v3988_v5, %v3987_v42  ;;  %v4036_v9 = vrot.slane %v4022_v17, %v9806_v55  ;;  %v4475_v44 = vmul.f32 %v9367_v19, %v10349_v27  ;;  %v9268_v31 = vld [vmem:[%s9631_s24 + $0x20] sm:$0xff]   ;;  %v9271_v42 = vld [vmem:[%s9631_s24 + $0x38] sm:$0xff]  }
 0xf38   : > { %v4005_v21 = vcombine.high %v3952_v18, %v3952_v18  ;;  %v4039_v12 = vcombine.low %v3996_v10, %v4004_v43  ;;  %v4012_v29 = vrot.slane %v3952_v18, %v9806_v55  ;;  %v4486_v50 = vmul.f32 %v8265_v22, %v4476_v39  ;;  %8822 = vmatprep.subr.bf16.mxu1 %v9268_v31 }
 0xf39   : > { %v9369_v23 = vpop.eup %9368  ;;  %v4046_v24 = vrot.slane %v4038_v20, %v9806_v55  ;;  %v4037_v45 = vcombine.low %v4029_v53, %v4036_v9  ;;  %v4485_v58 = vmul.f32 %v8265_v22, %v4475_v44  ;;  %8823 = vmatpush3.bf16.msra.mxu1 %v9268_v31 }
 0xf3a   : > { %v9371_v30 = vpop.eup %9370  ;;  %v4478_v34 = vmul.f32 %v9369_v23, %v10343_v61  ;;  %v4053_v35 = vrot.slane %v4039_v12, %v9806_v55  ;;  %v4019_v4 = vrot.slane %v4005_v21, %v9806_v55  ;;  %v4020_v33 = vcombine.high %v4012_v29, %v4012_v29  ;;  %8824 = vmatprep.subr.bf16.mxu1 %v9269_v63 }
 0xf3b   : > { %v4477_v41 = vmul.f32 %v9371_v30, %v10357_v54  ;;  %v4055_v32 = vcombine.low %v4003_v25, %v4012_v29  ;;  %v4495_v36 = vadd.f32 %v8266_v59, %v4485_v58  ;;  %v4496_v60 = vadd.f32 %v8266_v59, %v4486_v50 }
 0xf3c   : > { %v4054_v46 = vcombine.low %v4046_v24, %v4053_v35  ;;  %v4056_v48 = vcombine.low %v4020_v33, %v4019_v4  ;;  %v4488_v49 = vmul.f32 %v8265_v22, %v4478_v34 }
 0xf3d   : > { %v4487_v61 = vmul.f32 %v8265_v22, %v4477_v41  ;;  %v4063_v52 = vrot.slane %v4055_v32, %v9806_v55  ;;  %v4503_v57 = vcombine.low %v4495_v36, %v4496_v60  ;;  %8825 = vmatpush3.bf16.msra.mxu1 %v9269_v63 }
 0xf3e   : > { %v4075_v51 = vpack.c.bf16 %v4054_v46, %v4037_v45  ;;  %v4070_v56 = vrot.slane %v4056_v48, %v9806_v55  ;;  %v4498_v0 = vadd.f32 %v8266_v59, %v4488_v49  ;;  %8826 = vmatprep.subr.bf16.mxu1 %v9270_v7 }
 0xf3f   : > { %v4497_v62 = vadd.f32 %v8266_v59, %v4487_v61 }
 0xf40   : > { %8810 = vmatprep.mubr.msk.bf16.mxu0 %vm1195_vm1, %v4075_v51  ;;  %v4071_v54 = vcombine.low %v4063_v52, %v4070_v56 }
 0xf41   : > { %v4504_v1 = vcombine.low %v4497_v62, %v4498_v0  ;;  %8827 = vmatpush3.bf16.msra.mxu1 %v9270_v7 }
 0xf42   : > { %v4076_v27 = vpack.c.bf16 %v4071_v54, %v4071_v54  ;;  %8828 = vmatprep.subr.bf16.mxu1 %v9271_v42 }
 0xf43   : > { %v4507_v37 = vpack.c.bf16 %v4504_v1, %v4503_v57 }
 0xf44   : > { %8811 = vmatmul.mubr.msk.bf16.vlgmr.msra.gmra.mrb[72].mxu0 %vm1195_vm1, %v4076_v27 }
 0xf45   : > { %8835 = vmatpush3.bf16.msra.mxu0 %v9258_v26  ;;  %8838 = vmatprep.mubr.msk.bf16.mxu0 %vm9557_vm2, %v9556_v40 }
 0xf46   : > { %8836 = vmatprep.subr.bf16.mxu0 %v9556_v40  ;;  %8829 = vmatpush3.bf16.msra.mxu1 %v9271_v42 }
 0xf47   : > { %8864 = vmatprep.subr.bf16.mxu1 %v9556_v40 }
 0xf49   : > { %8837 = vmatpush3.bf16.msra.mxu0 %v9259_v8 }
 0xf4a   : > { %8842 = vmatprep.subr.bf16.mxu0 %v9556_v40 }
 0xf4c   : > { %8839 = vmatmul.mubr.msk.bf16.vlgmr.msra.gmra.mrb[76].mxu0 %vm1195_vm1, %v4507_v37 }
 0xf4d   : > { %8843 = vmatpush3.bf16.msra.mxu0 %v9260_v2  ;;  %8846 = vmatprep.mubr.msk.bf16.mxu0 %vm9557_vm2, %v9556_v40 }
 0xf4e   : > { %8844 = vmatprep.subr.bf16.mxu0 %v9556_v40 }
 0xf51   : > { %8845 = vmatpush3.bf16.msra.mxu0 %v9261_v38 }
 0xf52   : > { %8850 = vmatprep.subr.bf16.mxu0 %v9556_v40 }
 0xf54   : > { %8847 = vmatmul.mubr.msk.bf16.vlgmr.msra.gmra.mrb[80].mxu0 %vm1195_vm1, %v4507_v37 }
 0xf55   : > { %8851 = vmatpush3.bf16.msra.mxu0 %v9262_v3  ;;  %8854 = vmatprep.mubr.msk.bf16.mxu0 %vm9557_vm2, %v9556_v40 }
 0xf56   : > { %8852 = vmatprep.subr.bf16.mxu0 %v9556_v40 }
 0xf59   : > { %8853 = vmatpush3.bf16.msra.mxu0 %v9263_v11 }
 0xf5a   : > { %8858 = vmatprep.subr.bf16.mxu0 %v9556_v40 }
 0xf5c   : > { %8855 = vmatmul.mubr.msk.bf16.vlgmr.msra.gmra.mrb[84].mxu0 %vm1195_vm1, %v4507_v37 }
 0xf5d   : > { %8860 = vmatprep.mubr.msk.bf16.mxu0 %vm9557_vm2, %v9556_v40 }
0x1017   : > { %v8812_v10 = vpop.f32.mrb[72].mxu0 }
0x1018   : > { %v4148_v13 = vmul.f32 0.70710677, %v8812_v10  ;;  %v4129_v5 = vpop.f32.mrb[73].mxu0  ;;  %v4145_v24 = vmul.f32 0.5, %v8812_v10 }
0x1019   : > { %v4146_v16 = vmul.f32 0.70710677, %v4129_v5  ;;  %v8813_v17 = vpop.f32.mrb[74].mxu0  ;;  %v4143_v25 = vmul.f32 0.5, %v4129_v5 }
0x101a   : > { %9372 = verf.f32 %v4148_v13  ;;  %v4132_v18 = vpop.f32.mrb[75].mxu0 }
0x101b   : > { %9374 = verf.f32 %v4146_v16  ;;  %v4147_v43 = vmul.f32 0.70710677, %v4132_v18  ;;  %v4144_v34 = vmul.f32 0.5, %v4132_v18 }
0x101d   : > { %9376 = verf.f32 %v4147_v43 }
0x101f   : > { %v4557_v14 = vpop.f32.mrb[76].mxu0 }
0x1020   : > { %v8840_v53 = vpop.f32.mrb[77].mxu0  ;;  %v4564_v51 = vmul.f32 0.35355338, %v4557_v14 }
0x1021   : > { %v4560_v20 = vpop.f32.mrb[78].mxu0 }
0x1022   : > { %v8841_v19 = vpop.f32.mrb[79].mxu0  ;;  %v4674_v26 = vcombine.high %v4564_v51, %v4564_v51  ;;  %v10440_v59 = vpack.c.bf16 %v4564_v51, %v4564_v51  ;;  %v4565_v8 = vmul.f32 0.35355338, %v4560_v20 }
0x1024   : > { %v9373_v21 = vpop.eup %9372  ;;  %v10453_v60 = vpack.c.bf16 %v4674_v26, %v4674_v26  ;;  %v4675_v37 = vcombine.high %v4565_v8, %v4565_v8  ;;  %v10464_v38 = vpack.c.bf16 %v4565_v8, %v4565_v8 }
0x1025   : > { %v9375_v9 = vpop.eup %9374  ;;  %v4154_v12 = vadd.f32 1.0, %v9373_v21 }
0x1026   : > { %v4152_v29 = vadd.f32 1.0, %v9375_v9  ;;  %v10475_v31 = vpack.c.bf16 %v4675_v37, %v4675_v37 }
0x1027   : > { %v9377_v23 = vpop.eup %9376  ;;  %v4612_v30 = vpop.f32.mrb[80].mxu0  ;;  %v4157_v41 = vmul.f32 %v4154_v12, %v4145_v24 }
0x1028   : > { %v4153_v35 = vadd.f32 1.0, %v9377_v23  ;;  %v4684_v4 = vcombine.high %v4612_v30, %v4612_v30  ;;  %v10427_v33 = vpack.c.bf16 %v4612_v30, %v4612_v30  ;;  %v8848_v39 = vpop.f32.mrb[81].mxu0  ;;  %v4155_v22 = vmul.f32 %v4152_v29, %v4143_v25 }
0x1029   : > { %v4615_v32 = vpop.f32.mrb[82].mxu0  ;;  %v4159_v61 = vpack.c.bf16 %v4157_v41, %v4157_v41 }
0x102a   : > { %v4156_v44 = vmul.f32 %v4153_v35, %v4144_v34  ;;  %v8849_v45 = vpop.f32.mrb[83].mxu0  ;;  %v10429_v46 = vpack.c.bf16 %v4684_v4, %v4684_v4  ;;  %v4706_v48 = vsel %vm1751_vm3, %v10427_v33, 0  ;;  %v4685_v52 = vcombine.high %v4615_v32, %v4615_v32 }
0x102b   : > { %8859 = vmatpush3.bf16.xpose.msra.mxu0 %v4706_v48  ;;  %v10434_v56 = vpack.c.bf16 %v4615_v32, %v4615_v32 }
0x102c   : > { %v4158_v49 = vpack.c.bf16 %v4156_v44, %v4155_v22  ;;  %8870 = vmatprep.subr.bf16.mxu0 %v9556_v40  ;;  %v4752_v58 = vsel %vm1751_vm3, %v10429_v46, 0  ;;  %v10445_v0 = vpack.c.bf16 %v4685_v52, %v4685_v52 }
0x102d   : > { %v4798_v36 = vsel %vm1751_vm3, %v10434_v56, 0 }
0x102e   : > { %8830 = vmatprep.mubr.bf16.mxu1 %v4158_v49  ;;  %v4844_v2 = vsel %vm1751_vm3, %v10445_v0, 0 }
0x102f   : > { %8831 = vmatmul.mubr.bf16.vlgmr.msra.gmra.mrb[72].mxu1 %v4159_v61  ;;  %v4665_v50 = vpop.f32.mrb[84].mxu0 }
0x1030   : > { %8865 = vmatpush3.bf16.xpose.msra.mxu1 %v4752_v58  ;;  %v8856_v54 = vpop.f32.mrb[85].mxu0  ;;  %8866 = vmatprep.mubr.msk.bf16.mxu1 %vm9557_vm2, %v9556_v40  ;;  %v4694_v1 = vcombine.high %v4665_v50, %v4665_v50  ;;  %v10456_v57 = vpack.c.bf16 %v4665_v50, %v4665_v50 }
0x1031   : > { %v10442_v27 = vpop.f32.mrb[86].mxu0  ;;  %8876 = vmatprep.subr.bf16.mxu1 %v9556_v40 }
0x1032   : > { %v8857_v62 = vpop.f32.mrb[87].mxu0  ;;  %8861 = vmatmul.mubr.msk.bf16.vlgmr.msra.gmra.mrb[88].mxu0 %vm1751_vm3, %v10440_v59  ;;  %v10467_v3 = vpack.c.bf16 %v4694_v1, %v4694_v1  ;;  %v4941_v11 = vsel %vm4939_vm10, %v10456_v57, 0 }
0x1033   : > { %8871 = vmatpush3.bf16.xpose.msra.mxu0 %v4798_v36  ;;  %8872 = vmatprep.mubr.msk.bf16.mxu0 %vm9557_vm2, %v9556_v40 }
0x1034   : > { %8882 = vmatprep.subr.bf16.mxu0 %v9556_v40  ;;  %v4987_v63 = vsel %vm4939_vm10, %v10467_v3, 0 }
0x1037   : > { %8867 = vmatmul.mubr.msk.bf16.vlgmr.msra.gmra.mrb[76].mxu1 %vm1751_vm3, %v10453_v60 }
0x1038   : > { %8877 = vmatpush3.bf16.xpose.msra.mxu1 %v4844_v2  ;;  %8878 = vmatprep.mubr.msk.bf16.mxu1 %vm9557_vm2, %v9556_v40 }
0x1039   : > { %8888 = vmatprep.subr.bf16.mxu1 %v9556_v40 }
0x103a   : > { %8873 = vmatmul.mubr.msk.bf16.vlgmr.msra.gmra.mrb[92].mxu0 %vm1751_vm3, %v10464_v38 }
0x103b   : > { %8883 = vmatpush3.bf16.msra.mxu0 %v4941_v11  ;;  %8884 = vmatprep.mubr.msk.bf16.mxu0 %vm9557_vm2, %v9556_v40 }
0x103c   : > { %8894 = vmatprep.subr.bf16.mxu0 %v9556_v40 }
0x103f   : > { %8879 = vmatmul.mubr.msk.bf16.vlgmr.msra.gmra.mrb[80].mxu1 %vm1751_vm3, %v10475_v31 }
0x1040   : > { %8889 = vmatpush3.bf16.msra.mxu1 %v4987_v63  ;;  %8890 = vmatprep.mubr.msk.bf16.mxu1 %vm9557_vm2, %v9556_v40 }
0x1041   : > { %8900 = vmatprep.subr.bf16.mxu1 %v9556_v40 }
0x1102   : > { %v10485_v7 = vpop.f32.mrb[72].mxu1 }
0x1103   : > { %v10487_v42 = vpop.f32.mrb[73].mxu1  ;;  %v10501_v29 = vrot.slane %v10485_v7, %v9806_v55 }
0x1104   : > { %v4259_v10 = vcombine.high %v10487_v42, %v10487_v42  ;;  %v8833_v13 = vpop.f32.mrb[74].mxu1 }
0x1105   : > { %v4245_v5 = vpop.f32.mrb[75].mxu1  ;;  %v4742_v43 = vpop.f32.mrb[88].mxu0  ;;  %v4356_v22 = vrot.slane %v10501_v29, %v9806_v55 }
0x1106   : > { %v10492_v16 = vrot.slane %v4259_v10, %v9806_v55  ;;  %v4276_v17 = vcombine.high %v4245_v5, %v4245_v5  ;;  %v4283_v18 = vrot.slane %v4245_v5, %v9806_v55  ;;  %v8862_v14 = vpop.f32.mrb[89].mxu0  ;;  %v4887_v53 = vsel %vm4886_vm11, %v4742_v43, -inf }
0x1107   : > { %4888 = vmax.xlane.f32.xlu0 %v4887_v53  ;;  %v4745_v21 = vpop.f32.mrb[90].mxu0 }
0x1108   : > { %v4275_v20 = vcombine.high %v10492_v16, %v10492_v16  ;;  %v4290_v19 = vrot.slane %v4276_v17, %v9806_v55  ;;  %v4291_v9 = vcombine.high %v4283_v18, %v4283_v18  ;;  %v8863_v12 = vpop.f32.mrb[91].mxu0 }
0x110a   : > { %v4292_v23 = vcombine.high %v4290_v19, %v4290_v19  ;;  %v4326_v24 = vcombine.low %v4275_v20, %v4283_v18  ;;  %v4788_v25 = vpop.f32.mrb[76].mxu1  ;;  %v4340_v4 = vrot.slane %v4291_v9, %v9806_v55 }
0x110b   : > { %v8868_v30 = vpop.f32.mrb[77].mxu1  ;;  %v4890_v34 = vsel %vm4886_vm11, %v4788_v25, -inf }
0x110c   : > { %v4333_v35 = vrot.slane %v4326_v24, %v9806_v55  ;;  %v4342_v39 = vcombine.low %v4290_v19, %v4292_v23  ;;  %4891 = vmax.xlane.f32.xlu1 %v4890_v34  ;;  %v4791_v41 = vpop.f32.mrb[78].mxu1 }
0x110d   : > { %v8869_v32 = vpop.f32.mrb[79].mxu1  ;;  %v4834_v48 = vpop.f32.mrb[92].mxu0 }
0x110e   : > { %v10508_v44 = vcombine.low %v4333_v35, %v4340_v4  ;;  %v4349_v45 = vrot.slane %v4342_v39, %v9806_v55  ;;  %v8874_v49 = vpop.f32.mrb[93].mxu0  ;;  %v4893_v61 = vsel %vm4886_vm11, %v4834_v48, -inf  ;;  %v4695_v35 = vcombine.high %v10442_v27, %v10442_v27 }
0x110f   : > { %4894 = vmax.xlane.f32.xlu0 %v4893_v61  ;;  %v4837_v52 = vpop.f32.mrb[94].mxu0  ;;  %v10539_v4 = vpack.c.bf16 %v10442_v27, %v10442_v27 }
0x1110   : > { %v10512_v51 = vcombine.low %v4349_v45, %v4356_v22  ;;  %v8875_v50 = vpop.f32.mrb[95].mxu0  ;;  %v10541_v22 = vpack.c.bf16 %v4695_v35, %v4695_v35 }
0x1112   : > { %v4880_v58 = vpop.f32.mrb[80].mxu1  ;;  %v5079_v52 = vsel %vm4939_vm10, %v10541_v22, 0 }
0x1113   : > { %v8880_v54 = vpop.f32.mrb[81].mxu1  ;;  %v4896_v26 = vsel %vm4886_vm11, %v4880_v58, -inf }
0x1114   : > { %4897 = vmax.xlane.f32.xlu1 %v4896_v26  ;;  %v4883_v62 = vpop.f32.mrb[82].mxu1 }
0x1115   : > { %v8881_v36 = vpop.f32.mrb[83].mxu1 }
0x1194   : > { %v4889_v8 = vpop.xlane.xlu0 %4888 }
0x1195   : > { %v4899_v1 = vsub.f32 %v4742_v43, %v4889_v8 }
0x1197   : > { %v4903_v2 = vmul.f32 1.442695, %v4899_v1 }
0x1199   : > { %v4892_v37 = vpop.xlane.xlu1 %4891  ;;  %9378 = vpow2.f32 %v4903_v2 }
0x119a   : > { %v4900_v11 = vsub.f32 %v4788_v25, %v4892_v37 }
0x119c   : > { %v4905_v63 = vmul.f32 1.442695, %v4900_v11  ;;  %v4895_v10 = vpop.xlane.xlu0 %4894 }
0x119d   : > { %v4901_v13 = vsub.f32 %v4834_v48, %v4895_v10  ;;  %v5033_v48 = vsel %vm4939_vm10, %v10539_v4, 0 }
0x119e   : > { %9380 = vpow2.f32 %v4905_v63 }
0x119f   : > { %v4907_v5 = vmul.f32 1.442695, %v4901_v13 }
0x11a1   : > { %9382 = vpow2.f32 %v4907_v5  ;;  %v4898_v19 = vpop.xlane.xlu1 %4897 }
0x11a2   : > { %v4902_v21 = vsub.f32 %v4880_v58, %v4898_v19 }
0x11a3   : > { %v9379_v17 = vpop.eup %9378 }
0x11a4   : > { %v4911_v18 = vsel %vm4886_vm11, %v9379_v17, 0.0  ;;  %v4909_v9 = vmul.f32 1.442695, %v4902_v21 }
0x11a5   : > { %4912 = vadd.xlane.f32.xlu0 %v4911_v18 }
0x11a6   : > { %9384 = vpow2.f32 %v4909_v9 }
0x11a8   : > { %v9381_v14 = vpop.eup %9380 }
0x11a9   : > { %v4914_v53 = vsel %vm4886_vm11, %v9381_v14, 0.0 }
0x11aa   : > { %4915 = vadd.xlane.f32.xlu1 %v4914_v53 }
0x11ab   : > { %v9383_v20 = vpop.eup %9382 }
0x11ac   : > { %v4917_v43 = vsel %vm4886_vm11, %v9383_v20, 0.0 }
0x11ad   : > { %4918 = vadd.xlane.f32.xlu0 %v4917_v43 }
0x11b0   : > { %v9385_v12 = vpop.eup %9384 }
0x11b1   : > { %v4920_v23 = vsel %vm4886_vm11, %v9385_v12, 0.0 }
0x11bb   : > { %5177 = vrot.lane.b32.xlu1 %v10429_v46, %s11148_s5 }
0x11bf   : > { %5122 = vrot.lane.b32.xlu1 %v10440_v59, %s11148_s5 }
0x11c3   : > { %5125 = vrot.lane.b32.xlu0 %v10427_v33, %s11148_s5 }
0x11c7   : > { %5229 = vrot.lane.b32.xlu0 %v10434_v56, %s11148_s5 }
0x11cb   : > { %5226 = vrot.lane.b32.xlu0 %v10464_v38, %s11148_s5 }
0x11e3   : > { %4921 = vadd.xlane.f32.xlu1 %v4920_v23 }
0x11f4   : > { %5174 = vrot.lane.b32.xlu1 %v10453_v60, %s11148_s5 }
0x11f8   : > { %5281 = vrot.lane.b32.xlu1 %v10445_v0, %s11148_s5 }
0x11fc   : > { %5278 = vrot.lane.b32.xlu1 %v10475_v31, %s11148_s5 }
0x1232   : > { %v4913_v24 = vpop.xlane.xlu0 %4912 }
0x1233   : > { %9386 = vrcp.f32 %v4913_v24 }
0x1237   : > { %v4916_v25 = vpop.xlane.xlu1 %4915 }
0x1238   : > { %9388 = vrcp.f32 %v4916_v25 }
0x123a   : > { %v4919_v30 = vpop.xlane.xlu0 %4918 }
0x123b   : > { %9390 = vrcp.f32 %v4919_v30  ;;  %v5178_v26 = vpop.permute.xlu1 %5177 }
0x123c   : > { %v5183_v13 = vsel %vm1751_vm3, %v5178_v26, 0 }
0x123d   : > { %v9387_v34 = vpop.eup %9386 }
0x123e   : > { %v4927_v39 = vmul.f32 %v9387_v34, %v9379_v17  ;;  %v5126_v50 = vpop.permute.xlu0 %5125 }
0x123f   : > { %v5131_v54 = vsel %vm1751_vm3, %v5126_v50, 0  ;;  %v5123_v36 = vpop.permute.xlu1 %5122 }
0x1240   : > { %v4931_v41 = vpack.c.bf16 %v4927_v39, %v4927_v39 }
0x1242   : > { %v9389_v32 = vpop.eup %9388  ;;  %8885 = vmatmul.mubr.msk.bf16.vlgmr.msra.gmra.mrb[96].mxu0 %vm4935_vm12, %v4931_v41  ;;  %v5230_v62 = vpop.permute.xlu0 %5229 }
0x1243   : > { %v4928_v45 = vmul.f32 %v9389_v32, %v9381_v14  ;;  %8895 = vmatpush3.bf16.msra.mxu0 %v5033_v48  ;;  %8896 = vmatprep.mubr.msk.bf16.mxu0 %vm9557_vm2, %v9556_v40  ;;  %v5235_v8 = vsel %vm1751_vm3, %v5230_v62, 0 }
0x1244   : > { %8906 = vmatprep.subr.bf16.mxu0 %v9556_v40 }
0x1245   : > { %v4932_v49 = vpack.c.bf16 %v4928_v45, %v4928_v45  ;;  %v9391_v27 = vpop.eup %9390 }
0x1246   : > { %v4929_v61 = vmul.f32 %v9391_v27, %v9383_v20  ;;  %v5227_v1 = vpop.permute.xlu0 %5226 }
0x1247   : > { %8891 = vmatmul.mubr.msk.bf16.vlgmr.msra.gmra.mrb[84].mxu1 %vm4935_vm12, %v4932_v49 }
0x1248   : > { %8901 = vmatpush3.bf16.msra.mxu1 %v5079_v52  ;;  %8902 = vmatprep.mubr.msk.bf16.mxu1 %vm9557_vm2, %v9556_v40  ;;  %v4933_v58 = vpack.c.bf16 %v4929_v61, %v4929_v61 }
0x1249   : > { %8912 = vmatprep.subr.bf16.mxu1 %v9556_v40 }
0x124a   : > { %8897 = vmatmul.mubr.msk.bf16.vlgmr.msra.gmra.mrb[100].mxu0 %vm4935_vm12, %v4933_v58 }
0x124b   : > { %8908 = vmatprep.mubr.msk.bf16.mxu0 %vm9557_vm2, %v9556_v40 }
0x124c   : > { %8907 = vmatpush3.bf16.xpose.msra.mxu0 %v5131_v54 }
0x124d   : > { %8918 = vmatprep.subr.bf16.mxu0 %v9556_v40 }
0x1253   : > { %8909 = vmatmul.mubr.msk.bf16.vlgmr.msra.gmra.mrb[104].mxu0 %vm1751_vm3, %v5123_v36 }
0x1254   : > { %8919 = vmatpush3.bf16.xpose.msra.mxu0 %v5235_v8  ;;  %8920 = vmatprep.mubr.msk.bf16.mxu0 %vm9557_vm2, %v9556_v40 }
0x1255   : > { %8930 = vmatprep.subr.bf16.mxu0 %v9556_v40 }
0x125b   : > { %8921 = vmatmul.mubr.msk.bf16.vlgmr.msra.gmra.mrb[108].mxu0 %vm1751_vm3, %v5227_v1 }
0x125c   : > { %8932 = vmatprep.mubr.msk.bf16.mxu0 %vm9557_vm2, %v9556_v40 }
0x1270   : > { %v4922_v2 = vpop.xlane.xlu1 %4921 }
0x1271   : > { %9392 = vrcp.f32 %v4922_v2 }
0x1274   : > { %v5175_v10 = vpop.permute.xlu1 %5174 }
0x1278   : > { %v5282_v5 = vpop.permute.xlu1 %5281 }
0x1279   : > { %v5287_v17 = vsel %vm1751_vm3, %v5282_v5, 0 }
0x127b   : > { %v9393_v37 = vpop.eup %9392 }
0x127c   : > { %v4930_v11 = vmul.f32 %v9393_v37, %v9385_v12  ;;  %v5279_v18 = vpop.permute.xlu1 %5278 }
0x127e   : > { %v4934_v63 = vpack.c.bf16 %v4930_v11, %v4930_v11 }
0x1280   : > { %8903 = vmatmul.mubr.msk.bf16.vlgmr.msra.gmra.mrb[88].mxu1 %vm4935_vm12, %v4934_v63 }
0x1281   : > { %8913 = vmatpush3.bf16.xpose.msra.mxu1 %v5183_v13  ;;  %8914 = vmatprep.mubr.msk.bf16.mxu1 %vm9557_vm2, %v9556_v40 }
0x1282   : > { %8924 = vmatprep.subr.bf16.mxu1 %v9556_v40 }
0x1288   : > { %8915 = vmatmul.mubr.msk.bf16.vlgmr.msra.gmra.mrb[92].mxu1 %vm1751_vm3, %v5175_v10 }
0x1289   : > { %8925 = vmatpush3.bf16.xpose.msra.mxu1 %v5287_v17  ;;  %8926 = vmatprep.mubr.msk.bf16.mxu1 %vm9557_vm2, %v9556_v40 }
0x128a   : > { %8936 = vmatprep.subr.bf16.mxu1 %v9556_v40 }
0x1290   : > { %8927 = vmatmul.mubr.msk.bf16.vlgmr.msra.gmra.mrb[96].mxu1 %vm1751_vm3, %v5279_v18 }
0x1291   : > { %8938 = vmatprep.mubr.msk.bf16.mxu1 %vm9557_vm2, %v9556_v40 }
0x1315   : > { %v10581_v14 = vpop.f32.mrb[96].mxu0 }
0x1316   : > { %v8886_v53 = vpop.f32.mrb[97].mxu0 }
0x1317   : > { %v4980_v20 = vpop.f32.mrb[98].mxu0 }
0x1318   : > { %v8887_v43 = vpop.f32.mrb[99].mxu0 }
0x131a   : > { %v10583_v19 = vpop.f32.mrb[84].mxu1 }
0x131b   : > { %v8892_v21 = vpop.f32.mrb[85].mxu1 }
0x131c   : > { %v5026_v9 = vpop.f32.mrb[86].mxu1 }
0x131d   : > { %v8893_v12 = vpop.f32.mrb[87].mxu1  ;;  %v10585_v23 = vpop.f32.mrb[100].mxu0 }
0x131e   : > { %v8898_v24 = vpop.f32.mrb[101].mxu0 }
0x131f   : > { %v5072_v25 = vpop.f32.mrb[102].mxu0 }
0x1320   : > { %v8899_v30 = vpop.f32.mrb[103].mxu0 }
0x1326   : > { %v5167_v34 = vpop.f32.mrb[104].mxu0 }
0x1327   : > { %v8910_v35 = vpop.f32.mrb[105].mxu0  ;;  %v5329_v39 = vsel %vm4886_vm11, %v5167_v34, -inf }
0x1328   : > { %5330 = vmax.xlane.f32.xlu0 %v5329_v39  ;;  %v5170_v41 = vpop.f32.mrb[106].mxu0 }
0x1329   : > { %v8911_v32 = vpop.f32.mrb[107].mxu0 }
0x132e   : > { %v5271_v45 = vpop.f32.mrb[108].mxu0 }
0x132f   : > { %v8922_v48 = vpop.f32.mrb[109].mxu0  ;;  %v5335_v49 = vsel %vm4886_vm11, %v5271_v45, -inf }
0x1330   : > { %5336 = vmax.xlane.f32.xlu0 %v5335_v49  ;;  %v5274_v27 = vpop.f32.mrb[110].mxu0 }
0x1331   : > { %v8923_v61 = vpop.f32.mrb[111].mxu0 }
0x1353   : > { %v10589_v52 = vpop.f32.mrb[88].mxu1 }
0x1354   : > { %v8904_v50 = vpop.f32.mrb[89].mxu1 }
0x1355   : > { %v5118_v58 = vpop.f32.mrb[90].mxu1 }
0x1356   : > { %v8905_v54 = vpop.f32.mrb[91].mxu1 }
0x135b   : > { %v5219_v26 = vpop.f32.mrb[92].mxu1 }
0x135c   : > { %v8916_v62 = vpop.f32.mrb[93].mxu1  ;;  %v5332_v36 = vsel %vm4886_vm11, %v5219_v26, -inf }
0x135d   : > { %5333 = vmax.xlane.f32.xlu1 %v5332_v36  ;;  %v5222_v8 = vpop.f32.mrb[94].mxu1 }
0x135e   : > { %v8917_v1 = vpop.f32.mrb[95].mxu1 }
0x1363   : > { %v5323_v2 = vpop.f32.mrb[96].mxu1 }
0x1364   : > { %v8928_v37 = vpop.f32.mrb[97].mxu1  ;;  %v5338_v11 = vsel %vm4886_vm11, %v5323_v2, -inf }
0x1365   : > { %v5326_v63 = vpop.f32.mrb[98].mxu1  ;;  %5339 = vmax.xlane.f32.xlu0 %v5338_v11 }
0x1366   : > { %v8929_v10 = vpop.f32.mrb[99].mxu1 }
0x136e   : > { %5427 = vrot.lane.b32.xlu1 %v10467_v3, %s11148_s5 }
0x1372   : > { %5476 = vrot.lane.b32.xlu1 %v10539_v4, %s11148_s5 }
0x1376   : > { %5525 = vrot.lane.b32.xlu1 %v10541_v22, %s11148_s5 }
0x13b5   : > { %v5331_v13 = vpop.xlane.xlu0 %5330 }
0x13b6   : > { %v5341_v5 = vsub.f32 %v5167_v34, %v5331_v13 }
0x13b8   : > { %v5345_v17 = vmul.f32 1.442695, %v5341_v5 }
0x13ba   : > { %9394 = vpow2.f32 %v5345_v17 }
0x13bd   : > { %v5337_v20 = vpop.xlane.xlu0 %5336 }
0x13be   : > { %v5343_v43 = vsub.f32 %v5271_v45, %v5337_v20 }
0x13c0   : > { %v5349_v21 = vmul.f32 1.442695, %v5343_v43 }
0x13c2   : > { %9396 = vpow2.f32 %v5349_v21 }
0x13c4   : > { %v9395_v18 = vpop.eup %9394 }
0x13c5   : > { %v5353_v53 = vsel %vm4886_vm11, %v9395_v18, 0.0 }
0x13c6   : > { %5354 = vadd.xlane.f32.xlu0 %v5353_v53 }
0x13cc   : > { %v9397_v34 = vpop.eup %9396 }
0x13cd   : > { %v5359_v41 = vsel %vm4886_vm11, %v9397_v34, 0.0 }
0x13dc   : > { %5378 = vrot.lane.b32.xlu0 %v10456_v57, %s11148_s5  ;;  %s11149_s5 = smov 112  }
0x13ea   : > { %v5334_v9 = vpop.xlane.xlu1 %5333 }
0x13eb   : > { %v5342_v12 = vsub.f32 %v5219_v26, %v5334_v9 }
0x13ed   : > { %v5347_v24 = vmul.f32 1.442695, %v5342_v12 }
0x13ee   : > { %v5428_v25 = vpop.permute.xlu1 %5427 }
0x13ef   : > { %9398 = vpow2.f32 %v5347_v24  ;;  %v5433_v30 = vsel %vm4939_vm10, %v5428_v25, 0 }
0x13f0   : > { %8937 = vmatpush3.bf16.msra.mxu1 %v5433_v30 }
0x13f1   : > { %8948 = vmatprep.subr.bf16.mxu1 %v9556_v40 }
0x13f2   : > { %v5340_v32 = vpop.xlane.xlu0 %5339  ;;  %v5477_v62 = vpop.permute.xlu1 %5476 }
0x13f3   : > { %v5344_v45 = vsub.f32 %v5323_v2, %v5340_v32  ;;  %v5482_v8 = vsel %vm4939_vm10, %v5477_v62, 0 }
0x13f5   : > { %v5351_v48 = vmul.f32 1.442695, %v5344_v45 }
0x13f6   : > { %v5526_v1 = vpop.permute.xlu1 %5525 }
0x13f7   : > { %9400 = vpow2.f32 %v5351_v48  ;;  %v5531_v53 = vsel %vm4939_vm10, %v5526_v1, 0 }
0x13f9   : > { %v9399_v35 = vpop.eup %9398 }
0x13fa   : > { %v5356_v39 = vsel %vm4886_vm11, %v9399_v35, 0.0 }
0x13fb   : > { %5357 = vadd.xlane.f32.xlu1 %v5356_v39  ;;  %5360 = vadd.xlane.f32.xlu0 %v5359_v41 }
0x1401   : > { %v9401_v49 = vpop.eup %9400 }
0x1402   : > { %v5362_v27 = vsel %vm4886_vm11, %v9401_v49, 0.0 }
0x140c   : > { %5625 = vrot.lane.b32.xlu1 %v10429_v46, %s11149_s5 }
0x1411   : > { %5575 = vrot.lane.b32.xlu0 %v10427_v33, %s11149_s5 }
0x1415   : > { %5573 = vrot.lane.b32.xlu0 %v10440_v59, %s11149_s5 }
0x1419   : > { %5675 = vrot.lane.b32.xlu0 %v10434_v56, %s11149_s5 }
0x141d   : > { %5673 = vrot.lane.b32.xlu0 %v10464_v38, %s11149_s5 }
0x1430   : > { %5363 = vadd.xlane.f32.xlu1 %v5362_v27 }
0x1441   : > { %5623 = vrot.lane.b32.xlu1 %v10453_v60, %s11149_s5 }
0x1445   : > { %5725 = vrot.lane.b32.xlu1 %v10445_v0, %s11149_s5 }
0x1449   : > { %5723 = vrot.lane.b32.xlu1 %v10475_v31, %s11149_s5 }
0x1453   : > { %v5355_v61 = vpop.xlane.xlu0 %5354 }
0x1454   : > { %9402 = vrcp.f32 %v5355_v61 }
0x1457   : > { %v5379_v50 = vpop.permute.xlu0 %5378 }
0x1458   : > { %v5384_v58 = vsel %vm4939_vm10, %v5379_v50, 0 }
0x1459   : > { %8931 = vmatpush3.bf16.msra.mxu0 %v5384_v58 }
0x145a   : > { %8942 = vmatprep.subr.bf16.mxu0 %v9556_v40 }
0x145e   : > { %v9403_v54 = vpop.eup %9402 }
0x145f   : > { %v5369_v26 = vmul.f32 %v9403_v54, %v9395_v18 }
0x1461   : > { %v5373_v36 = vpack.c.bf16 %v5369_v26, %v5369_v26 }
0x1463   : > { %8933 = vmatmul.mubr.msk.bf16.vlgmr.msra.gmra.mrb[112].mxu0 %vm4935_vm12, %v5373_v36 }
0x1464   : > { %8943 = vmatpush3.bf16.msra.mxu0 %v5482_v8  ;;  %8944 = vmatprep.mubr.msk.bf16.mxu0 %vm9557_vm2, %v9556_v40 }
0x1465   : > { %8954 = vmatprep.subr.bf16.mxu0 %v9556_v40 }
0x1488   : > { %v5358_v2 = vpop.xlane.xlu1 %5357  ;;  %v5361_v37 = vpop.xlane.xlu0 %5360 }
0x1489   : > { %9404 = vrcp.f32 %v5358_v2 }
0x148a   : > { %9406 = vrcp.f32 %v5361_v37 }
0x148c   : > { %v5576_v11 = vpop.permute.xlu0 %5575  ;;  %v5626_v24 = vpop.permute.xlu1 %5625 }
0x148d   : > { %v5581_v43 = vsel %vm1751_vm3, %v5576_v11, 0  ;;  %v5631_v41 = vsel %vm1751_vm3, %v5626_v24, 0 }
0x1490   : > { %v5574_v20 = vpop.permute.xlu0 %5573 }
0x1493   : > { %v9405_v63 = vpop.eup %9404 }
0x1494   : > { %v9407_v10 = vpop.eup %9406  ;;  %v5370_v13 = vmul.f32 %v9405_v63, %v9399_v35  ;;  %v5676_v21 = vpop.permute.xlu0 %5675 }
0x1495   : > { %v5371_v5 = vmul.f32 %v9407_v10, %v9397_v34  ;;  %v5681_v9 = vsel %vm1751_vm3, %v5676_v21, 0 }
0x1496   : > { %v5374_v17 = vpack.c.bf16 %v5370_v13, %v5370_v13 }
0x1497   : > { %v5375_v18 = vpack.c.bf16 %v5371_v5, %v5371_v5 }
0x1498   : > { %8939 = vmatmul.mubr.msk.bf16.vlgmr.msra.gmra.mrb[100].mxu1 %vm4935_vm12, %v5374_v17  ;;  %v5674_v12 = vpop.permute.xlu0 %5673 }
0x1499   : > { %8945 = vmatmul.mubr.msk.bf16.vlgmr.msra.gmra.mrb[116].mxu0 %vm4935_vm12, %v5375_v18  ;;  %8949 = vmatpush3.bf16.msra.mxu1 %v5531_v53 }
0x149a   : > { %8955 = vmatpush3.bf16.xpose.msra.mxu0 %v5581_v43  ;;  %8956 = vmatprep.mubr.msk.bf16.mxu0 %vm9557_vm2, %v9556_v40 }
0x149b   : > { %8966 = vmatprep.subr.bf16.mxu0 %v9556_v40  ;;  %8950 = vmatprep.mubr.msk.bf16.mxu1 %vm9557_vm2, %v9556_v40 }
0x149c   : > { %8960 = vmatprep.subr.bf16.mxu1 %v9556_v40 }
0x14a1   : > { %8957 = vmatmul.mubr.msk.bf16.vlgmr.msra.gmra.mrb[120].mxu0 %vm1751_vm3, %v5574_v20 }
0x14a2   : > { %8967 = vmatpush3.bf16.xpose.msra.mxu0 %v5681_v9  ;;  %8968 = vmatprep.mubr.msk.bf16.mxu0 %vm9557_vm2, %v9556_v40 }
0x14a3   : > { %8978 = vmatprep.subr.bf16.mxu0 %v9556_v40 }
0x14a9   : > { %8969 = vmatmul.mubr.msk.bf16.vlgmr.msra.gmra.mrb[124].mxu0 %vm1751_vm3, %v5674_v12 }
0x14aa   : > { %8980 = vmatprep.mubr.msk.bf16.mxu0 %vm9557_vm2, %v9556_v40 }
0x14bd   : > { %v5364_v25 = vpop.xlane.xlu1 %5363 }
0x14be   : > { %9408 = vrcp.f32 %v5364_v25 }
0x14c1   : > { %v5624_v39 = vpop.permute.xlu1 %5623 }
0x14c5   : > { %v5726_v32 = vpop.permute.xlu1 %5725 }
0x14c6   : > { %v5731_v45 = vsel %vm1751_vm3, %v5726_v32, 0 }
0x14c8   : > { %v9409_v30 = vpop.eup %9408 }
0x14c9   : > { %v5372_v34 = vmul.f32 %v9409_v30, %v9401_v49  ;;  %v5724_v48 = vpop.permute.xlu1 %5723 }
0x14cb   : > { %v5376_v35 = vpack.c.bf16 %v5372_v34, %v5372_v34 }
0x14cd   : > { %8951 = vmatmul.mubr.msk.bf16.vlgmr.msra.gmra.mrb[104].mxu1 %vm4935_vm12, %v5376_v35 }
0x14ce   : > { %8961 = vmatpush3.bf16.xpose.msra.mxu1 %v5631_v41  ;;  %8962 = vmatprep.mubr.msk.bf16.mxu1 %vm9557_vm2, %v9556_v40 }
0x14cf   : > { %8972 = vmatprep.subr.bf16.mxu1 %v9556_v40 }
0x14d5   : > { %8963 = vmatmul.mubr.msk.bf16.vlgmr.msra.gmra.mrb[108].mxu1 %vm1751_vm3, %v5624_v39 }
0x14d6   : > { %8973 = vmatpush3.bf16.xpose.msra.mxu1 %v5731_v45  ;;  %8974 = vmatprep.mubr.msk.bf16.mxu1 %vm9557_vm2, %v9556_v40 }
0x14d7   : > { %8984 = vmatprep.subr.bf16.mxu1 %v9556_v40 }
0x14dd   : > { %8975 = vmatmul.mubr.msk.bf16.vlgmr.msra.gmra.mrb[112].mxu1 %vm1751_vm3, %v5724_v48 }
0x14de   : > { %8986 = vmatprep.mubr.msk.bf16.mxu1 %vm9557_vm2, %v9556_v40 }
0x1536   : > { %v10661_v49 = vpop.f32.mrb[112].mxu0 }
0x1537   : > { %v8934_v27 = vpop.f32.mrb[113].mxu0 }
0x1538   : > { %v5423_v61 = vpop.f32.mrb[114].mxu0 }
0x1539   : > { %v8935_v50 = vpop.f32.mrb[115].mxu0 }
0x156b   : > { %v10663_v58 = vpop.f32.mrb[100].mxu1 }
0x156c   : > { %v10665_v54 = vpop.f32.mrb[116].mxu0  ;;  %v8940_v26 = vpop.f32.mrb[101].mxu1 }
0x156d   : > { %v8946_v62 = vpop.f32.mrb[117].mxu0  ;;  %v5472_v36 = vpop.f32.mrb[102].mxu1 }
0x156e   : > { %v5521_v8 = vpop.f32.mrb[118].mxu0  ;;  %v8941_v1 = vpop.f32.mrb[103].mxu1 }
0x156f   : > { %v8947_v2 = vpop.f32.mrb[119].mxu0 }
0x1574   : > { %v5617_v37 = vpop.f32.mrb[120].mxu0 }
0x1575   : > { %v8958_v11 = vpop.f32.mrb[121].mxu0  ;;  %v5773_v63 = vsel %vm4886_vm11, %v5617_v37, -inf }
0x1576   : > { %5774 = vmax.xlane.f32.xlu0 %v5773_v63  ;;  %v5620_v10 = vpop.f32.mrb[122].mxu0 }
0x1577   : > { %v8959_v13 = vpop.f32.mrb[123].mxu0 }
0x157c   : > { %v5717_v5 = vpop.f32.mrb[124].mxu0 }
0x157d   : > { %v8970_v17 = vpop.f32.mrb[125].mxu0  ;;  %v5779_v18 = vsel %vm4886_vm11, %v5717_v5, -inf }
0x157e   : > { %5780 = vmax.xlane.f32.xlu0 %v5779_v18  ;;  %v5720_v53 = vpop.f32.mrb[126].mxu0 }
0x157f   : > { %v8971_v20 = vpop.f32.mrb[127].mxu0 }
0x15a0   : > { %v10669_v43 = vpop.f32.mrb[104].mxu1 }
0x15a1   : > { %v8952_v21 = vpop.f32.mrb[105].mxu1 }
0x15a2   : > { %v5570_v9 = vpop.f32.mrb[106].mxu1 }
0x15a3   : > { %v8953_v12 = vpop.f32.mrb[107].mxu1 }
0x15a8   : > { %v5667_v24 = vpop.f32.mrb[108].mxu1 }
0x15a9   : > { %v8964_v25 = vpop.f32.mrb[109].mxu1  ;;  %v5776_v30 = vsel %vm4886_vm11, %v5667_v24, -inf }
0x15aa   : > { %5777 = vmax.xlane.f32.xlu1 %v5776_v30  ;;  %v5670_v34 = vpop.f32.mrb[110].mxu1 }
0x15ab   : > { %v8965_v35 = vpop.f32.mrb[111].mxu1 }
0x15b0   : > { %v5767_v39 = vpop.f32.mrb[112].mxu1 }
0x15b1   : > { %v8976_v41 = vpop.f32.mrb[113].mxu1  ;;  %v5782_v32 = vsel %vm4886_vm11, %v5767_v39, -inf }
0x15b2   : > { %v5770_v45 = vpop.f32.mrb[114].mxu1  ;;  %5783 = vmax.xlane.f32.xlu0 %v5782_v32 }
0x15b3   : > { %v8977_v48 = vpop.f32.mrb[115].mxu1 }
0x15bb   : > { %5869 = vrot.lane.b32.xlu1 %v10467_v3, %s11149_s5 }
0x15bf   : > { %5917 = vrot.lane.b32.xlu1 %v10539_v4, %s11149_s5 }
0x15c3   : > { %5965 = vrot.lane.b32.xlu1 %v10541_v22, %s11149_s5 }
0x1603   : > { %v5775_v27 = vpop.xlane.xlu0 %5774 }
0x1604   : > { %v5785_v61 = vsub.f32 %v5617_v37, %v5775_v27 }
0x1606   : > { %v5789_v50 = vmul.f32 1.442695, %v5785_v61 }
0x1608   : > { %9410 = vpow2.f32 %v5789_v50 }
0x160b   : > { %v5781_v36 = vpop.xlane.xlu0 %5780 }
0x160c   : > { %v5787_v8 = vsub.f32 %v5717_v5, %v5781_v36 }
0x160e   : > { %v5793_v1 = vmul.f32 1.442695, %v5787_v8 }
0x1610   : > { %9412 = vpow2.f32 %v5793_v1 }
0x1612   : > { %v9411_v26 = vpop.eup %9410 }
0x1613   : > { %v5797_v62 = vsel %vm4886_vm11, %v9411_v26, 0.0 }
0x1614   : > { %5798 = vadd.xlane.f32.xlu0 %v5797_v62 }
0x161a   : > { %v9413_v13 = vpop.eup %9412 }
0x161b   : > { %v5803_v53 = vsel %vm4886_vm11, %v9413_v13, 0.0 }
0x162a   : > { %5821 = vrot.lane.b32.xlu0 %v10456_v57, %s11149_s5  ;;  %s11150_s5 = smov 104  }
0x1637   : > { %v5778_v2 = vpop.xlane.xlu1 %5777 }
0x1638   : > { %v5786_v11 = vsub.f32 %v5667_v24, %v5778_v2 }
0x163a   : > { %v5791_v63 = vmul.f32 1.442695, %v5786_v11 }
0x163b   : > { %v5870_v10 = vpop.permute.xlu1 %5869 }
0x163c   : > { %9414 = vpow2.f32 %v5791_v63  ;;  %v5875_v37 = vsel %vm4939_vm10, %v5870_v10, 0 }
0x163d   : > { %8985 = vmatpush3.bf16.msra.mxu1 %v5875_v37 }
0x163e   : > { %8996 = vmatprep.subr.bf16.mxu1 %v9556_v40 }
0x163f   : > { %v5784_v5 = vpop.xlane.xlu0 %5783  ;;  %v5918_v24 = vpop.permute.xlu1 %5917 }
0x1640   : > { %v5788_v20 = vsub.f32 %v5767_v39, %v5784_v5 }
0x1642   : > { %v5795_v21 = vmul.f32 1.442695, %v5788_v20 }
0x1644   : > { %9416 = vpow2.f32 %v5795_v21 }
0x1646   : > { %v9415_v17 = vpop.eup %9414 }
0x1647   : > { %v5800_v18 = vsel %vm4886_vm11, %v9415_v17, 0.0 }
0x1648   : > { %5801 = vadd.xlane.f32.xlu1 %v5800_v18 }
0x1649   : > { %5804 = vadd.xlane.f32.xlu0 %v5803_v53 }
0x164e   : > { %v9417_v9 = vpop.eup %9416 }
0x164f   : > { %v5806_v12 = vsel %vm4886_vm11, %v9417_v9, 0.0 }
0x1659   : > { %6065 = vrot.lane.b32.xlu1 %v10429_v46, %s11150_s5 }
0x165f   : > { %6015 = vrot.lane.b32.xlu0 %v10427_v33, %s11150_s5 }
0x1663   : > { %6013 = vrot.lane.b32.xlu0 %v10440_v59, %s11150_s5 }
0x1667   : > { %6115 = vrot.lane.b32.xlu0 %v10434_v56, %s11150_s5 }
0x166b   : > { %6113 = vrot.lane.b32.xlu0 %v10464_v38, %s11150_s5 }
0x167d   : > { %5807 = vadd.xlane.f32.xlu1 %v5806_v12 }
0x168e   : > { %6063 = vrot.lane.b32.xlu1 %v10453_v60, %s11150_s5  ;;  %v5923_v60 = vsel %vm4939_vm10, %v5918_v24, 0 }
0x1692   : > { %6165 = vrot.lane.b32.xlu1 %v10445_v0, %s11150_s5  ;;  %v5966_v0 = vpop.permute.xlu1 %5965 }
0x1693   : > { %v5971_v27 = vsel %vm4939_vm10, %v5966_v0, 0 }
0x1696   : > { %6163 = vrot.lane.b32.xlu1 %v10475_v31, %s11150_s5 }
0x16a1   : > { %v5799_v33 = vpop.xlane.xlu0 %5798 }
0x16a2   : > { %9418 = vrcp.f32 %v5799_v33 }
0x16a5   : > { %v5822_v46 = vpop.permute.xlu0 %5821 }
0x16a6   : > { %v5827_v56 = vsel %vm4939_vm10, %v5822_v46, 0 }
0x16a7   : > { %8979 = vmatpush3.bf16.msra.mxu0 %v5827_v56 }
0x16a8   : > { %8990 = vmatprep.subr.bf16.mxu0 %v9556_v40 }
0x16ac   : > { %v9419_v59 = vpop.eup %9418 }
0x16ad   : > { %v5813_v38 = vmul.f32 %v9419_v59, %v9411_v26 }
0x16af   : > { %v5817_v25 = vpack.c.bf16 %v5813_v38, %v5813_v38 }
0x16b1   : > { %8981 = vmatmul.mubr.msk.bf16.vlgmr.msra.gmra.mrb[128].mxu0 %vm4935_vm12, %v5817_v25 }
0x16b2   : > { %8991 = vmatpush3.bf16.msra.mxu0 %v5923_v60  ;;  %8992 = vmatprep.mubr.msk.bf16.mxu0 %vm9557_vm2, %v9556_v40 }
0x16b3   : > { %9002 = vmatprep.subr.bf16.mxu0 %v9556_v40 }
0x16d5   : > { %v5802_v31 = vpop.xlane.xlu1 %5801 }
0x16d6   : > { %v5805_v30 = vpop.xlane.xlu0 %5804  ;;  %9420 = vrcp.f32 %v5802_v31 }
0x16d7   : > { %9422 = vrcp.f32 %v5805_v30 }
0x16d9   : > { %v6066_v8 = vpop.permute.xlu1 %6065 }
0x16da   : > { %v6016_v34 = vpop.permute.xlu0 %6015  ;;  %v6071_v37 = vsel %vm1751_vm3, %v6066_v8, 0 }
0x16db   : > { %v6021_v50 = vsel %vm1751_vm3, %v6016_v34, 0 }
0x16de   : > { %v6014_v61 = vpop.permute.xlu0 %6013 }
0x16e0   : > { %v9421_v35 = vpop.eup %9420 }
0x16e1   : > { %v9423_v39 = vpop.eup %9422  ;;  %v5814_v41 = vmul.f32 %v9421_v35, %v9415_v17 }
0x16e2   : > { %v5815_v32 = vmul.f32 %v9423_v39, %v9413_v13  ;;  %v6116_v26 = vpop.permute.xlu0 %6115 }
0x16e3   : > { %v5818_v45 = vpack.c.bf16 %v5814_v41, %v5814_v41  ;;  %v6121_v62 = vsel %vm1751_vm3, %v6116_v26, 0 }
0x16e4   : > { %v5819_v48 = vpack.c.bf16 %v5815_v32, %v5815_v32 }
0x16e5   : > { %8987 = vmatmul.mubr.msk.bf16.vlgmr.msra.gmra.mrb[116].mxu1 %vm4935_vm12, %v5818_v45 }
0x16e6   : > { %8993 = vmatmul.mubr.msk.bf16.vlgmr.msra.gmra.mrb[132].mxu0 %vm4935_vm12, %v5819_v48  ;;  %8997 = vmatpush3.bf16.msra.mxu1 %v5971_v27  ;;  %v6114_v36 = vpop.permute.xlu0 %6113 }
0x16e7   : > { %9003 = vmatpush3.bf16.xpose.msra.mxu0 %v6021_v50  ;;  %9004 = vmatprep.mubr.msk.bf16.mxu0 %vm9557_vm2, %v9556_v40 }
0x16e8   : > { %9014 = vmatprep.subr.bf16.mxu0 %v9556_v40  ;;  %8998 = vmatprep.mubr.msk.bf16.mxu1 %vm9557_vm2, %v9556_v40 }
0x16e9   : > { %9008 = vmatprep.subr.bf16.mxu1 %v9556_v40 }
0x16ee   : > { %9005 = vmatmul.mubr.msk.bf16.vlgmr.msra.gmra.mrb[136].mxu0 %vm1751_vm3, %v6014_v61 }
0x16ef   : > { %9015 = vmatpush3.bf16.xpose.msra.mxu0 %v6121_v62  ;;  %9016 = vmatprep.mubr.msk.bf16.mxu0 %vm9557_vm2, %v9556_v40 }
0x16f0   : > { %9026 = vmatprep.subr.bf16.mxu0 %v9556_v40 }
0x16f6   : > { %9017 = vmatmul.mubr.msk.bf16.vlgmr.msra.gmra.mrb[140].mxu0 %vm1751_vm3, %v6114_v36 }
0x16f7   : > { %9028 = vmatprep.mubr.msk.bf16.mxu0 %vm9557_vm2, %v9556_v40 }
0x170a   : > { %v5808_v1 = vpop.xlane.xlu1 %5807 }
0x170b   : > { %9424 = vrcp.f32 %v5808_v1 }
0x170e   : > { %v6064_v10 = vpop.permute.xlu1 %6063 }
0x1712   : > { %v6166_v13 = vpop.permute.xlu1 %6165 }
0x1713   : > { %v6171_v17 = vsel %vm1751_vm3, %v6166_v13, 0 }
0x1715   : > { %v9425_v2 = vpop.eup %9424 }
0x1716   : > { %v5816_v11 = vmul.f32 %v9425_v2, %v9417_v9  ;;  %v6164_v18 = vpop.permute.xlu1 %6163 }
0x1718   : > { %v5820_v63 = vpack.c.bf16 %v5816_v11, %v5816_v11 }
0x171a   : > { %8999 = vmatmul.mubr.msk.bf16.vlgmr.msra.gmra.mrb[120].mxu1 %vm4935_vm12, %v5820_v63 }
0x171b   : > { %9009 = vmatpush3.bf16.xpose.msra.mxu1 %v6071_v37  ;;  %9010 = vmatprep.mubr.msk.bf16.mxu1 %vm9557_vm2, %v9556_v40 }
0x171c   : > { %9020 = vmatprep.subr.bf16.mxu1 %v9556_v40 }
0x1722   : > { %9011 = vmatmul.mubr.msk.bf16.vlgmr.msra.gmra.mrb[124].mxu1 %vm1751_vm3, %v6064_v10 }
0x1723   : > { %9021 = vmatpush3.bf16.xpose.msra.mxu1 %v6171_v17  ;;  %9022 = vmatprep.mubr.msk.bf16.mxu1 %vm9557_vm2, %v9556_v40 }
0x1724   : > { %9032 = vmatprep.subr.bf16.mxu1 %v9556_v40 }
0x172a   : > { %9023 = vmatmul.mubr.msk.bf16.vlgmr.msra.gmra.mrb[128].mxu1 %vm1751_vm3, %v6164_v18 }
0x172b   : > { %9034 = vmatprep.mubr.msk.bf16.mxu1 %vm9557_vm2, %v9556_v40 }
0x1784   : > { %v5863_v53 = vpop.f32.mrb[128].mxu0 }
0x1785   : > { %v8982_v5 = vpop.f32.mrb[129].mxu0 }
0x1786   : > { %v5866_v20 = vpop.f32.mrb[130].mxu0 }
0x1787   : > { %v8983_v21 = vpop.f32.mrb[131].mxu0 }
0x17b8   : > { %v10741_v9 = vpop.f32.mrb[116].mxu1 }
0x17b9   : > { %v5959_v12 = vpop.f32.mrb[132].mxu0  ;;  %v8988_v33 = vpop.f32.mrb[117].mxu1 }
0x17ba   : > { %v8994_v46 = vpop.f32.mrb[133].mxu0  ;;  %v5914_v56 = vpop.f32.mrb[118].mxu1 }
0x17bb   : > { %v5962_v59 = vpop.f32.mrb[134].mxu0  ;;  %v8989_v38 = vpop.f32.mrb[119].mxu1 }
0x17bc   : > { %v8995_v24 = vpop.f32.mrb[135].mxu0 }
0x17c1   : > { %v6057_v25 = vpop.f32.mrb[136].mxu0 }
0x17c2   : > { %v9006_v60 = vpop.f32.mrb[137].mxu0  ;;  %v6213_v0 = vsel %vm4886_vm11, %v6057_v25, -inf }
0x17c3   : > { %6214 = vmax.xlane.f32.xlu0 %v6213_v0  ;;  %v6060_v31 = vpop.f32.mrb[138].mxu0 }
0x17c4   : > { %v9007_v30 = vpop.f32.mrb[139].mxu0 }
0x17c9   : > { %v6157_v34 = vpop.f32.mrb[140].mxu0 }
0x17ca   : > { %v9018_v35 = vpop.f32.mrb[141].mxu0  ;;  %v6219_v39 = vsel %vm4886_vm11, %v6157_v34, -inf }
0x17cb   : > { %6220 = vmax.xlane.f32.xlu0 %v6219_v39  ;;  %v6160_v41 = vpop.f32.mrb[142].mxu0 }
0x17cc   : > { %v9019_v32 = vpop.f32.mrb[143].mxu0 }
0x17ed   : > { %v6007_v45 = vpop.f32.mrb[120].mxu1 }
0x17ee   : > { %v9000_v48 = vpop.f32.mrb[121].mxu1 }
0x17ef   : > { %v6010_v27 = vpop.f32.mrb[122].mxu1 }
0x17f0   : > { %v9001_v61 = vpop.f32.mrb[123].mxu1 }
0x17f5   : > { %v6107_v50 = vpop.f32.mrb[124].mxu1 }
0x17f6   : > { %v9012_v26 = vpop.f32.mrb[125].mxu1  ;;  %v6216_v62 = vsel %vm4886_vm11, %v6107_v50, -inf }
0x17f7   : > { %6217 = vmax.xlane.f32.xlu1 %v6216_v62  ;;  %v6110_v36 = vpop.f32.mrb[126].mxu1 }
0x17f8   : > { %v9013_v8 = vpop.f32.mrb[127].mxu1 }
0x17fd   : > { %v6207_v1 = vpop.f32.mrb[128].mxu1 }
0x17fe   : > { %v9024_v2 = vpop.f32.mrb[129].mxu1  ;;  %v6222_v11 = vsel %vm4886_vm11, %v6207_v1, -inf }
0x17ff   : > { %v6210_v63 = vpop.f32.mrb[130].mxu1  ;;  %6223 = vmax.xlane.f32.xlu0 %v6222_v11 }
0x1800   : > { %v9025_v10 = vpop.f32.mrb[131].mxu1 }
0x1850   : > { %v6215_v37 = vpop.xlane.xlu0 %6214 }
0x1851   : > { %v6225_v13 = vsub.f32 %v6057_v25, %v6215_v37 }
0x1853   : > { %v6229_v17 = vmul.f32 1.442695, %v6225_v13 }
0x1855   : > { %9426 = vpow2.f32 %v6229_v17 }
0x1858   : > { %v6221_v18 = vpop.xlane.xlu0 %6220 }
0x1859   : > { %v6227_v5 = vsub.f32 %v6157_v34, %v6221_v18 }
0x185b   : > { %v6233_v20 = vmul.f32 1.442695, %v6227_v5 }
0x185d   : > { %9428 = vpow2.f32 %v6233_v20 }
0x185f   : > { %v9427_v21 = vpop.eup %9426 }
0x1860   : > { %v6237_v33 = vsel %vm4886_vm11, %v9427_v21, 0.0 }
0x1861   : > { %6238 = vadd.xlane.f32.xlu0 %v6237_v33 }
0x1867   : > { %v9429_v46 = vpop.eup %9428 }
0x1868   : > { %v6243_v56 = vsel %vm4886_vm11, %v9429_v46, 0.0 }
0x1869   : > { %6244 = vadd.xlane.f32.xlu0 %v6243_v56 }
0x187f   : > { %6261 = vrot.lane.b32.xlu0 %v10456_v57, %s11150_s5 }
0x1883   : > { %6457 = vrot.lane.b32.xlu0 %v10661_v49, %s11151_s3 }
0x1884   : > { %v6218_v59 = vpop.xlane.xlu1 %6217 }
0x1885   : > { %v6226_v38 = vsub.f32 %v6107_v50, %v6218_v59 }
0x1887   : > { %v6231_v24 = vmul.f32 1.442695, %v6226_v38  ;;  %6461 = vrot.lane.b32.xlu0 %v10665_v54, %s11151_s3 }
0x1889   : > { %9430 = vpow2.f32 %v6231_v24 }
0x188b   : > { %6473 = vrot.lane.b32.xlu0 %v5863_v53, %s11152_s8 }
0x188c   : > { %v6224_v57 = vpop.xlane.xlu0 %6223 }
0x188d   : > { %v6228_v49 = vsub.f32 %v6207_v1, %v6224_v57 }
0x188f   : > { %6477 = vrot.lane.b32.xlu0 %v5959_v12, %s11152_s8  ;;  %v6235_v0 = vmul.f32 1.442695, %v6228_v49 }
0x1891   : > { %9432 = vpow2.f32 %v6235_v0 }
0x1893   : > { %v9431_v25 = vpop.eup %9430 }
0x1894   : > { %v6240_v60 = vsel %vm4886_vm11, %v9431_v25, 0.0 }
0x1895   : > { %6241 = vadd.xlane.f32.xlu1 %v6240_v60 }
0x189b   : > { %v9433_v54 = vpop.eup %9432 }
0x189c   : > { %v6246_v31 = vsel %vm4886_vm11, %v9433_v54, 0.0 }
0x18a6   : > { %6309 = vrot.lane.b32.xlu1 %v10467_v3, %s11150_s5 }
0x18aa   : > { %6357 = vrot.lane.b32.xlu1 %v10539_v4, %s11150_s5 }
0x18ce   : > { %6247 = vadd.xlane.f32.xlu1 %v6246_v31 }
0x18df   : > { %6405 = vrot.lane.b32.xlu1 %v10541_v22, %s11150_s5  ;;  %s11156_s5 = sld [smem:[#allocation18_spill]] }
0x18e3   : > { %6459 = vrot.lane.b32.xlu1 %v10663_v58, %s11151_s3 }
0x18e7   : > { %6463 = vrot.lane.b32.xlu1 %v10669_v43, %s11151_s3  ;;  %s11153_s3 = sld [smem:[#allocation14_spill]] }
0x18eb   : > { %6475 = vrot.lane.b32.xlu1 %v10741_v9, %s11152_s8 }
0x18ed   : > { %v9272_v37 = vld [vmem:[%s11153_s3] sm:$0xff]   ;;  %v9273_v56 = vld [vmem:[%s11153_s3 + $0x8] sm:$0xff]   ;;  %s11158_s3 = sld [smem:[#allocation16_spill]] }
0x18ee   : > { %v6239_v3 = vpop.xlane.xlu0 %6238 }
0x18ef   : > { %9434 = vrcp.f32 %v6239_v3  ;;  %6479 = vrot.lane.b32.xlu1 %v6007_v45, %s11152_s8  ;;  %s11154_s8 = smov 24  }
0x18f6   : > { %v6245_v4 = vpop.xlane.xlu0 %6244 }
0x18f7   : > { %9436 = vrcp.f32 %v6245_v4 }
0x18f9   : > { %v9435_v53 = vpop.eup %9434 }
0x18fa   : > { %v6253_v12 = vmul.f32 %v9435_v53, %v9427_v21  ;;  %v6262_v30 = vpop.permute.xlu0 %6261 }
0x18fb   : > { %v6267_v34 = vsel %vm4939_vm10, %v6262_v30, 0 }
0x18fc   : > { %9027 = vmatpush3.bf16.msra.mxu0 %v6267_v34  ;;  %v6257_v22 = vpack.c.bf16 %v6253_v12, %v6253_v12 }
0x18fd   : > { %9038 = vmatprep.subr.bf16.mxu0 %v9556_v40 }
0x18fe   : > { %v6458_v60 = vpop.permute.xlu0 %6457 }
0x18ff   : > { %9029 = vmatmul.mubr.msk.bf16.vlgmr.msra.gmra.mrb[144].mxu0 %vm4935_vm12, %v6257_v22  ;;  %v6501_v12 = vsel %vm1751_vm3, %v10581_v14, %v6458_v60 }
0x1900   : > { %9040 = vmatprep.mubr.msk.bf16.mxu0 %vm9557_vm2, %v9556_v40 }
0x1901   : > { %v9437_v43 = vpop.eup %9436 }
0x1902   : > { %v6255_v39 = vmul.f32 %v9437_v43, %v9429_v46  ;;  %v6462_v49 = vpop.permute.xlu0 %6461 }
0x1904   : > { %v6259_v48 = vpack.c.bf16 %v6255_v39, %v6255_v39 }
0x1922   : > { %v6242_v58 = vpop.xlane.xlu1 %6241 }
0x1923   : > { %9438 = vrcp.f32 %v6242_v58 }
0x1926   : > { %v6310_v9 = vpop.permute.xlu1 %6309 }
0x1927   : > { %v6315_v35 = vsel %vm4939_vm10, %v6310_v9, 0 }
0x1928   : > { %9033 = vmatpush3.bf16.msra.mxu1 %v6315_v35 }
0x1929   : > { %9044 = vmatprep.subr.bf16.mxu1 %v9556_v40 }
0x192a   : > { %v6358_v41 = vpop.permute.xlu1 %6357 }
0x192b   : > { %v6363_v32 = vsel %vm4939_vm10, %v6358_v41, 0  ;;  %v6503_v41 = vsel %vm1751_vm3, %v10585_v23, %v6462_v49 }
0x192c   : > { %9039 = vmatpush3.bf16.msra.mxu0 %v6363_v32 }
0x192d   : > { %v9439_v45 = vpop.eup %9438  ;;  %9050 = vmatprep.subr.bf16.mxu0 %v9556_v40 }
0x192e   : > { %v6254_v27 = vmul.f32 %v9439_v45, %v9431_v25 }
0x192f   : > { %9041 = vmatmul.mubr.msk.bf16.vlgmr.msra.gmra.mrb[148].mxu0 %vm4935_vm12, %v6259_v48 }
0x1930   : > { %v6258_v61 = vpack.c.bf16 %v6254_v27, %v6254_v27  ;;  %9054 = vmatprep.mubr.msk.bf16.mxu0 %vm9557_vm2, %v9556_v40  ;;  %9051 = vmatpush3.bf16.msra.mxu0 %v9272_v37 }
0x1931   : > { %9052 = vmatprep.subr.bf16.mxu0 %v9556_v40 }
0x1932   : > { %9035 = vmatmul.mubr.msk.bf16.vlgmr.msra.gmra.mrb[132].mxu1 %vm4935_vm12, %v6258_v61 }
0x1933   : > { %9046 = vmatprep.mubr.msk.bf16.mxu1 %vm9557_vm2, %v9556_v40 }
0x1934   : > { %9053 = vmatpush3.bf16.msra.mxu0 %v9273_v56 }
0x1935   : > { %9066 = vmatprep.subr.bf16.mxu0 %v9556_v40 }
0x195b   : > { %v6248_v50 = vpop.xlane.xlu1 %6247 }
0x195c   : > { %9440 = vrcp.f32 %v6248_v50 }
0x195f   : > { %v6406_v26 = vpop.permute.xlu1 %6405 }
0x1960   : > { %v6411_v62 = vsel %vm4939_vm10, %v6406_v26, 0  ;;  %v9458_v26 = vld [vmem:[%s10293_s23] sm:$0xf] }
0x1961   : > { %9045 = vmatpush3.bf16.msra.mxu1 %v6411_v62 }
0x1962   : > { %9058 = vmatprep.subr.bf16.mxu1 %v9556_v40 }
0x1963   : > { %v6460_v57 = vpop.permute.xlu1 %6459 }
0x1964   : > { %v6502_v30 = vsel %vm1751_vm3, %v10583_v19, %v6460_v57 }
0x1966   : > { %v9441_v36 = vpop.eup %9440 }
0x1967   : > { %v6256_v8 = vmul.f32 %v9441_v36, %v9433_v54  ;;  %v6464_v0 = vpop.permute.xlu1 %6463  ;;  %v6474_v54 = vpop.permute.xlu0 %6473 }
0x1968   : > { %v6505_v34 = vsel %vm3555_vm7, %v6501_v12, %v6474_v54  ;;  %v6504_v14 = vsel %vm1751_vm3, %v10589_v52, %v6464_v0 }
0x1969   : > { %v6260_v1 = vpack.c.bf16 %v6256_v8, %v6256_v8 }
0x196b   : > { %9047 = vmatmul.mubr.msk.bf16.vlgmr.msra.gmra.mrb[136].mxu1 %vm4935_vm12, %v6260_v1  ;;  %v6476_v31 = vpop.permute.xlu1 %6475  ;;  %v6478_v3 = vpop.permute.xlu0 %6477  ;;  %v9459_v1 = vld [vmem:[%s10293_s23 + $0x4] sm:$0xf] }
0x196c   : > { %9062 = vmatprep.mubr.msk.bf16.mxu1 %vm9557_vm2, %v9556_v40  ;;  %v6506_v22 = vsel %vm3555_vm7, %v6502_v30, %v6476_v31  ;;  %v6507_v19 = vsel %vm3555_vm7, %v6503_v41, %v6478_v3 }
0x196f   : > { %v6480_v4 = vpop.permute.xlu1 %6479 }
0x1970   : > { %v6508_v32 = vsel %vm3555_vm7, %v6504_v14, %v6480_v4 }
0x19d2   : > { %v6303_v2 = vpop.f32.mrb[144].mxu0 }
0x19d3   : > { %6489 = vrot.lane.b32.xlu0 %v6303_v2, %s11154_s8  ;;  %v9030_v11 = vpop.f32.mrb[145].mxu0 }
0x19d4   : > { %v6306_v63 = vpop.f32.mrb[146].mxu0 }
0x19d5   : > { %v9031_v10 = vpop.f32.mrb[147].mxu0  ;;  %v9460_v63 = vld [vmem:[%s10293_s23 + $0x8] sm:$0xf] }
0x1a02   : > { %v6399_v13 = vpop.f32.mrb[148].mxu0 }
0x1a03   : > { %6493 = vrot.lane.b32.xlu0 %v6399_v13, %s11154_s8  ;;  %v9042_v17 = vpop.f32.mrb[149].mxu0 }
0x1a04   : > { %v6402_v18 = vpop.f32.mrb[150].mxu0 }
0x1a05   : > { %v6351_v5 = vpop.f32.mrb[132].mxu1  ;;  %v9043_v20 = vpop.f32.mrb[151].mxu0  ;;  %v9461_v18 = vld [vmem:[%s10293_s23 + $0xc] sm:$0xf]  ;;  %s11155_s23 = sld [smem:[#allocation17_spill]] }
0x1a06   : > { %v9036_v21 = vpop.f32.mrb[133].mxu1  ;;  %6491 = vrot.lane.b32.xlu1 %v6351_v5, %s11154_s8 }
0x1a07   : > { %v6354_v33 = vpop.f32.mrb[134].mxu1 }
0x1a08   : > { %v9037_v46 = vpop.f32.mrb[135].mxu1 }
0x1a3e   : > { %v6447_v59 = vpop.f32.mrb[136].mxu1 }
0x1a3f   : > { %6495 = vrot.lane.b32.xlu1 %v6447_v59, %s11154_s8  ;;  %v9048_v38 = vpop.f32.mrb[137].mxu1  ;;  %s11157_s8 = sld [smem:[#allocation15_spill]] }
0x1a40   : > { %v6450_v24 = vpop.f32.mrb[138].mxu1 }
0x1a41   : > { %v9049_v25 = vpop.f32.mrb[139].mxu1 }
0x1a45   : > { %v6490_v53 = vpop.permute.xlu0 %6489 }
0x1a46   : > { %v6509_v43 = vsel %vm3560_vm8, %v6505_v34, %v6490_v53 }
0x1a75   : > { %v6494_v39 = vpop.permute.xlu0 %6493 }
0x1a76   : > { %v6511_v48 = vsel %vm3560_vm8, %v6507_v19, %v6494_v39  ;;  %v9278_v39 = vld [vmem:[%s11156_s5 + $0x10] sm:$0xff]  }
0x1a78   : > { %v6492_v58 = vpop.permute.xlu1 %6491 }
0x1a79   : > { %v6510_v9 = vsel %vm3560_vm8, %v6506_v22, %v6492_v58  ;;  %v9274_v58 = vld [vmem:[%s11155_s23] sm:$0xff]  }
0x1a7a   : > { %v6517_v35 = vcombine.low %v6509_v43, %v6510_v9  ;;  %9059 = vmatpush3.bf16.msra.mxu1 %v9274_v58  ;;  %v9275_v43 = vld [vmem:[%s11155_s23 + $0x8] sm:$0xff]   ;;  %v9276_v9 = vld [vmem:[%s11156_s5] sm:$0xff]  }
0x1a7b   : > { %9060 = vmatprep.subr.bf16.mxu1 %v9556_v40 }
0x1a7e   : > { %9061 = vmatpush3.bf16.msra.mxu1 %v9275_v43 }
0x1a7f   : > { %9086 = vmatprep.subr.mxu1 %v9556_v40 }
0x1ab1   : > { %v6496_v45 = vpop.permute.xlu1 %6495 }
0x1ab2   : > { %v6512_v27 = vsel %vm3560_vm8, %v6508_v32, %v6496_v45 }
0x1ab3   : > { %v6518_v61 = vcombine.low %v6511_v48, %v6512_v27 }
0x1ab5   : > { %v6521_v50 = vpack.c.bf16 %v6518_v61, %v6517_v35  ;;  %v9277_v35 = vld [vmem:[%s11156_s5 + $0x8] sm:$0xff]  }
0x1ab7   : > { %9055 = vmatmul.mubr.msk.bf16.vlgmr.msra.gmra.mrb[152].mxu0 %vm1195_vm1, %v6521_v50 }
0x1ab8   : > { %9082 = vmatprep.mubr.msk.bf16.mxu0 %vm9557_vm2, %v9556_v40  ;;  %9067 = vmatpush3.bf16.msra.mxu0 %v9276_v9 }
0x1ab9   : > { %9068 = vmatprep.subr.bf16.mxu0 %v9556_v40 }
0x1abc   : > { %9069 = vmatpush3.bf16.msra.mxu0 %v9277_v35 }
0x1abd   : > { %9070 = vmatprep.subr.bf16.mxu0 %v9556_v40 }
0x1ac0   : > { %9071 = vmatpush3.bf16.msra.mxu0 %v9278_v39 }
0x1ac1   : > { %9072 = vmatprep.subr.bf16.mxu0 %v9556_v40 }
0x1b8a   : > { %v6571_v23 = vpop.f32.mrb[152].mxu0 }
0x1b8b   : > { %v6580_v52 = vcombine.high %v6571_v23, %v6571_v23  ;;  %v10820_v62 = vadd.f32 %v9458_v26, %v6571_v23  ;;  %v9056_v36 = vpop.f32.mrb[153].mxu0 }
0x1b8c   : > { %v6574_v8 = vpop.f32.mrb[154].mxu0 }
0x1b8d   : > { %v10823_v2 = vadd.f32 %v9459_v1, %v6580_v52  ;;  %v6581_v11 = vcombine.high %v6574_v8, %v6574_v8  ;;  %v10826_v10 = vadd.f32 %v9460_v63, %v6574_v8  ;;  %v9057_v37 = vpop.f32.mrb[155].mxu0  ;;  %v6588_v13 = vsel %vm4426_vm9, %v10820_v62, 0.0 }
0x1b8e   : > { %6589 = vadd.xlane.f32.xlu0 %v6588_v13  ;;  %v8311_v13 = vld [vmem:[%s11157_s8] ss:$0 sm:$0xff]  ;;  %s11160_s8 = sld [smem:[#allocation20_spill]] }
0x1b8f   : > { %v6591_v17 = vsel %vm4426_vm9, %v10823_v2, 0.0  ;;  %v10833_v5 = vadd.f32 %v9461_v18, %v6581_v11  ;;  %v6594_v20 = vsel %vm4426_vm9, %v10826_v10, 0.0 }
0x1b90   : > { %6592 = vadd.xlane.f32.xlu1 %v6591_v17 }
0x1b91   : > { %v6597_v21 = vsel %vm4426_vm9, %v10833_v5, 0.0 }
0x1b92   : > { %6595 = vadd.xlane.f32.xlu0 %v6594_v20 }
0x1b96   : > { %6598 = vadd.xlane.f32.xlu0 %v6597_v21 }
0x1c1b   : > { %v6590_v33 = vpop.xlane.xlu0 %6589 }
0x1c1c   : > { %v6600_v46 = vmul.f32 0.03125, %v6590_v33 }
0x1c1d   : > { %v6593_v56 = vpop.xlane.xlu1 %6592 }
0x1c1e   : > { %v6604_v59 = vsub.f32 %v10820_v62, %v6600_v46  ;;  %v6601_v38 = vmul.f32 0.03125, %v6593_v56  ;;  %v8312_v46 = vld [vmem:[%s11158_s3] ss:$0 sm:$0xff]  ;;  %s11159_s3 = sld [smem:[#allocation21_spill]] }
0x1c1f   : > { %v6596_v24 = vpop.xlane.xlu0 %6595 }
0x1c20   : > { %v6605_v25 = vsub.f32 %v10823_v2, %v6601_v38  ;;  %v6602_v60 = vmul.f32 0.03125, %v6596_v24  ;;  %v6608_v57 = vmul.f32 %v6604_v59, %v6604_v59 }
0x1c22   : > { %v6606_v49 = vsub.f32 %v10826_v10, %v6602_v60  ;;  %v6612_v0 = vsel %vm4426_vm9, %v6608_v57, 0.0  ;;  %v6609_v54 = vmul.f32 %v6605_v25, %v6605_v25 }
0x1c23   : > { %6613 = vadd.xlane.f32.xlu0 %v6612_v0  ;;  %v6599_v31 = vpop.xlane.xlu0 %6598 }
0x1c24   : > { %v6603_v3 = vmul.f32 0.03125, %v6599_v31  ;;  %v6615_v4 = vsel %vm4426_vm9, %v6609_v54, 0.0  ;;  %v6610_v53 = vmul.f32 %v6606_v49, %v6606_v49  ;;  %v9280_v54 = vld [vmem:[%s11156_s5 + $0x20] sm:$0xff]   ;;  %v9281_v31 = vld [vmem:[%s11156_s5 + $0x28] sm:$0xff]  }
0x1c25   : > { %6616 = vadd.xlane.f32.xlu1 %v6615_v4  ;;  %v9283_v4 = vld [vmem:[%s11156_s5 + $0x38] sm:$0xff]  }
0x1c26   : > { %v6607_v12 = vsub.f32 %v10833_v5, %v6603_v3  ;;  %v6618_v30 = vsel %vm4426_vm9, %v6610_v53, 0.0  ;;  %v9282_v3 = vld [vmem:[%s11156_s5 + $0x30] sm:$0xff]  }
0x1c27   : > { %6619 = vadd.xlane.f32.xlu0 %v6618_v30 }
0x1c28   : > { %v6611_v34 = vmul.f32 %v6607_v12, %v6607_v12 }
0x1c2a   : > { %v6621_v22 = vsel %vm4426_vm9, %v6611_v34, 0.0 }
0x1c2b   : > { %6622 = vadd.xlane.f32.xlu1 %v6621_v22 }
0x1cb0   : > { %v6614_v41 = vpop.xlane.xlu0 %6613 }
0x1cb1   : > { %v6624_v14 = vmul.f32 0.03125, %v6614_v41 }
0x1cb2   : > { %v6617_v19 = vpop.xlane.xlu1 %6616 }
0x1cb3   : > { %v6628_v32 = vadd.f32 1e-06, %v6624_v14  ;;  %v6625_v45 = vmul.f32 0.03125, %v6617_v19 }
0x1cb4   : > { %v6620_v48 = vpop.xlane.xlu0 %6619 }
0x1cb5   : > { %v6629_v27 = vadd.f32 1e-06, %v6625_v45  ;;  %v6626_v61 = vmul.f32 0.03125, %v6620_v48  ;;  %9442 = vrsqrt.f32 %v6628_v32  ;;  %v6839_v48 = vld [vmem:[%s11159_s3] sm:$0x3f]  ;;  %s11161_s3 = sld [smem:[#allocation19_spill]] }
0x1cb7   : > { %9444 = vrsqrt.f32 %v6629_v27  ;;  %v6630_v50 = vadd.f32 1e-06, %v6626_v61  ;;  %v6840_v27 = vld [vmem:[%s9711_s20] sm:$0xf]  ;;  %v9564_v61 = vmov 0  }
0x1cb8   : > { %v6623_v23 = vpop.xlane.xlu1 %6622  ;;  %9247 = vset.pattern.permute.xlu1 %v9564_v61  ;;  %9246 = vset.pattern.permute.xlu0 %v9564_v61 }
0x1cb9   : > { %9446 = vrsqrt.f32 %v6630_v50  ;;  %v6627_v52 = vmul.f32 0.03125, %v6623_v23  ;;  %6997 = vperm.xlu1 %9247, %v6839_v48   ;;  %7149 = vperm.xlu0 %9246, %v6840_v27   ;;  %v4266_v50 = vrot.slane %v10487_v42, %v9806_v55 }
0x1cbb   : > { %v6631_v26 = vadd.f32 1e-06, %v6627_v52  ;;  %v4274_v23 = vcombine.high %v4266_v50, %v4266_v50 }
0x1cbd   : > { %9448 = vrsqrt.f32 %v6631_v26  ;;  %v4310_v52 = vcombine.low %v4266_v50, %v4274_v23 }
0x1cbf   : > { %v9443_v36 = vpop.eup %9442  ;;  %v4317_v26 = vrot.slane %v4310_v52, %v9806_v55 }
0x1cc0   : > { %v6636_v63 = vmul.f32 %v9443_v36, %v6604_v59  ;;  %v4324_v36 = vrot.slane %v10492_v16, %v9806_v55 }
0x1cc1   : > { %v9445_v8 = vpop.eup %9444 }
0x1cc2   : > { %v6637_v1 = vmul.f32 %v9445_v8, %v6605_v25  ;;  %v6646_v20 = vmul.f32 %v8311_v13, %v6636_v63  ;;  %v4325_v8 = vcombine.low %v4317_v26, %v4324_v36 }
0x1cc3   : > { %v9447_v11 = vpop.eup %9446 }
0x1cc4   : > { %v6638_v37 = vmul.f32 %v9447_v11, %v6606_v49  ;;  %v6647_v17 = vmul.f32 %v8311_v13, %v6637_v1  ;;  %v6656_v24 = vadd.f32 %v8312_v46, %v6646_v20  ;;  %v9279_v49 = vld [vmem:[%s11156_s5 + $0x18] sm:$0xff]   ;;  %v10886_v42 = vadd.f32 %v4325_v8, %v10290_v6  ;;  %v10900_v6 = vld [vmem:[%s11161_s3] sm:$0x3f]  ;;  %s11164_s3 = sshll.u32 %s11171_s2, 3  ;;  %s11116_s5 = sand.u32 1, %s9516_s10  }
0x1cc5   : > { %9073 = vmatpush3.bf16.msra.mxu0 %v9279_v49 }
0x1cc6   : > { %v6648_v21 = vmul.f32 %v8311_v13, %v6638_v37  ;;  %v6657_v38 = vadd.f32 %v8312_v46, %v6647_v17  ;;  %9074 = vmatprep.subr.bf16.mxu0 %v9556_v40  ;;  %v6836_v37 = vld [vmem:[%s11160_s8] sm:$0x3f]  ;;  %s11163_s8 = sld [smem:[#allocation22_spill]] }
0x1cc7   : > { %v9449_v18 = vpop.eup %9448 }
0x1cc8   : > { %v6639_v33 = vmul.f32 %v9449_v18, %v6607_v12  ;;  %v6658_v60 = vadd.f32 %v8312_v46, %v6648_v21  ;;  %v6664_v25 = vcombine.low %v6656_v24, %v6657_v38  ;;  %v10983_v38 = vadd.f32 %v10512_v51, %v10304_v47 }
0x1cc9   : > { %9075 = vmatpush3.bf16.msra.mxu0 %v9280_v54 }
0x1cca   : > { %v6649_v56 = vmul.f32 %v8311_v13, %v6639_v33  ;;  %9076 = vmatprep.subr.bf16.mxu0 %v9556_v40  ;;  %v10954_v33 = vadd.f32 %v10508_v44, %v10298_v15 }
0x1ccc   : > { %v6659_v57 = vadd.f32 %v8312_v46, %v6649_v56 }
0x1ccd   : > { %9077 = vmatpush3.bf16.msra.mxu0 %v9281_v31 }
0x1cce   : > { %v6665_v0 = vcombine.low %v6658_v60, %v6659_v57  ;;  %9078 = vmatprep.subr.bf16.mxu0 %v9556_v40 }
0x1cd0   : > { %v6668_v59 = vpack.c.bf16 %v6665_v0, %v6664_v25 }
0x1cd1   : > { %9079 = vmatpush3.bf16.msra.mxu0 %v9282_v3 }
0x1cd2   : > { %9063 = vmatmul.mubr.msk.bf16.vlgmr.msra.gmra.mrb[140].mxu1 %vm1195_vm1, %v6668_v59  ;;  %9080 = vmatprep.subr.bf16.mxu0 %v9556_v40 }
0x1cd3   : > { %9088 = vmatprep.mubr.msk.f32.mxu1 %vm9557_vm2, %v9556_v40 }
0x1cd5   : > { %9081 = vmatpush3.bf16.msra.mxu0 %v9283_v4 }
0x1cd6   : > { %9126 = vmatprep.subr.mxu0 %v9556_v40 }
0x1d38   : > { %v6998_v25 = vpop.permute.xlu1 %6997 }
0x1da5   : > { %v6718_v53 = vpop.f32.mrb[140].mxu1 }
0x1da6   : > { %v6727_v12 = vmul.f32 0.70710677, %v6718_v53  ;;  %v9064_v30 = vpop.f32.mrb[141].mxu1  ;;  %v6725_v39 = vmul.f32 0.5, %v6718_v53 }
0x1da7   : > { %v6721_v34 = vpop.f32.mrb[142].mxu1 }
0x1da8   : > { %9450 = verf.f32 %v6727_v12  ;;  %v6728_v22 = vmul.f32 0.70710677, %v6721_v34  ;;  %v9065_v58 = vpop.f32.mrb[143].mxu1  ;;  %v6726_v41 = vmul.f32 0.5, %v6721_v34  ;;  %v7150_v34 = vpop.permute.xlu0 %7149 }
0x1daa   : > { %9452 = verf.f32 %v6728_v22 }
0x1db2   : > { %v9451_v43 = vpop.eup %9450 }
0x1db3   : > { %v6731_v9 = vadd.f32 1.0, %v9451_v43 }
0x1db4   : > { %v9453_v35 = vpop.eup %9452 }
0x1db5   : > { %v6732_v14 = vadd.f32 1.0, %v9453_v35  ;;  %v6733_v19 = vmul.f32 %v6731_v9, %v6725_v39 }
0x1db7   : > { %v6734_v32 = vmul.f32 %v6732_v14, %v6726_v41 }
0x1db9   : > { %v6735_v45 = vpack.c.bf16 %v6734_v32, %v6733_v19 }
0x1dbb   : > { %9083 = vmatmul.mubr.bf16.vlgmr.msra.gmra.mrb[156].mxu0 %v6735_v45 }
0x1dbc   : > { %9128 = vmatprep.mubr.msk.f32.mxu0 %vm9557_vm2, %v9556_v40 }
0x1e8e   : > { %v6818_v1 = vpop.f32.mrb[156].mxu0 }
0x1e8f   : > { %v10882_v11 = vadd.f32 %v6818_v1, %v10820_v62  ;;  %v9084_v63 = vpop.f32.mrb[157].mxu0  ;;  %v6838_v62 = vld [vmem:[%s11162_s6] sm:$0xf]  ;;  %v6827_v20 = vcombine.high %v6818_v1, %v6818_v1  ;;  %s8194_s6 = sshll.u32 %s11116_s5, 4 }
0x1e90   : > { %v6821_v13 = vpop.f32.mrb[158].mxu0  ;;  %s11026_s2 = scalar_lea.vmem [#allocation2], %s8194_s6  ;;  %s8367_s6 = sshll.u32 %s9744_s0, 8 }
0x1e91   : > { %v10889_v17 = vadd.f32 %v6821_v13, %v10826_v10  ;;  %v9085_v18 = vpop.f32.mrb[159].mxu0  ;;  %9087 = vmatpush3.msk.msra.mxu1 %vm6844_vm13, %v10882_v11  ;;  %v6828_v16 = vcombine.high %v6821_v13, %v6821_v13  ;;  %v10935_v21 = vadd.f32 %v6827_v20, %v10823_v2  ;;  %v4293_v2 = vcombine.high %v10485_v7, %v10485_v7  ;;  %s11048_s5 = scalar_lea.hbm %s9721_s4, %s8367_s6  ;;  %s9565_s0 = smov [#allocation2]  }
0x1e92   : > { %9089 = vmatmul.mubr.msk.f32.vlgmr.msra.gmra.mrb[144].mxu1 %vm4935_vm12, %v6836_v37  ;;  %9091 = vmatprep.subr.mxu1 %v9556_v40  ;;  %v4308_v7 = vcombine.high %v10501_v29, %v10501_v29 }
0x1e93   : > { %9092 = vmatpush3.msk.msra.mxu1 %vm6921_vm14, %v10886_v42  ;;  %9127 = vmatpush3.msk.msra.mxu0 %vm6844_vm13, %v10889_v17  ;;  %v10913_v10 = vadd.f32 %v6828_v16, %v10833_v5  ;;  %v6837_v5 = vld [vmem:[%s11163_s8] sm:$0xf]  ;;  %v4307_v46 = vrot.slane %v4293_v2, %v9806_v55  ;;  %s11017_s8 = scalar_lea.vmem %s9716_s27, %s11164_s3  ;;  %s8062_s3 = sshll.u32 %s11026_s2, 4  ;;  %s11050_s3 = int_to_ptr.vmem [resolvable:$true] %s8062_s3 }
0x1e94   : > { %9129 = vmatmul.mubr.msk.f32.vlgmr.msra.gmra.mrb[160].mxu0 %vm4935_vm12, %v6836_v37  ;;  %9136 = vmatprep.subr.mxu0 %v9556_v40  ;;  %s9462_s13 = scalar_lea.vmem %s11050_s3, 256 }
0x1e95   : > { %9093 = vmatprep.mubr.msk.f32.mxu1 %vm9557_vm2, %v9556_v40  ;;  %9096 = vmatprep.subr.mxu1 %v9556_v40  ;;  %v4309_v15 = vcombine.high %v4307_v46, %v4307_v46  ;;  %v4358_v44 = vcombine.low %v4308_v7, %v4307_v46  ;;  %p9463_p11 = scmp.ne.s32.totalorder %s11050_s3, %s9462_s13 }
0x1e96   : > { %9137 = vmatpush3.msk.msra.mxu0 %vm6844_vm13, %v10889_v17  ;;  %9094 = vmatmul.mubr.msk.f32.vlgmr.msra.gmra.mrb[146].mxu1 %vm1985_vm6, %v10900_v6 }
0x1e97   : > { %9097 = vmatpush3.msk.msra.mxu1 %vm6844_vm13, %v10882_v11  ;;  %9138 = vmatprep.mubr.msk.f32.mxu0 %vm9557_vm2, %v9556_v40  ;;  %v4365_v29 = vrot.slane %v4358_v44, %v9806_v55  ;;  %v4372_v56 = vrot.slane %v4309_v15, %v9806_v55  ;;  %p9464_p12 = pnand %p9463_p11, %p9761_p5 }
0x1e98   : > { %9146 = vmatprep.subr.mxu0 %v9556_v40  ;;  %9139 = vmatmul.mubr.msk.f32.vlgmr.msra.gmra.mrb[162].mxu0 %vm4935_vm12, %v6838_v62 }
0x1e99   : > { %9147 = vmatpush3.msk.msra.mxu0 %vm6844_vm13, %v10913_v10  ;;  %9098 = vmatprep.mubr.msk.f32.mxu1 %vm9557_vm2, %v9556_v40  ;;  %v4373_v24 = vcombine.low %v4365_v29, %v4372_v56  ;;  %p9465_p13 = pneg %p9464_p12 }
0x1e9a   : > { %9101 = vmatprep.subr.mxu1 %v9556_v40  ;;  %9099 = vmatmul.mubr.msk.f32.vlgmr.msra.gmra.mrb[148].mxu1 %vm4935_vm12, %v6838_v62 }
0x1e9b   : > { %9102 = vmatpush3.msk.msra.mxu1 %vm6921_vm14, %v10886_v42  ;;  %9148 = vmatprep.mubr.msk.f32.mxu0 %vm9557_vm2, %v9556_v40  ;;  %v10999_v55 = vadd.f32 %v4373_v24, %v10309_v28 }
0x1e9c   : > { %9156 = vmatprep.subr.mxu0 %v9556_v40  ;;  %9149 = vmatmul.mubr.msk.f32.vlgmr.msra.gmra.mrb[164].mxu0 %vm4935_vm12, %v6836_v37 }
0x1e9d   : > { %9157 = vmatpush3.msk.msra.mxu0 %vm6844_vm13, %v10913_v10  ;;  %9103 = vmatprep.mubr.msk.f32.mxu1 %vm9557_vm2, %v9556_v40 }
0x1e9e   : > { %9106 = vmatprep.subr.mxu1 %v9556_v40  ;;  %9104 = vmatmul.mubr.msk.f32.vlgmr.msra.gmra.mrb[150].mxu1 %vm1985_vm6, %v6837_v5 }
0x1e9f   : > { %9107 = vmatpush3.msk.msra.mxu1 %vm6844_vm13, %v10935_v21  ;;  %9108 = vmatprep.mubr.msk.f32.mxu1 %vm9557_vm2, %v9556_v40 }
0x1ea0   : > { %9111 = vmatprep.subr.mxu1 %v9556_v40  ;;  %9158 = vmatprep.mubr.msk.f32.mxu0 %vm9557_vm2, %v9556_v40 }
0x1ea1   : > { %9159 = vmatmul.mubr.msk.f32.vlgmr.msra.gmra.mrb[166].mxu0 %vm4935_vm12, %v6838_v62 }
0x1ea2   : > { %9109 = vmatmul.mubr.msk.f32.vlgmr.msra.gmra.mrb[152].mxu1 %vm4935_vm12, %v6836_v37 }
0x1ea3   : > { %9112 = vmatpush3.msk.msra.mxu1 %vm6921_vm14, %v10954_v33  ;;  %9113 = vmatprep.mubr.msk.f32.mxu1 %vm9557_vm2, %v9556_v40 }
0x1ea4   : > { %9116 = vmatprep.subr.mxu1 %v9556_v40 }
0x1ea6   : > { %9114 = vmatmul.mubr.msk.f32.vlgmr.msra.gmra.mrb[154].mxu1 %vm1985_vm6, %v10900_v6 }
0x1ea7   : > { %9117 = vmatpush3.msk.msra.mxu1 %vm6844_vm13, %v10935_v21  ;;  %9118 = vmatprep.mubr.msk.f32.mxu1 %vm9557_vm2, %v9556_v40 }
0x1ea8   : > { %9121 = vmatprep.subr.mxu1 %v9556_v40 }
0x1eaa   : > { %9119 = vmatmul.mubr.msk.f32.vlgmr.msra.gmra.mrb[156].mxu1 %vm4935_vm12, %v6838_v62 }
0x1eab   : > { %9122 = vmatpush3.msk.msra.mxu1 %vm6921_vm14, %v10954_v33  ;;  %9123 = vmatprep.mubr.msk.f32.mxu1 %vm9557_vm2, %v9556_v40 }
0x1eac   : > { %9131 = vmatprep.subr.mxu1 %v9556_v40 }
0x1eae   : > { %9124 = vmatmul.mubr.msk.f32.vlgmr.msra.gmra.mrb[158].mxu1 %vm1985_vm6, %v6837_v5 }
0x1eaf   : > { %9132 = vmatpush3.msk.msra.mxu1 %vm6921_vm14, %v10983_v38  ;;  %9133 = vmatprep.mubr.msk.f32.mxu1 %vm9557_vm2, %v9556_v40 }
0x1eb0   : > { %9141 = vmatprep.subr.mxu1 %v9556_v40 }
0x1eb2   : > { %9134 = vmatmul.mubr.msk.f32.vlgmr.msra.gmra.mrb[160].mxu1 %vm1985_vm6, %v10900_v6 }
0x1eb3   : > { %9142 = vmatpush3.msk.msra.mxu1 %vm6921_vm14, %v10983_v38  ;;  %9143 = vmatprep.mubr.msk.f32.mxu1 %vm9557_vm2, %v9556_v40 }
0x1eb4   : > { %9151 = vmatprep.subr.mxu1 %v9556_v40 }
0x1eb6   : > { %9144 = vmatmul.mubr.msk.f32.vlgmr.msra.gmra.mrb[162].mxu1 %vm1985_vm6, %v6837_v5 }
0x1eb7   : > { %9152 = vmatpush3.msk.msra.mxu1 %vm6921_vm14, %v10999_v55  ;;  %9153 = vmatprep.mubr.msk.f32.mxu1 %vm9557_vm2, %v9556_v40 }
0x1eb8   : > { %9161 = vmatprep.subr.mxu1 %v9556_v40 }
0x1eba   : > { %9154 = vmatmul.mubr.msk.f32.vlgmr.msra.gmra.mrb[164].mxu1 %vm1985_vm6, %v10900_v6 }
0x1ebb   : > { %9162 = vmatpush3.msk.msra.mxu1 %vm6921_vm14, %v10999_v55  ;;  %9163 = vmatprep.mubr.msk.f32.mxu1 %vm9557_vm2, %v9556_v40 }
0x1ebe   : > { %9164 = vmatmul.mubr.msk.f32.vlgmr.msra.gmra.mrb[166].mxu1 %vm1985_vm6, %v6837_v5 }
0x1f65   : > { %v6914_v47 = vpop.f32.mrb[144].mxu1 }
0x1f66   : > { %v9090_v28 = vpop.f32.mrb[145].mxu1 }
0x1f67   : > { %v7520_v51 = vpop.f32.mrb[160].mxu0 }
0x1f68   : > { %v9130_v60 = vpop.f32.mrb[161].mxu0 }
0x1f69   : > { %v6991_v57 = vpop.f32.mrb[146].mxu1 }
0x1f6a   : > { %v6992_v0 = vadd.f32 %v6991_v57, %v6914_v47  ;;  %v9095_v59 = vpop.f32.mrb[147].mxu1 }
0x1f6b   : > { %v7664_v49 = vpop.f32.mrb[162].mxu0 }
0x1f6c   : > { %v7000_v54 = vadd.f32 %v6998_v25, %v6992_v0  ;;  %v9140_v31 = vpop.f32.mrb[163].mxu0 }
0x1f6d   : > { %v7070_v40 = vpop.f32.mrb[148].mxu1 }
0x1f6e   : > { %v7153_v3 = vadd.f32 %v7000_v54, %v10886_v42  ;;  %v9100_v4 = vpop.f32.mrb[149].mxu1 }
0x1f6f   : > { %v7814_v53 = vpop.f32.mrb[164].mxu0 }
0x1f70   : > { %7154 = vst.msk [vmem:[%s11017_s8] sm:$0x3f] %vm985_vm0, %v7153_v3  ;;  %v9150_v12 = vpop.f32.mrb[165].mxu0 }
0x1f71   : > { %v7143_v30 = vpop.f32.mrb[150].mxu1 }
0x1f72   : > { %v7144_v22 = vadd.f32 %v7143_v30, %v7070_v40  ;;  %v9105_v58 = vpop.f32.mrb[151].mxu1 }
0x1f74   : > { %v7152_v43 = vadd.f32 %v7150_v34, %v7144_v22  ;;  %v7958_v9 = vpop.f32.mrb[166].mxu0 }
0x1f75   : > { %v7226_v35 = vpop.f32.mrb[152].mxu1  ;;  %v9160_v39 = vpop.f32.mrb[167].mxu0 }
0x1f76   : > { %v7155_v41 = vadd.f32 %v7152_v43, %v10882_v11  ;;  %v9110_v14 = vpop.f32.mrb[153].mxu1 }
0x1f78   : > { %7156 = vst.msk [vmem:[%s11026_s2] sm:$0xf] %vm4426_vm9, %v7155_v41 }
0x1f79   : > { %v7299_v19 = vpop.f32.mrb[154].mxu1 }
0x1f7a   : > { %v7300_v32 = vadd.f32 %v7299_v19, %v7226_v35  ;;  %v9115_v45 = vpop.f32.mrb[155].mxu1 }
0x1f7c   : > { %v7303_v48 = vadd.f32 %v7300_v32, %v6998_v25 }
0x1f7d   : > { %v7370_v27 = vpop.f32.mrb[156].mxu1 }
0x1f7e   : > { %v7445_v61 = vadd.f32 %v7303_v48, %v10954_v33  ;;  %v9120_v50 = vpop.f32.mrb[157].mxu1 }
0x1f80   : > { %8340 = vst.msk [vmem:[%s11017_s8 + $0x8] sm:$0x3f] %vm985_vm0, %v7445_v61 }
0x1f81   : > { %v7440_v23 = vpop.f32.mrb[158].mxu1 }
0x1f82   : > { %v7441_v52 = vadd.f32 %v7440_v23, %v7370_v27  ;;  %v9125_v26 = vpop.f32.mrb[159].mxu1 }
0x1f84   : > { %v7444_v36 = vadd.f32 %v7441_v52, %v7150_v34 }
0x1f85   : > { %v7593_v8 = vpop.f32.mrb[160].mxu1 }
0x1f86   : > { %v7448_v1 = vadd.f32 %v7444_v36, %v10935_v21  ;;  %v7594_v11 = vadd.f32 %v7593_v8, %v7520_v51  ;;  %v9135_v63 = vpop.f32.mrb[161].mxu1 }
0x1f88   : > { %8341 = vst.msk [vmem:[%s11026_s2 + $0x4] sm:$0xf] %vm4426_vm9, %v7448_v1  ;;  %v7597_v37 = vadd.f32 %v7594_v11, %v6998_v25 }
0x1f89   : > { %v7734_v13 = vpop.f32.mrb[162].mxu1 }
0x1f8a   : > { %v7739_v42 = vadd.f32 %v7597_v37, %v10983_v38  ;;  %v7735_v18 = vadd.f32 %v7734_v13, %v7664_v49  ;;  %v9145_v16 = vpop.f32.mrb[163].mxu1 }
0x1f8c   : > { %8350 = vst.msk [vmem:[%s11017_s8 + $0x10] sm:$0x3f] %vm985_vm0, %v7739_v42  ;;  %v7738_v6 = vadd.f32 %v7735_v18, %v7150_v34 }
0x1f8d   : > { %v7887_v62 = vpop.f32.mrb[164].mxu1 }
0x1f8e   : > { %v7742_v20 = vadd.f32 %v7738_v6, %v10889_v17  ;;  %v7888_v5 = vadd.f32 %v7887_v62, %v7814_v53  ;;  %v9155_v21 = vpop.f32.mrb[165].mxu1 }
0x1f90   : > { %8351 = vst.msk [vmem:[%s11026_s2 + $0x8] sm:$0xf] %vm4426_vm9, %v7742_v20  ;;  %v7891_v2 = vadd.f32 %v7888_v5, %v6998_v25 }
0x1f91   : > { %v8028_v33 = vpop.f32.mrb[166].mxu1 }
0x1f92   : > { %v8033_v46 = vadd.f32 %v7891_v2, %v10999_v55  ;;  %v8029_v7 = vadd.f32 %v8028_v33, %v7958_v9  ;;  %v9165_v15 = vpop.f32.mrb[167].mxu1 }
0x1f94   : > { %8360 = vst.msk [vmem:[%s11017_s8 + $0x18] sm:$0x3f] %vm985_vm0, %v8033_v46  ;;  %v8032_v44 = vadd.f32 %v8029_v7, %v7150_v34  ;;  %s9466_s8 = sshll.u32 %s9565_s0, 4  ;;  %s9467_s8 = int_to_ptr.vmem [resolvable:$false] %s9466_s8 }
0x1f95   : > { %s9468_s6 = scalar_lea.vmem %s9467_s8, 512  ;;  %p9469_p0 = scmp.lt.s32.totalorder %s11050_s3, %s9467_s8 }
0x1f96   : > { %v8036_v17 = vadd.f32 %v8032_v44, %v10913_v10  ;;  %p9470_p1 = scmp.lt.s32.totalorder %s9468_s6, %s9462_s13 }
0x1f98   : > { %8361 = vst.msk [vmem:[%s11026_s2 + $0xc] sm:$0xf] %vm4426_vm9, %v8036_v17  ;;  %p9471_p2 = por %p9470_p1, %p9469_p0 }
0x1f9a   : > { %p9472_p3 = pnand %p9471_p2, %p9465_p13 }
0x1f9c   : > { %9475 = shalt.err (!%p9472_p3)
}
0x1f9d   : > { %s9476_s9 = scalar_lea.hbm %s11048_s5, 256  ;;  %s9480_s2 = scalar_lea.hbm %s9721_s4, 512 }
0x1f9e   : > { %p9477_p4 = scmp.ne.s32.totalorder %s11048_s5, %s9476_s9  ;;  %p9481_p9 = scmp.lt.u32.totalorder %s11048_s5, %s9721_s4 }
0x1f9f   : > { %p9482_p10 = scmp.lt.u32.totalorder %s9480_s2, %s9476_s9  ;;  %p9484_p12 = scmp.lt.u32.totalorder %s9476_s9, %s11048_s5 }
0x1fa0   : > { %p9478_p7 = pnand %p9477_p4, %p9761_p5 }
0x1fa1   : > { %p9483_p11 = por %p9482_p10, %p9481_p9 }
0x1fa2   : > { %p9479_p8 = pneg %p9478_p7 }
0x1fa3   : > { %p9485_p0 = por %p9484_p12, %p9483_p11 }
0x1fa5   : > { %p9486_p13 = pnand %p9485_p0, %p9479_p8 }
0x1fa7   : > { %9489 = shalt.err (!%p9486_p13)
}
0x1fa8   : > { %s9566_s13 = smov 64   ;;  %s9567_s0 = smov 4  }
0x1fa9   : > { %9166 = dma.vmem_to_hbm [thread:$0]  (%p9761_p5), %s11050_s3, 256, %s11048_s5, %s11057_s12, %s9566_s13, %s9566_s13, %s9567_s0  }
0x1faa PF: > { %p9172_p1 = scmp.ge.s32.totalorder %s9524_s15, 2  ;;  %s8085_s8 = sand.u32 1, %s9512_s7  }
0x1fab   : > { %s8086_s6 = scalar_lea.sflag [#allocation3], %s8085_s8 }
0x1fac   : > { %p9169_p2 = pnand %p9172_p1, %p9765_p6 }
0x1fae   : > { %9507 = dma.done.wait (!%p9169_p2), %s8086_s6, 256  }
0x1faf   : > { %9509 = vsyncadd (!%p9169_p2), %s8086_s6, 4294967040  ;;  %p70_p3 = scmp.ge.s32.totalorder %s9748_s18, 4   ;;  %s11166_s7 = smov %s9516_s10 }
0x1fb0   : > { %s11167_s10 = smov %s9520_s11  ;;  %s11168_s11 = smov %s9759_s26 }
0x1fb1   : > { %s11169_s15 = smov %s9748_s18  ;;  %72 = sbr.rel (!%p70_p3) target bundleno = 60 (0x3c), region = 217 }
0x1fb8   :  { %8091 = vsyncpa [#allocation3], 1 }
0x1fb9   :  { %8093 = vsyncpa [#allocation3 + $0x1], 1 }

</bundles_post_ra>
